<compile_context>
chip_gen: v7x
topology: tpu7x:2x2x1
jax: 0.10.0
libtpu: 0.0.40
codegen_flags: <defaults>
</compile_context>

<pallas_src>
import functools

import jax
import jax.numpy as jnp
from jax.experimental import pallas as pl
from jax.experimental.pallas import tpu as pltpu


# ----------------------------------------------------------------------------
# Glue: crop slice generation (mode='exact' -> only full, non-overlapping crops)
# ----------------------------------------------------------------------------
def get_crop_slices(height, width, crop_height, crop_width, mode="exact"):
    assert mode == "exact"
    slices = []
    for h0 in range(0, height - crop_height + 1, crop_height):
        for w0 in range(0, width - crop_width + 1, crop_width):
            slices.append((h0, w0, crop_height, crop_width))
    return slices


# ----------------------------------------------------------------------------
# Pallas kernel: ViT patch_forward for a group of G sequences (2-D token slab)
# ----------------------------------------------------------------------------
def _layer_norm(x, g, b, eps=1e-5):
    mu = jnp.mean(x, axis=-1, keepdims=True)
    var = jnp.mean((x - mu) ** 2, axis=-1, keepdims=True)
    return (x - mu) * jax.lax.rsqrt(var + eps) * g + b


def vit_patch_kernel(
    x_ref,        # (1, M, P) f32   -- cls rows are zero
    addend_ref,   # (M, D)    f32   -- patch_b + pos (cls + pos[0] at cls rows)
    bias_ref,     # (M, M)    f32   -- block-diagonal additive attention mask
    pw_ref,       # (P, D)    bf16  -- patch embedding weight
    ln1g_ref, ln1b_ref,              # (L, 1, D) f32
    wqkv_ref,                        # (L, D, 3*inner) bf16 (fused q|k|v)
    wo_ref,                          # (L, inner, D)   bf16
    bo_ref,                          # (L, 1, D) f32
    ln2g_ref, ln2b_ref,              # (L, 1, D) f32
    w1_ref, b1_ref,                  # (L, D, mlp) bf16, (L, 1, mlp) f32
    w2_ref, b2_ref,                  # (L, mlp, D) bf16, (L, 1, D) f32
    out_ref,                         # (1, M, D) f32
    *, n_blocks, n_heads, dim_head,
):
    bf16 = jnp.bfloat16
    x = x_ref[0]                                              # (M, P)

    # Patch (frame-token) embedding: bf16 inputs, f32 accumulation.  Bias, cls
    # token and positional embedding are folded into `addend` host-side; the
    # all-zero cls rows of x give an exactly-zero matmul result, so cls rows
    # come out as exactly cls + pos[0].
    emb = jnp.dot(x.astype(bf16), pw_ref[...],
                  preferred_element_type=jnp.float32)
    tokens = emb + addend_ref[...]                            # (M, D)

    attn_bias = bias_ref[...]                                 # (M, M)
    inner = n_heads * dim_head
    scale = dim_head ** -0.5
    contract_last = (((1,), (1,)), ((), ()))                  # q @ k^T, no transpose

    # NOTE: n_blocks is small (2) so static unrolling is fine; switch to
    # lax.fori_loop with dynamic ref[l] indexing if n_blocks grows.
    # TODO(synk): for realistic ViT sizes, stream per-layer weights via a grid
    # axis / emit_pipeline instead of keeping all L layers resident in VMEM
    # (required on v7x's 64 MiB VMEM).
    for l in range(n_blocks):
        # --- pre-norm multi-head self-attention ------------------------------
        xn = _layer_norm(tokens, ln1g_ref[l], ln1b_ref[l])
        qkv = jnp.dot(xn.astype(bf16), wqkv_ref[l],
                      preferred_element_type=jnp.float32)     # (M, 3*inner)
        q = qkv[:, :inner]
        k = qkv[:, inner:2 * inner]
        v = qkv[:, 2 * inner:]

        heads = []
        for h in range(n_heads):
            sl = slice(h * dim_head, (h + 1) * dim_head)
            qh = q[:, sl] * scale
            s = jax.lax.dot_general(qh, k[:, sl], contract_last,
                                    preferred_element_type=jnp.float32)
            s = s + attn_bias                 # -1e9 kills cross-sequence attention
            s = s - jnp.max(s, axis=-1, keepdims=True)
            e = jnp.exp(s)
            p = e * pl.reciprocal(jnp.sum(e, axis=-1, keepdims=True), approx=True)
            heads.append(jnp.dot(p, v[:, sl],
                                 preferred_element_type=jnp.float32))
        heads_cat = jnp.concatenate(heads, axis=-1)           # (M, inner)
        attn_out = jnp.dot(heads_cat.astype(bf16), wo_ref[l],
                           preferred_element_type=jnp.float32) + bo_ref[l]
        tokens = tokens + attn_out

        # --- pre-norm MLP block ---------------------------------------------
        xn = _layer_norm(tokens, ln2g_ref[l], ln2b_ref[l])
        hdn = jnp.dot(xn.astype(bf16), w1_ref[l],
                      preferred_element_type=jnp.float32) + b1_ref[l]
        # TODO(synk): PyTorch nn.GELU defaults to the exact erf formulation;
        # tanh approximation is used here for robust EUP lowering on TPU.
        hdn = jax.nn.gelu(hdn, approximate=True)
        ff = jnp.dot(hdn.astype(bf16), w2_ref[l],
                     preferred_element_type=jnp.float32) + b2_ref[l]
        tokens = tokens + ff

    # TODO(synk): with D=32 the store is not 128-lane dense (matters on v5e);
    # output volume here is tiny so it is left as-is.
    out_ref[0] = tokens


def _choose_group(n_seqs, n_tokens, max_rows=64):
    """Sequences per grid step: a divisor of n_seqs keeping the fused M-dim
    (g * n_tokens) modest and >= 2 grid steps when possible (v7x dual TC)."""
    best = 1
    for g in range(1, n_seqs + 1):
        if n_seqs % g:
            continue
        if g * n_tokens > max_rows:
            continue
        if n_seqs >= 2 and n_seqs // g < 2:
            continue
        best = g
    return best


@functools.partial(jax.jit, static_argnames=("n_blocks", "n_heads", "dim_head"))
def vit_patch_forward(x_flat, params, *, n_blocks, n_heads, dim_head):
    """ViT.patch_forward for all sequences at once: [S, T, P] -> [S, T+1, D]."""
    S, T, P = x_flat.shape
    D = params["patch_w"].shape[1]
    N = T + 1
    inner = n_heads * dim_head

    G = _choose_group(S, N)
    grid_len = S // G
    M = G * N

    # Prepend a zero "slot" per sequence that becomes the cls token, then fold
    # G sequences into each grid block.
    x_pad = jnp.concatenate([jnp.zeros((S, 1, P), x_flat.dtype), x_flat], axis=1)
    x_blocks = x_pad.reshape(grid_len, M, P)

    # Fold patch bias + positional embedding + cls token into one additive term.
    pos = params["pos"][:N]
    addend_seq = jnp.concatenate(
        [params["cls"] + pos[0:1], params["patch_b"] + pos[1:]], axis=0)  # (N, D)
    addend = jnp.tile(addend_seq, (G, 1)).astype(jnp.float32)             # (M, D)

    # Block-diagonal additive attention mask: tokens only attend within their
    # own sequence even though the matmul M-dim is fused over G sequences.
    seq_id = jnp.arange(M, dtype=jnp.int32) // N
    attn_bias = jnp.where(seq_id[:, None] == seq_id[None, :],
                          0.0, -1e9).astype(jnp.float32)                  # (M, M)

    bf16 = jnp.bfloat16
    wqkv = jnp.concatenate(
        [params["wq"], params["wk"], params["wv"]], axis=-1).astype(bf16)
    param_arrays = [
        params["patch_w"].astype(bf16),
        params["ln1_g"], params["ln1_b"],
        wqkv,
        params["wo"].astype(bf16), params["bo"],
        params["ln2_g"], params["ln2_b"],
        params["w1"].astype(bf16), params["b1"],
        params["w2"].astype(bf16), params["b2"],
    ]

    def _full_spec(a):
        zeros = (0,) * a.ndim
        # NOTE: grid-invariant params still get double-buffered by default;
        # acceptable at this size (could use pipeline_mode=pl.Buffered(1)).
        return pl.BlockSpec(a.shape, lambda i, zeros=zeros: zeros)

    kernel = functools.partial(
        vit_patch_kernel,
        n_blocks=n_blocks, n_heads=n_heads, dim_head=dim_head)

    out = pl.pallas_call(
        kernel,
        out_shape=jax.ShapeDtypeStruct((grid_len, M, D), jnp.float32),
        grid=(grid_len,),
        in_specs=[pl.BlockSpec((1, M, P), lambda i: (i, 0, 0)),
                  _full_spec(addend),
                  _full_spec(attn_bias)]
                 + [_full_spec(a) for a in param_arrays],
        out_specs=pl.BlockSpec((1, M, D), lambda i: (i, 0, 0)),
        compiler_params=pltpu.CompilerParams(
            dimension_semantics=("parallel",)),
    )(x_blocks, addend, attn_bias, *param_arrays)

    return out.reshape(S, N, D)


# ----------------------------------------------------------------------------
# Pure-JAX reference (independent, f32 HIGHEST precision)
# ----------------------------------------------------------------------------
def ref_patch_forward(x_flat, params, *, n_blocks, n_heads, dim_head):
    B, T, P = x_flat.shape
    D = params["patch_w"].shape[1]
    N = T + 1
    hp = jax.lax.Precision.HIGHEST
    emb = jnp.einsum("btp,pd->btd", x_flat, params["patch_w"],
                     precision=hp) + params["patch_b"]
    cls = jnp.broadcast_to(params["cls"][None], (B, 1, D))
    tokens = jnp.concatenate([cls, emb], axis=1) + params["pos"][None, :N]
    scale = dim_head ** -0.5
    for l in range(n_blocks):
        xn = _layer_norm(tokens, params["ln1_g"][l], params["ln1_b"][l])
        q = jnp.einsum("bnd,de->bne", xn, params["wq"][l], precision=hp)
        k = jnp.einsum("bnd,de->bne", xn, params["wk"][l], precision=hp)
        v = jnp.einsum("bnd,de->bne", xn, params["wv"][l], precision=hp)
        attn = jnp.zeros((B, N, D), jnp.float32)
        for h in range(n_heads):
            sl = slice(h * dim_head, (h + 1) * dim_head)
            qh, kh, vh = q[..., sl] * scale, k[..., sl], v[..., sl]
            dots = jnp.einsum("bnd,bmd->bnm", qh, kh, precision=hp)
            dots = dots - jnp.max(dots, axis=-1, keepdims=True)
            e = jnp.exp(dots)
            p = e / jnp.sum(e, axis=-1, keepdims=True)
            oh = jnp.einsum("bnm,bmd->bnd", p, vh, precision=hp)
            attn = attn + jnp.einsum("bnd,de->bne", oh,
                                     params["wo"][l][sl, :], precision=hp)
        tokens = tokens + attn + params["bo"][l]
        xn = _layer_norm(tokens, params["ln2_g"][l], params["ln2_b"][l])
        hdn = jnp.einsum("bnd,dm->bnm", xn, params["w1"][l],
                         precision=hp) + params["b1"][l]
        hdn = jax.nn.gelu(hdn, approximate=True)
        ff = jnp.einsum("bnm,md->bnd", hdn, params["w2"][l],
                        precision=hp) + params["b2"][l]
        tokens = tokens + ff
    return tokens


# ----------------------------------------------------------------------------
# Parameter construction (deterministic, synthetic)
# ----------------------------------------------------------------------------
def init_params(key, *, in_channels, frame_shape, patch_shape, dim,
                n_heads, n_blocks, mlp_dim, dim_head):
    P = in_channels * patch_shape * patch_shape
    inner = n_heads * dim_head
    num_patches = (frame_shape // patch_shape) ** 2
    ks = jax.random.split(key, 9)
    s = 0.02
    L = n_blocks
    f32 = jnp.float32
    return {
        "patch_w": (jax.random.normal(ks[0], (P, dim)) * s).astype(f32),
        "patch_b": jnp.zeros((1, dim), f32),
        "cls": (jax.random.normal(ks[1], (1, dim)) * s).astype(f32),
        "pos": (jax.random.normal(ks[2], (num_patches + 1, dim)) * s).astype(f32),
        "ln1_g": jnp.ones((L, 1, dim), f32),
        "ln1_b": jnp.zeros((L, 1, dim), f32),
        "wq": (jax.random.normal(ks[3], (L, dim, inner)) * s).astype(f32),
        "wk": (jax.random.normal(ks[4], (L, dim, inner)) * s).astype(f32),
        "wv": (jax.random.normal(ks[5], (L, dim, inner)) * s).astype(f32),
        "wo": (jax.random.normal(ks[6], (L, inner, dim)) * s).astype(f32),
        "bo": jnp.zeros((L, 1, dim), f32),
        "ln2_g": jnp.ones((L, 1, dim), f32),
        "ln2_b": jnp.zeros((L, 1, dim), f32),
        "w1": (jax.random.normal(ks[7], (L, dim, mlp_dim)) * s).astype(f32),
        "b1": jnp.zeros((L, 1, mlp_dim), f32),
        "w2": (jax.random.normal(ks[8], (L, mlp_dim, dim)) * s).astype(f32),
        "b2": jnp.zeros((L, 1, dim), f32),
    }


# ----------------------------------------------------------------------------
# PatchTransformerEncoder.forward equivalent (all crops fused into one call)
# ----------------------------------------------------------------------------
def patch_transformer_encoder_forward(video, params, cfg):
    """video: [B, T, C, H, W] -> list of dicts (one per crop slice)."""
    B, T = video.shape[0], video.shape[1]
    crop_slices = cfg["crop_slices"]
    num_crops = len(crop_slices)
    D = params["patch_w"].shape[1]

    crops = []
    for (H0, W0, dH, dW) in crop_slices:
        crops.append(video[:, :, :, H0:H0 + dH, W0:W0 + dW].reshape(B, T, -1))
    x_all = jnp.stack(crops, axis=0).reshape(num_crops * B, T, -1)

    tokens_all = vit_patch_forward(
        x_all, params,
        n_blocks=cfg["n_blocks"], n_heads=cfg["n_heads"],
        dim_head=cfg["dim_head"])                       # (num_crops*B, T+1, D)
    tokens_all = tokens_all.reshape(num_crops, B, T + 1, D)

    outputs = []
    for ci, crop_slice in enumerate(crop_slices):
        outputs.append({
            "og_height": cfg["frame_shape"],
            "og_width": cfg["frame_shape"],
            "crop_slice": crop_slice,
            "prediction": tokens_all[ci],               # [B, T+1, dim]
        })
    return outputs


if __name__ == "__main__":
    # Small config consistent with the module's constructor arguments.
    cfg = {
        "task_mode": "total_bin_change",
        "in_channels": 4,
        "frame_shape": 16,
        "patch_shape": 8,
        "max_frames": 4,
        "dim": 32,
        "n_heads": 4,
        "n_blocks": 2,
        "dim_linear_block": 64,
        "dim_head": 64,          # hardcoded in ViT(...) inside build()
    }
    cfg["crop_slices"] = get_crop_slices(
        cfg["frame_shape"], cfg["frame_shape"],
        cfg["patch_shape"], cfg["patch_shape"], mode="exact")

    key = jax.random.PRNGKey(0)
    k_vid, k_par = jax.random.split(key)
    B, T = 2, cfg["max_frames"]
    video = jax.random.normal(
        k_vid, (B, T, cfg["in_channels"], cfg["frame_shape"], cfg["frame_shape"]),
        dtype=jnp.float32)

    params = init_params(
        k_par,
        in_channels=cfg["in_channels"], frame_shape=cfg["frame_shape"],
        patch_shape=cfg["patch_shape"], dim=cfg["dim"],
        n_heads=cfg["n_heads"], n_blocks=cfg["n_blocks"],
        mlp_dim=cfg["dim_linear_block"], dim_head=cfg["dim_head"])

    outputs = patch_transformer_encoder_forward(video, params, cfg)
    for o in outputs:
        jax.block_until_ready(o["prediction"])

    # Verify against an independent f32 reference (kernel matmuls use bf16
    # inputs with f32 accumulation, hence the 2e-2 tolerance).
    ok = True
    for crop_slice, o in zip(cfg["crop_slices"], outputs):
        H0, W0, dH, dW = crop_slice
        crop_flat = video[:, :, :, H0:H0 + dH, W0:W0 + dW].reshape(B, T, -1)
        ref = ref_patch_forward(
            crop_flat, params, n_blocks=cfg["n_blocks"],
            n_heads=cfg["n_heads"], dim_head=cfg["dim_head"])
        if not jnp.allclose(o["prediction"], ref, atol=2e-2, rtol=2e-2):
            ok = False
            print("MISMATCH for crop", crop_slice,
                  float(jnp.max(jnp.abs(o["prediction"] - ref))))
    assert ok
    print("KERNEL_OK")
</pallas_src>

<mosaic_0001>
module attributes {stable_mosaic.version = 11 : i64} {
  func.func @vit_patch_kernel(%arg0: i32, %arg1: memref<1x20x256xf32, #tpu.memory_space<vmem>>, %arg2: memref<20x32xf32, #tpu.memory_space<vmem>>, %arg3: memref<20x20xf32, #tpu.memory_space<vmem>>, %arg4: memref<256x32xbf16, #tpu.memory_space<vmem>>, %arg5: memref<2x1x32xf32, #tpu.memory_space<vmem>>, %arg6: memref<2x1x32xf32, #tpu.memory_space<vmem>>, %arg7: memref<2x32x768xbf16, #tpu.memory_space<vmem>>, %arg8: memref<2x256x32xbf16, #tpu.memory_space<vmem>>, %arg9: memref<2x1x32xf32, #tpu.memory_space<vmem>>, %arg10: memref<2x1x32xf32, #tpu.memory_space<vmem>>, %arg11: memref<2x1x32xf32, #tpu.memory_space<vmem>>, %arg12: memref<2x32x64xbf16, #tpu.memory_space<vmem>>, %arg13: memref<2x1x64xf32, #tpu.memory_space<vmem>>, %arg14: memref<2x64x32xbf16, #tpu.memory_space<vmem>>, %arg15: memref<2x1x32xf32, #tpu.memory_space<vmem>>, %arg16: memref<1x20x32xf32, #tpu.memory_space<vmem>>) attributes {dimension_semantics = [#tpu.dimension_semantics<parallel>], iteration_bounds = array<i64: 2>, scalar_prefetch = 0 : i64, scratch_operands = 0 : i64, tpu.core_type = #tpu.core_type<tc>, window_params = [{transform_indices = @transform_0, window_bounds = array<i64: 1, 20, 256>}, {pipeline_mode = #tpu.pipeline_mode<synchronous>, transform_indices = @transform_1, window_bounds = array<i64: 20, 32>}, {pipeline_mode = #tpu.pipeline_mode<synchronous>, transform_indices = @transform_2, window_bounds = array<i64: 20, 20>}, {pipeline_mode = #tpu.pipeline_mode<synchronous>, transform_indices = @transform_3, window_bounds = array<i64: 256, 32>}, {pipeline_mode = #tpu.pipeline_mode<synchronous>, transform_indices = @transform_4, window_bounds = array<i64: 2, 1, 32>}, {pipeline_mode = #tpu.pipeline_mode<synchronous>, transform_indices = @transform_5, window_bounds = array<i64: 2, 1, 32>}, {pipeline_mode = #tpu.pipeline_mode<synchronous>, transform_indices = @transform_6, window_bounds = array<i64: 2, 32, 768>}, {pipeline_mode = #tpu.pipeline_mode<synchronous>, transform_indices = @transform_7, window_bounds = array<i64: 2, 256, 32>}, {pipeline_mode = #tpu.pipeline_mode<synchronous>, transform_indices = @transform_8, window_bounds = array<i64: 2, 1, 32>}, {pipeline_mode = #tpu.pipeline_mode<synchronous>, transform_indices = @transform_9, window_bounds = array<i64: 2, 1, 32>}, {pipeline_mode = #tpu.pipeline_mode<synchronous>, transform_indices = @transform_10, window_bounds = array<i64: 2, 1, 32>}, {pipeline_mode = #tpu.pipeline_mode<synchronous>, transform_indices = @transform_11, window_bounds = array<i64: 2, 32, 64>}, {pipeline_mode = #tpu.pipeline_mode<synchronous>, transform_indices = @transform_12, window_bounds = array<i64: 2, 1, 64>}, {pipeline_mode = #tpu.pipeline_mode<synchronous>, transform_indices = @transform_13, window_bounds = array<i64: 2, 64, 32>}, {pipeline_mode = #tpu.pipeline_mode<synchronous>, transform_indices = @transform_14, window_bounds = array<i64: 2, 1, 32>}, {transform_indices = @transform_15, window_bounds = array<i64: 1, 20, 32>}]} {
    %c0 = arith.constant 0 : index
    %c0_0 = arith.constant 0 : index
    %c0_1 = arith.constant 0 : index
    %0 = vector.load %arg1[%c0, %c0_0, %c0_1] : memref<1x20x256xf32, #tpu.memory_space<vmem>>, vector<1x20x256xf32>
    %1 = vector.shape_cast %0 : vector<1x20x256xf32> to vector<20x256xf32>
    %2 = arith.truncf %1 : vector<20x256xf32> to vector<20x256xbf16>
    %c0_2 = arith.constant 0 : index
    %c0_3 = arith.constant 0 : index
    %3 = vector.load %arg4[%c0_2, %c0_3] : memref<256x32xbf16, #tpu.memory_space<vmem>>, vector<256x32xbf16>
    %cst = arith.constant dense<0.000000e+00> : vector<20x32xf32>
    %4 = tpu.matmul %2, %3, %cst {dimension_numbers = #tpu.dot_dimension_numbers<[1], [0], [0], [1], [0, 0, 1, 1], [], []>} : vector<20x256xbf16>, vector<256x32xbf16>, vector<20x32xf32> -> vector<20x32xf32>
    %c0_4 = arith.constant 0 : index
    %c0_5 = arith.constant 0 : index
    %5 = vector.load %arg2[%c0_4, %c0_5] : memref<20x32xf32, #tpu.memory_space<vmem>>, vector<20x32xf32>
    %6 = arith.addf %4, %5 : vector<20x32xf32>
    %c0_6 = arith.constant 0 : index
    %c0_7 = arith.constant 0 : index
    %7 = vector.load %arg3[%c0_6, %c0_7] : memref<20x20xf32, #tpu.memory_space<vmem>>, vector<20x20xf32>
    %c0_8 = arith.constant 0 : index
    %c0_9 = arith.constant 0 : index
    %c0_10 = arith.constant 0 : index
    %8 = vector.load %arg5[%c0_8, %c0_9, %c0_10] : memref<2x1x32xf32, #tpu.memory_space<vmem>>, vector<1x1x32xf32>
    %9 = vector.shape_cast %8 : vector<1x1x32xf32> to vector<1x32xf32>
    %c0_11 = arith.constant 0 : index
    %c0_12 = arith.constant 0 : index
    %c0_13 = arith.constant 0 : index
    %10 = vector.load %arg6[%c0_11, %c0_12, %c0_13] : memref<2x1x32xf32, #tpu.memory_space<vmem>>, vector<1x1x32xf32>
    %11 = vector.shape_cast %10 : vector<1x1x32xf32> to vector<1x32xf32>
    %cst_14 = arith.constant dense<0.000000e+00> : vector<20xf32>
    %12 = vector.multi_reduction <add>, %6, %cst_14 [1] : vector<20x32xf32> to vector<20xf32>
    %13 = vector.shape_cast %12 : vector<20xf32> to vector<20x1xf32>
    %cst_15 = arith.constant 3.200000e+01 : f32
    %14 = vector.broadcast %cst_15 : f32 to vector<20x1xf32>
    %15 = arith.divf %13, %14 : vector<20x1xf32>
    %16 = vector.broadcast %15 : vector<20x1xf32> to vector<20x32xf32>
    %17 = arith.subf %6, %16 : vector<20x32xf32>
    %18 = arith.mulf %17, %17 : vector<20x32xf32>
    %cst_16 = arith.constant dense<0.000000e+00> : vector<20xf32>
    %19 = vector.multi_reduction <add>, %18, %cst_16 [1] : vector<20x32xf32> to vector<20xf32>
    %20 = vector.shape_cast %19 : vector<20xf32> to vector<20x1xf32>
    %cst_17 = arith.constant 3.200000e+01 : f32
    %21 = vector.broadcast %cst_17 : f32 to vector<20x1xf32>
    %22 = arith.divf %20, %21 : vector<20x1xf32>
    %23 = vector.broadcast %15 : vector<20x1xf32> to vector<20x32xf32>
    %24 = arith.subf %6, %23 : vector<20x32xf32>
    %cst_18 = arith.constant 9.99999974E-6 : f32
    %25 = vector.broadcast %cst_18 : f32 to vector<20x1xf32>
    %26 = arith.addf %22, %25 : vector<20x1xf32>
    %27 = math.rsqrt %26 : vector<20x1xf32>
    %28 = vector.broadcast %27 : vector<20x1xf32> to vector<20x32xf32>
    %29 = arith.mulf %24, %28 : vector<20x32xf32>
    %30 = vector.broadcast %9 : vector<1x32xf32> to vector<20x32xf32>
    %31 = arith.mulf %29, %30 : vector<20x32xf32>
    %32 = vector.broadcast %11 : vector<1x32xf32> to vector<20x32xf32>
    %33 = arith.addf %31, %32 : vector<20x32xf32>
    %34 = arith.truncf %33 : vector<20x32xf32> to vector<20x32xbf16>
    %c0_19 = arith.constant 0 : index
    %c0_20 = arith.constant 0 : index
    %c0_21 = arith.constant 0 : index
    %35 = vector.load %arg7[%c0_19, %c0_20, %c0_21] : memref<2x32x768xbf16, #tpu.memory_space<vmem>>, vector<1x32x768xbf16>
    %36 = vector.shape_cast %35 : vector<1x32x768xbf16> to vector<32x768xbf16>
    %cst_22 = arith.constant dense<0.000000e+00> : vector<20x768xf32>
    %37 = tpu.matmul %34, %36, %cst_22 {dimension_numbers = #tpu.dot_dimension_numbers<[1], [0], [0], [1], [0, 0, 1, 1], [], []>} : vector<20x32xbf16>, vector<32x768xbf16>, vector<20x768xf32> -> vector<20x768xf32>
    %38 = vector.extract_strided_slice %37 {offsets = [0, 0], sizes = [20, 256], strides = [1, 1]} : vector<20x768xf32> to vector<20x256xf32>
    %39 = vector.extract_strided_slice %37 {offsets = [0, 256], sizes = [20, 256], strides = [1, 1]} : vector<20x768xf32> to vector<20x256xf32>
    %40 = vector.extract_strided_slice %37 {offsets = [0, 512], sizes = [20, 256], strides = [1, 1]} : vector<20x768xf32> to vector<20x256xf32>
    %41 = vector.extract_strided_slice %38 {offsets = [0, 0], sizes = [20, 64], strides = [1, 1]} : vector<20x256xf32> to vector<20x64xf32>
    %cst_23 = arith.constant 1.250000e-01 : f32
    %42 = vector.broadcast %cst_23 : f32 to vector<20x64xf32>
    %43 = arith.mulf %41, %42 : vector<20x64xf32>
    %44 = vector.extract_strided_slice %39 {offsets = [0, 0], sizes = [20, 64], strides = [1, 1]} : vector<20x256xf32> to vector<20x64xf32>
    %cst_24 = arith.constant dense<0.000000e+00> : vector<20x20xf32>
    %45 = tpu.matmul %43, %44, %cst_24 {dimension_numbers = #tpu.dot_dimension_numbers<[1], [1], [0], [0], [0, 0, 1, 0], [], []>} : vector<20x64xf32>, vector<20x64xf32>, vector<20x20xf32> -> vector<20x20xf32>
    %46 = arith.addf %45, %7 : vector<20x20xf32>
    %cst_25 = arith.constant dense<0xFF800000> : vector<20xf32>
    %47 = vector.multi_reduction <maximumf>, %46, %cst_25 [1] : vector<20x20xf32> to vector<20xf32>
    %48 = vector.shape_cast %47 : vector<20xf32> to vector<20x1xf32>
    %49 = vector.broadcast %48 : vector<20x1xf32> to vector<20x20xf32>
    %50 = arith.subf %46, %49 : vector<20x20xf32>
    %51 = math.exp %50 : vector<20x20xf32>
    %cst_26 = arith.constant dense<0.000000e+00> : vector<20xf32>
    %52 = vector.multi_reduction <add>, %51, %cst_26 [1] : vector<20x20xf32> to vector<20xf32>
    %53 = vector.shape_cast %52 : vector<20xf32> to vector<20x1xf32>
    %54 = tpu.reciprocal %53 {approx = true} : vector<20x1xf32> -> vector<20x1xf32>
    %55 = vector.broadcast %54 : vector<20x1xf32> to vector<20x20xf32>
    %56 = arith.mulf %51, %55 : vector<20x20xf32>
    %57 = vector.extract_strided_slice %40 {offsets = [0, 0], sizes = [20, 64], strides = [1, 1]} : vector<20x256xf32> to vector<20x64xf32>
    %cst_27 = arith.constant dense<0.000000e+00> : vector<20x64xf32>
    %58 = tpu.matmul %56, %57, %cst_27 {dimension_numbers = #tpu.dot_dimension_numbers<[1], [0], [0], [1], [0, 0, 1, 1], [], []>} : vector<20x20xf32>, vector<20x64xf32>, vector<20x64xf32> -> vector<20x64xf32>
    %59 = vector.extract_strided_slice %38 {offsets = [0, 64], sizes = [20, 64], strides = [1, 1]} : vector<20x256xf32> to vector<20x64xf32>
    %cst_28 = arith.constant 1.250000e-01 : f32
    %60 = vector.broadcast %cst_28 : f32 to vector<20x64xf32>
    %61 = arith.mulf %59, %60 : vector<20x64xf32>
    %62 = vector.extract_strided_slice %39 {offsets = [0, 64], sizes = [20, 64], strides = [1, 1]} : vector<20x256xf32> to vector<20x64xf32>
    %cst_29 = arith.constant dense<0.000000e+00> : vector<20x20xf32>
    %63 = tpu.matmul %61, %62, %cst_29 {dimension_numbers = #tpu.dot_dimension_numbers<[1], [1], [0], [0], [0, 0, 1, 0], [], []>} : vector<20x64xf32>, vector<20x64xf32>, vector<20x20xf32> -> vector<20x20xf32>
    %64 = arith.addf %63, %7 : vector<20x20xf32>
    %cst_30 = arith.constant dense<0xFF800000> : vector<20xf32>
    %65 = vector.multi_reduction <maximumf>, %64, %cst_30 [1] : vector<20x20xf32> to vector<20xf32>
    %66 = vector.shape_cast %65 : vector<20xf32> to vector<20x1xf32>
    %67 = vector.broadcast %66 : vector<20x1xf32> to vector<20x20xf32>
    %68 = arith.subf %64, %67 : vector<20x20xf32>
    %69 = math.exp %68 : vector<20x20xf32>
    %cst_31 = arith.constant dense<0.000000e+00> : vector<20xf32>
    %70 = vector.multi_reduction <add>, %69, %cst_31 [1] : vector<20x20xf32> to vector<20xf32>
    %71 = vector.shape_cast %70 : vector<20xf32> to vector<20x1xf32>
    %72 = tpu.reciprocal %71 {approx = true} : vector<20x1xf32> -> vector<20x1xf32>
    %73 = vector.broadcast %72 : vector<20x1xf32> to vector<20x20xf32>
    %74 = arith.mulf %69, %73 : vector<20x20xf32>
    %75 = vector.extract_strided_slice %40 {offsets = [0, 64], sizes = [20, 64], strides = [1, 1]} : vector<20x256xf32> to vector<20x64xf32>
    %cst_32 = arith.constant dense<0.000000e+00> : vector<20x64xf32>
    %76 = tpu.matmul %74, %75, %cst_32 {dimension_numbers = #tpu.dot_dimension_numbers<[1], [0], [0], [1], [0, 0, 1, 1], [], []>} : vector<20x20xf32>, vector<20x64xf32>, vector<20x64xf32> -> vector<20x64xf32>
    %77 = vector.extract_strided_slice %38 {offsets = [0, 128], sizes = [20, 64], strides = [1, 1]} : vector<20x256xf32> to vector<20x64xf32>
    %cst_33 = arith.constant 1.250000e-01 : f32
    %78 = vector.broadcast %cst_33 : f32 to vector<20x64xf32>
    %79 = arith.mulf %77, %78 : vector<20x64xf32>
    %80 = vector.extract_strided_slice %39 {offsets = [0, 128], sizes = [20, 64], strides = [1, 1]} : vector<20x256xf32> to vector<20x64xf32>
    %cst_34 = arith.constant dense<0.000000e+00> : vector<20x20xf32>
    %81 = tpu.matmul %79, %80, %cst_34 {dimension_numbers = #tpu.dot_dimension_numbers<[1], [1], [0], [0], [0, 0, 1, 0], [], []>} : vector<20x64xf32>, vector<20x64xf32>, vector<20x20xf32> -> vector<20x20xf32>
    %82 = arith.addf %81, %7 : vector<20x20xf32>
    %cst_35 = arith.constant dense<0xFF800000> : vector<20xf32>
    %83 = vector.multi_reduction <maximumf>, %82, %cst_35 [1] : vector<20x20xf32> to vector<20xf32>
    %84 = vector.shape_cast %83 : vector<20xf32> to vector<20x1xf32>
    %85 = vector.broadcast %84 : vector<20x1xf32> to vector<20x20xf32>
    %86 = arith.subf %82, %85 : vector<20x20xf32>
    %87 = math.exp %86 : vector<20x20xf32>
    %cst_36 = arith.constant dense<0.000000e+00> : vector<20xf32>
    %88 = vector.multi_reduction <add>, %87, %cst_36 [1] : vector<20x20xf32> to vector<20xf32>
    %89 = vector.shape_cast %88 : vector<20xf32> to vector<20x1xf32>
    %90 = tpu.reciprocal %89 {approx = true} : vector<20x1xf32> -> vector<20x1xf32>
    %91 = vector.broadcast %90 : vector<20x1xf32> to vector<20x20xf32>
    %92 = arith.mulf %87, %91 : vector<20x20xf32>
    %93 = vector.extract_strided_slice %40 {offsets = [0, 128], sizes = [20, 64], strides = [1, 1]} : vector<20x256xf32> to vector<20x64xf32>
    %cst_37 = arith.constant dense<0.000000e+00> : vector<20x64xf32>
    %94 = tpu.matmul %92, %93, %cst_37 {dimension_numbers = #tpu.dot_dimension_numbers<[1], [0], [0], [1], [0, 0, 1, 1], [], []>} : vector<20x20xf32>, vector<20x64xf32>, vector<20x64xf32> -> vector<20x64xf32>
    %95 = vector.extract_strided_slice %38 {offsets = [0, 192], sizes = [20, 64], strides = [1, 1]} : vector<20x256xf32> to vector<20x64xf32>
    %cst_38 = arith.constant 1.250000e-01 : f32
    %96 = vector.broadcast %cst_38 : f32 to vector<20x64xf32>
    %97 = arith.mulf %95, %96 : vector<20x64xf32>
    %98 = vector.extract_strided_slice %39 {offsets = [0, 192], sizes = [20, 64], strides = [1, 1]} : vector<20x256xf32> to vector<20x64xf32>
    %cst_39 = arith.constant dense<0.000000e+00> : vector<20x20xf32>
    %99 = tpu.matmul %97, %98, %cst_39 {dimension_numbers = #tpu.dot_dimension_numbers<[1], [1], [0], [0], [0, 0, 1, 0], [], []>} : vector<20x64xf32>, vector<20x64xf32>, vector<20x20xf32> -> vector<20x20xf32>
    %100 = arith.addf %99, %7 : vector<20x20xf32>
    %cst_40 = arith.constant dense<0xFF800000> : vector<20xf32>
    %101 = vector.multi_reduction <maximumf>, %100, %cst_40 [1] : vector<20x20xf32> to vector<20xf32>
    %102 = vector.shape_cast %101 : vector<20xf32> to vector<20x1xf32>
    %103 = vector.broadcast %102 : vector<20x1xf32> to vector<20x20xf32>
    %104 = arith.subf %100, %103 : vector<20x20xf32>
    %105 = math.exp %104 : vector<20x20xf32>
    %cst_41 = arith.constant dense<0.000000e+00> : vector<20xf32>
    %106 = vector.multi_reduction <add>, %105, %cst_41 [1] : vector<20x20xf32> to vector<20xf32>
    %107 = vector.shape_cast %106 : vector<20xf32> to vector<20x1xf32>
    %108 = tpu.reciprocal %107 {approx = true} : vector<20x1xf32> -> vector<20x1xf32>
    %109 = vector.broadcast %108 : vector<20x1xf32> to vector<20x20xf32>
    %110 = arith.mulf %105, %109 : vector<20x20xf32>
    %111 = vector.extract_strided_slice %40 {offsets = [0, 192], sizes = [20, 64], strides = [1, 1]} : vector<20x256xf32> to vector<20x64xf32>
    %cst_42 = arith.constant dense<0.000000e+00> : vector<20x64xf32>
    %112 = tpu.matmul %110, %111, %cst_42 {dimension_numbers = #tpu.dot_dimension_numbers<[1], [0], [0], [1], [0, 0, 1, 1], [], []>} : vector<20x20xf32>, vector<20x64xf32>, vector<20x64xf32> -> vector<20x64xf32>
    %113 = tpu.concatenate %58, %76, %94, %112 in 1 : vector<20x64xf32>, vector<20x64xf32>, vector<20x64xf32>, vector<20x64xf32> -> vector<20x256xf32>
    %114 = arith.truncf %113 : vector<20x256xf32> to vector<20x256xbf16>
    %c0_43 = arith.constant 0 : index
    %c0_44 = arith.constant 0 : index
    %c0_45 = arith.constant 0 : index
    %115 = vector.load %arg8[%c0_43, %c0_44, %c0_45] : memref<2x256x32xbf16, #tpu.memory_space<vmem>>, vector<1x256x32xbf16>
    %116 = vector.shape_cast %115 : vector<1x256x32xbf16> to vector<256x32xbf16>
    %cst_46 = arith.constant dense<0.000000e+00> : vector<20x32xf32>
    %117 = tpu.matmul %114, %116, %cst_46 {dimension_numbers = #tpu.dot_dimension_numbers<[1], [0], [0], [1], [0, 0, 1, 1], [], []>} : vector<20x256xbf16>, vector<256x32xbf16>, vector<20x32xf32> -> vector<20x32xf32>
    %c0_47 = arith.constant 0 : index
    %c0_48 = arith.constant 0 : index
    %c0_49 = arith.constant 0 : index
    %118 = vector.load %arg9[%c0_47, %c0_48, %c0_49] : memref<2x1x32xf32, #tpu.memory_space<vmem>>, vector<1x1x32xf32>
    %119 = vector.shape_cast %118 : vector<1x1x32xf32> to vector<1x32xf32>
    %120 = vector.broadcast %119 : vector<1x32xf32> to vector<20x32xf32>
    %121 = arith.addf %117, %120 : vector<20x32xf32>
    %122 = arith.addf %6, %121 : vector<20x32xf32>
    %c0_50 = arith.constant 0 : index
    %c0_51 = arith.constant 0 : index
    %c0_52 = arith.constant 0 : index
    %123 = vector.load %arg10[%c0_50, %c0_51, %c0_52] : memref<2x1x32xf32, #tpu.memory_space<vmem>>, vector<1x1x32xf32>
    %124 = vector.shape_cast %123 : vector<1x1x32xf32> to vector<1x32xf32>
    %c0_53 = arith.constant 0 : index
    %c0_54 = arith.constant 0 : index
    %c0_55 = arith.constant 0 : index
    %125 = vector.load %arg11[%c0_53, %c0_54, %c0_55] : memref<2x1x32xf32, #tpu.memory_space<vmem>>, vector<1x1x32xf32>
    %126 = vector.shape_cast %125 : vector<1x1x32xf32> to vector<1x32xf32>
    %cst_56 = arith.constant dense<0.000000e+00> : vector<20xf32>
    %127 = vector.multi_reduction <add>, %122, %cst_56 [1] : vector<20x32xf32> to vector<20xf32>
    %128 = vector.shape_cast %127 : vector<20xf32> to vector<20x1xf32>
    %cst_57 = arith.constant 3.200000e+01 : f32
    %129 = vector.broadcast %cst_57 : f32 to vector<20x1xf32>
    %130 = arith.divf %128, %129 : vector<20x1xf32>
    %131 = vector.broadcast %130 : vector<20x1xf32> to vector<20x32xf32>
    %132 = arith.subf %122, %131 : vector<20x32xf32>
    %133 = arith.mulf %132, %132 : vector<20x32xf32>
    %cst_58 = arith.constant dense<0.000000e+00> : vector<20xf32>
    %134 = vector.multi_reduction <add>, %133, %cst_58 [1] : vector<20x32xf32> to vector<20xf32>
    %135 = vector.shape_cast %134 : vector<20xf32> to vector<20x1xf32>
    %cst_59 = arith.constant 3.200000e+01 : f32
    %136 = vector.broadcast %cst_59 : f32 to vector<20x1xf32>
    %137 = arith.divf %135, %136 : vector<20x1xf32>
    %138 = vector.broadcast %130 : vector<20x1xf32> to vector<20x32xf32>
    %139 = arith.subf %122, %138 : vector<20x32xf32>
    %cst_60 = arith.constant 9.99999974E-6 : f32
    %140 = vector.broadcast %cst_60 : f32 to vector<20x1xf32>
    %141 = arith.addf %137, %140 : vector<20x1xf32>
    %142 = math.rsqrt %141 : vector<20x1xf32>
    %143 = vector.broadcast %142 : vector<20x1xf32> to vector<20x32xf32>
    %144 = arith.mulf %139, %143 : vector<20x32xf32>
    %145 = vector.broadcast %124 : vector<1x32xf32> to vector<20x32xf32>
    %146 = arith.mulf %144, %145 : vector<20x32xf32>
    %147 = vector.broadcast %126 : vector<1x32xf32> to vector<20x32xf32>
    %148 = arith.addf %146, %147 : vector<20x32xf32>
    %149 = arith.truncf %148 : vector<20x32xf32> to vector<20x32xbf16>
    %c0_61 = arith.constant 0 : index
    %c0_62 = arith.constant 0 : index
    %c0_63 = arith.constant 0 : index
    %150 = vector.load %arg12[%c0_61, %c0_62, %c0_63] : memref<2x32x64xbf16, #tpu.memory_space<vmem>>, vector<1x32x64xbf16>
    %151 = vector.shape_cast %150 : vector<1x32x64xbf16> to vector<32x64xbf16>
    %cst_64 = arith.constant dense<0.000000e+00> : vector<20x64xf32>
    %152 = tpu.matmul %149, %151, %cst_64 {dimension_numbers = #tpu.dot_dimension_numbers<[1], [0], [0], [1], [0, 0, 1, 1], [], []>} : vector<20x32xbf16>, vector<32x64xbf16>, vector<20x64xf32> -> vector<20x64xf32>
    %c0_65 = arith.constant 0 : index
    %c0_66 = arith.constant 0 : index
    %c0_67 = arith.constant 0 : index
    %153 = vector.load %arg13[%c0_65, %c0_66, %c0_67] : memref<2x1x64xf32, #tpu.memory_space<vmem>>, vector<1x1x64xf32>
    %154 = vector.shape_cast %153 : vector<1x1x64xf32> to vector<1x64xf32>
    %155 = vector.broadcast %154 : vector<1x64xf32> to vector<20x64xf32>
    %156 = arith.addf %152, %155 : vector<20x64xf32>
    %157 = arith.mulf %156, %156 : vector<20x64xf32>
    %158 = arith.mulf %156, %157 : vector<20x64xf32>
    %cst_68 = arith.constant 4.471500e-02 : f32
    %159 = vector.broadcast %cst_68 : f32 to vector<20x64xf32>
    %160 = arith.mulf %159, %158 : vector<20x64xf32>
    %161 = arith.addf %156, %160 : vector<20x64xf32>
    %cst_69 = arith.constant 0.797884583 : f32
    %162 = vector.broadcast %cst_69 : f32 to vector<20x64xf32>
    %163 = arith.mulf %162, %161 : vector<20x64xf32>
    %164 = math.tanh %163 : vector<20x64xf32>
    %cst_70 = arith.constant 1.000000e+00 : f32
    %165 = vector.broadcast %cst_70 : f32 to vector<20x64xf32>
    %166 = arith.addf %165, %164 : vector<20x64xf32>
    %cst_71 = arith.constant 5.000000e-01 : f32
    %167 = vector.broadcast %cst_71 : f32 to vector<20x64xf32>
    %168 = arith.mulf %167, %166 : vector<20x64xf32>
    %169 = arith.mulf %156, %168 : vector<20x64xf32>
    %170 = arith.truncf %169 : vector<20x64xf32> to vector<20x64xbf16>
    %c0_72 = arith.constant 0 : index
    %c0_73 = arith.constant 0 : index
    %c0_74 = arith.constant 0 : index
    %171 = vector.load %arg14[%c0_72, %c0_73, %c0_74] : memref<2x64x32xbf16, #tpu.memory_space<vmem>>, vector<1x64x32xbf16>
    %172 = vector.shape_cast %171 : vector<1x64x32xbf16> to vector<64x32xbf16>
    %cst_75 = arith.constant dense<0.000000e+00> : vector<20x32xf32>
    %173 = tpu.matmul %170, %172, %cst_75 {dimension_numbers = #tpu.dot_dimension_numbers<[1], [0], [0], [1], [0, 0, 1, 1], [], []>} : vector<20x64xbf16>, vector<64x32xbf16>, vector<20x32xf32> -> vector<20x32xf32>
    %c0_76 = arith.constant 0 : index
    %c0_77 = arith.constant 0 : index
    %c0_78 = arith.constant 0 : index
    %174 = vector.load %arg15[%c0_76, %c0_77, %c0_78] : memref<2x1x32xf32, #tpu.memory_space<vmem>>, vector<1x1x32xf32>
    %175 = vector.shape_cast %174 : vector<1x1x32xf32> to vector<1x32xf32>
    %176 = vector.broadcast %175 : vector<1x32xf32> to vector<20x32xf32>
    %177 = arith.addf %173, %176 : vector<20x32xf32>
    %178 = arith.addf %122, %177 : vector<20x32xf32>
    %c1 = arith.constant 1 : index
    %c0_79 = arith.constant 0 : index
    %c0_80 = arith.constant 0 : index
    %179 = vector.load %arg5[%c1, %c0_79, %c0_80] : memref<2x1x32xf32, #tpu.memory_space<vmem>>, vector<1x1x32xf32>
    %180 = vector.shape_cast %179 : vector<1x1x32xf32> to vector<1x32xf32>
    %c1_81 = arith.constant 1 : index
    %c0_82 = arith.constant 0 : index
    %c0_83 = arith.constant 0 : index
    %181 = vector.load %arg6[%c1_81, %c0_82, %c0_83] : memref<2x1x32xf32, #tpu.memory_space<vmem>>, vector<1x1x32xf32>
    %182 = vector.shape_cast %181 : vector<1x1x32xf32> to vector<1x32xf32>
    %cst_84 = arith.constant dense<0.000000e+00> : vector<20xf32>
    %183 = vector.multi_reduction <add>, %178, %cst_84 [1] : vector<20x32xf32> to vector<20xf32>
    %184 = vector.shape_cast %183 : vector<20xf32> to vector<20x1xf32>
    %cst_85 = arith.constant 3.200000e+01 : f32
    %185 = vector.broadcast %cst_85 : f32 to vector<20x1xf32>
    %186 = arith.divf %184, %185 : vector<20x1xf32>
    %187 = vector.broadcast %186 : vector<20x1xf32> to vector<20x32xf32>
    %188 = arith.subf %178, %187 : vector<20x32xf32>
    %189 = arith.mulf %188, %188 : vector<20x32xf32>
    %cst_86 = arith.constant dense<0.000000e+00> : vector<20xf32>
    %190 = vector.multi_reduction <add>, %189, %cst_86 [1] : vector<20x32xf32> to vector<20xf32>
    %191 = vector.shape_cast %190 : vector<20xf32> to vector<20x1xf32>
    %cst_87 = arith.constant 3.200000e+01 : f32
    %192 = vector.broadcast %cst_87 : f32 to vector<20x1xf32>
    %193 = arith.divf %191, %192 : vector<20x1xf32>
    %194 = vector.broadcast %186 : vector<20x1xf32> to vector<20x32xf32>
    %195 = arith.subf %178, %194 : vector<20x32xf32>
    %cst_88 = arith.constant 9.99999974E-6 : f32
    %196 = vector.broadcast %cst_88 : f32 to vector<20x1xf32>
    %197 = arith.addf %193, %196 : vector<20x1xf32>
    %198 = math.rsqrt %197 : vector<20x1xf32>
    %199 = vector.broadcast %198 : vector<20x1xf32> to vector<20x32xf32>
    %200 = arith.mulf %195, %199 : vector<20x32xf32>
    %201 = vector.broadcast %180 : vector<1x32xf32> to vector<20x32xf32>
    %202 = arith.mulf %200, %201 : vector<20x32xf32>
    %203 = vector.broadcast %182 : vector<1x32xf32> to vector<20x32xf32>
    %204 = arith.addf %202, %203 : vector<20x32xf32>
    %205 = arith.truncf %204 : vector<20x32xf32> to vector<20x32xbf16>
    %c1_89 = arith.constant 1 : index
    %c0_90 = arith.constant 0 : index
    %c0_91 = arith.constant 0 : index
    %206 = vector.load %arg7[%c1_89, %c0_90, %c0_91] : memref<2x32x768xbf16, #tpu.memory_space<vmem>>, vector<1x32x768xbf16>
    %207 = vector.shape_cast %206 : vector<1x32x768xbf16> to vector<32x768xbf16>
    %cst_92 = arith.constant dense<0.000000e+00> : vector<20x768xf32>
    %208 = tpu.matmul %205, %207, %cst_92 {dimension_numbers = #tpu.dot_dimension_numbers<[1], [0], [0], [1], [0, 0, 1, 1], [], []>} : vector<20x32xbf16>, vector<32x768xbf16>, vector<20x768xf32> -> vector<20x768xf32>
    %209 = vector.extract_strided_slice %208 {offsets = [0, 0], sizes = [20, 256], strides = [1, 1]} : vector<20x768xf32> to vector<20x256xf32>
    %210 = vector.extract_strided_slice %208 {offsets = [0, 256], sizes = [20, 256], strides = [1, 1]} : vector<20x768xf32> to vector<20x256xf32>
    %211 = vector.extract_strided_slice %208 {offsets = [0, 512], sizes = [20, 256], strides = [1, 1]} : vector<20x768xf32> to vector<20x256xf32>
    %212 = vector.extract_strided_slice %209 {offsets = [0, 0], sizes = [20, 64], strides = [1, 1]} : vector<20x256xf32> to vector<20x64xf32>
    %cst_93 = arith.constant 1.250000e-01 : f32
    %213 = vector.broadcast %cst_93 : f32 to vector<20x64xf32>
    %214 = arith.mulf %212, %213 : vector<20x64xf32>
    %215 = vector.extract_strided_slice %210 {offsets = [0, 0], sizes = [20, 64], strides = [1, 1]} : vector<20x256xf32> to vector<20x64xf32>
    %cst_94 = arith.constant dense<0.000000e+00> : vector<20x20xf32>
    %216 = tpu.matmul %214, %215, %cst_94 {dimension_numbers = #tpu.dot_dimension_numbers<[1], [1], [0], [0], [0, 0, 1, 0], [], []>} : vector<20x64xf32>, vector<20x64xf32>, vector<20x20xf32> -> vector<20x20xf32>
    %217 = arith.addf %216, %7 : vector<20x20xf32>
    %cst_95 = arith.constant dense<0xFF800000> : vector<20xf32>
    %218 = vector.multi_reduction <maximumf>, %217, %cst_95 [1] : vector<20x20xf32> to vector<20xf32>
    %219 = vector.shape_cast %218 : vector<20xf32> to vector<20x1xf32>
    %220 = vector.broadcast %219 : vector<20x1xf32> to vector<20x20xf32>
    %221 = arith.subf %217, %220 : vector<20x20xf32>
    %222 = math.exp %221 : vector<20x20xf32>
    %cst_96 = arith.constant dense<0.000000e+00> : vector<20xf32>
    %223 = vector.multi_reduction <add>, %222, %cst_96 [1] : vector<20x20xf32> to vector<20xf32>
    %224 = vector.shape_cast %223 : vector<20xf32> to vector<20x1xf32>
    %225 = tpu.reciprocal %224 {approx = true} : vector<20x1xf32> -> vector<20x1xf32>
    %226 = vector.broadcast %225 : vector<20x1xf32> to vector<20x20xf32>
    %227 = arith.mulf %222, %226 : vector<20x20xf32>
    %228 = vector.extract_strided_slice %211 {offsets = [0, 0], sizes = [20, 64], strides = [1, 1]} : vector<20x256xf32> to vector<20x64xf32>
    %cst_97 = arith.constant dense<0.000000e+00> : vector<20x64xf32>
    %229 = tpu.matmul %227, %228, %cst_97 {dimension_numbers = #tpu.dot_dimension_numbers<[1], [0], [0], [1], [0, 0, 1, 1], [], []>} : vector<20x20xf32>, vector<20x64xf32>, vector<20x64xf32> -> vector<20x64xf32>
    %230 = vector.extract_strided_slice %209 {offsets = [0, 64], sizes = [20, 64], strides = [1, 1]} : vector<20x256xf32> to vector<20x64xf32>
    %cst_98 = arith.constant 1.250000e-01 : f32
    %231 = vector.broadcast %cst_98 : f32 to vector<20x64xf32>
    %232 = arith.mulf %230, %231 : vector<20x64xf32>
    %233 = vector.extract_strided_slice %210 {offsets = [0, 64], sizes = [20, 64], strides = [1, 1]} : vector<20x256xf32> to vector<20x64xf32>
    %cst_99 = arith.constant dense<0.000000e+00> : vector<20x20xf32>
    %234 = tpu.matmul %232, %233, %cst_99 {dimension_numbers = #tpu.dot_dimension_numbers<[1], [1], [0], [0], [0, 0, 1, 0], [], []>} : vector<20x64xf32>, vector<20x64xf32>, vector<20x20xf32> -> vector<20x20xf32>
    %235 = arith.addf %234, %7 : vector<20x20xf32>
    %cst_100 = arith.constant dense<0xFF800000> : vector<20xf32>
    %236 = vector.multi_reduction <maximumf>, %235, %cst_100 [1] : vector<20x20xf32> to vector<20xf32>
    %237 = vector.shape_cast %236 : vector<20xf32> to vector<20x1xf32>
    %238 = vector.broadcast %237 : vector<20x1xf32> to vector<20x20xf32>
    %239 = arith.subf %235, %238 : vector<20x20xf32>
    %240 = math.exp %239 : vector<20x20xf32>
    %cst_101 = arith.constant dense<0.000000e+00> : vector<20xf32>
    %241 = vector.multi_reduction <add>, %240, %cst_101 [1] : vector<20x20xf32> to vector<20xf32>
    %242 = vector.shape_cast %241 : vector<20xf32> to vector<20x1xf32>
    %243 = tpu.reciprocal %242 {approx = true} : vector<20x1xf32> -> vector<20x1xf32>
    %244 = vector.broadcast %243 : vector<20x1xf32> to vector<20x20xf32>
    %245 = arith.mulf %240, %244 : vector<20x20xf32>
    %246 = vector.extract_strided_slice %211 {offsets = [0, 64], sizes = [20, 64], strides = [1, 1]} : vector<20x256xf32> to vector<20x64xf32>
    %cst_102 = arith.constant dense<0.000000e+00> : vector<20x64xf32>
    %247 = tpu.matmul %245, %246, %cst_102 {dimension_numbers = #tpu.dot_dimension_numbers<[1], [0], [0], [1], [0, 0, 1, 1], [], []>} : vector<20x20xf32>, vector<20x64xf32>, vector<20x64xf32> -> vector<20x64xf32>
    %248 = vector.extract_strided_slice %209 {offsets = [0, 128], sizes = [20, 64], strides = [1, 1]} : vector<20x256xf32> to vector<20x64xf32>
    %cst_103 = arith.constant 1.250000e-01 : f32
    %249 = vector.broadcast %cst_103 : f32 to vector<20x64xf32>
    %250 = arith.mulf %248, %249 : vector<20x64xf32>
    %251 = vector.extract_strided_slice %210 {offsets = [0, 128], sizes = [20, 64], strides = [1, 1]} : vector<20x256xf32> to vector<20x64xf32>
    %cst_104 = arith.constant dense<0.000000e+00> : vector<20x20xf32>
    %252 = tpu.matmul %250, %251, %cst_104 {dimension_numbers = #tpu.dot_dimension_numbers<[1], [1], [0], [0], [0, 0, 1, 0], [], []>} : vector<20x64xf32>, vector<20x64xf32>, vector<20x20xf32> -> vector<20x20xf32>
    %253 = arith.addf %252, %7 : vector<20x20xf32>
    %cst_105 = arith.constant dense<0xFF800000> : vector<20xf32>
    %254 = vector.multi_reduction <maximumf>, %253, %cst_105 [1] : vector<20x20xf32> to vector<20xf32>
    %255 = vector.shape_cast %254 : vector<20xf32> to vector<20x1xf32>
    %256 = vector.broadcast %255 : vector<20x1xf32> to vector<20x20xf32>
    %257 = arith.subf %253, %256 : vector<20x20xf32>
    %258 = math.exp %257 : vector<20x20xf32>
    %cst_106 = arith.constant dense<0.000000e+00> : vector<20xf32>
    %259 = vector.multi_reduction <add>, %258, %cst_106 [1] : vector<20x20xf32> to vector<20xf32>
    %260 = vector.shape_cast %259 : vector<20xf32> to vector<20x1xf32>
    %261 = tpu.reciprocal %260 {approx = true} : vector<20x1xf32> -> vector<20x1xf32>
    %262 = vector.broadcast %261 : vector<20x1xf32> to vector<20x20xf32>
    %263 = arith.mulf %258, %262 : vector<20x20xf32>
    %264 = vector.extract_strided_slice %211 {offsets = [0, 128], sizes = [20, 64], strides = [1, 1]} : vector<20x256xf32> to vector<20x64xf32>
    %cst_107 = arith.constant dense<0.000000e+00> : vector<20x64xf32>
    %265 = tpu.matmul %263, %264, %cst_107 {dimension_numbers = #tpu.dot_dimension_numbers<[1], [0], [0], [1], [0, 0, 1, 1], [], []>} : vector<20x20xf32>, vector<20x64xf32>, vector<20x64xf32> -> vector<20x64xf32>
    %266 = vector.extract_strided_slice %209 {offsets = [0, 192], sizes = [20, 64], strides = [1, 1]} : vector<20x256xf32> to vector<20x64xf32>
    %cst_108 = arith.constant 1.250000e-01 : f32
    %267 = vector.broadcast %cst_108 : f32 to vector<20x64xf32>
    %268 = arith.mulf %266, %267 : vector<20x64xf32>
    %269 = vector.extract_strided_slice %210 {offsets = [0, 192], sizes = [20, 64], strides = [1, 1]} : vector<20x256xf32> to vector<20x64xf32>
    %cst_109 = arith.constant dense<0.000000e+00> : vector<20x20xf32>
    %270 = tpu.matmul %268, %269, %cst_109 {dimension_numbers = #tpu.dot_dimension_numbers<[1], [1], [0], [0], [0, 0, 1, 0], [], []>} : vector<20x64xf32>, vector<20x64xf32>, vector<20x20xf32> -> vector<20x20xf32>
    %271 = arith.addf %270, %7 : vector<20x20xf32>
    %cst_110 = arith.constant dense<0xFF800000> : vector<20xf32>
    %272 = vector.multi_reduction <maximumf>, %271, %cst_110 [1] : vector<20x20xf32> to vector<20xf32>
    %273 = vector.shape_cast %272 : vector<20xf32> to vector<20x1xf32>
    %274 = vector.broadcast %273 : vector<20x1xf32> to vector<20x20xf32>
    %275 = arith.subf %271, %274 : vector<20x20xf32>
    %276 = math.exp %275 : vector<20x20xf32>
    %cst_111 = arith.constant dense<0.000000e+00> : vector<20xf32>
    %277 = vector.multi_reduction <add>, %276, %cst_111 [1] : vector<20x20xf32> to vector<20xf32>
    %278 = vector.shape_cast %277 : vector<20xf32> to vector<20x1xf32>
    %279 = tpu.reciprocal %278 {approx = true} : vector<20x1xf32> -> vector<20x1xf32>
    %280 = vector.broadcast %279 : vector<20x1xf32> to vector<20x20xf32>
    %281 = arith.mulf %276, %280 : vector<20x20xf32>
    %282 = vector.extract_strided_slice %211 {offsets = [0, 192], sizes = [20, 64], strides = [1, 1]} : vector<20x256xf32> to vector<20x64xf32>
    %cst_112 = arith.constant dense<0.000000e+00> : vector<20x64xf32>
    %283 = tpu.matmul %281, %282, %cst_112 {dimension_numbers = #tpu.dot_dimension_numbers<[1], [0], [0], [1], [0, 0, 1, 1], [], []>} : vector<20x20xf32>, vector<20x64xf32>, vector<20x64xf32> -> vector<20x64xf32>
    %284 = tpu.concatenate %229, %247, %265, %283 in 1 : vector<20x64xf32>, vector<20x64xf32>, vector<20x64xf32>, vector<20x64xf32> -> vector<20x256xf32>
    %285 = arith.truncf %284 : vector<20x256xf32> to vector<20x256xbf16>
    %c1_113 = arith.constant 1 : index
    %c0_114 = arith.constant 0 : index
    %c0_115 = arith.constant 0 : index
    %286 = vector.load %arg8[%c1_113, %c0_114, %c0_115] : memref<2x256x32xbf16, #tpu.memory_space<vmem>>, vector<1x256x32xbf16>
    %287 = vector.shape_cast %286 : vector<1x256x32xbf16> to vector<256x32xbf16>
    %cst_116 = arith.constant dense<0.000000e+00> : vector<20x32xf32>
    %288 = tpu.matmul %285, %287, %cst_116 {dimension_numbers = #tpu.dot_dimension_numbers<[1], [0], [0], [1], [0, 0, 1, 1], [], []>} : vector<20x256xbf16>, vector<256x32xbf16>, vector<20x32xf32> -> vector<20x32xf32>
    %c1_117 = arith.constant 1 : index
    %c0_118 = arith.constant 0 : index
    %c0_119 = arith.constant 0 : index
    %289 = vector.load %arg9[%c1_117, %c0_118, %c0_119] : memref<2x1x32xf32, #tpu.memory_space<vmem>>, vector<1x1x32xf32>
    %290 = vector.shape_cast %289 : vector<1x1x32xf32> to vector<1x32xf32>
    %291 = vector.broadcast %290 : vector<1x32xf32> to vector<20x32xf32>
    %292 = arith.addf %288, %291 : vector<20x32xf32>
    %293 = arith.addf %178, %292 : vector<20x32xf32>
    %c1_120 = arith.constant 1 : index
    %c0_121 = arith.constant 0 : index
    %c0_122 = arith.constant 0 : index
    %294 = vector.load %arg10[%c1_120, %c0_121, %c0_122] : memref<2x1x32xf32, #tpu.memory_space<vmem>>, vector<1x1x32xf32>
    %295 = vector.shape_cast %294 : vector<1x1x32xf32> to vector<1x32xf32>
    %c1_123 = arith.constant 1 : index
    %c0_124 = arith.constant 0 : index
    %c0_125 = arith.constant 0 : index
    %296 = vector.load %arg11[%c1_123, %c0_124, %c0_125] : memref<2x1x32xf32, #tpu.memory_space<vmem>>, vector<1x1x32xf32>
    %297 = vector.shape_cast %296 : vector<1x1x32xf32> to vector<1x32xf32>
    %cst_126 = arith.constant dense<0.000000e+00> : vector<20xf32>
    %298 = vector.multi_reduction <add>, %293, %cst_126 [1] : vector<20x32xf32> to vector<20xf32>
    %299 = vector.shape_cast %298 : vector<20xf32> to vector<20x1xf32>
    %cst_127 = arith.constant 3.200000e+01 : f32
    %300 = vector.broadcast %cst_127 : f32 to vector<20x1xf32>
    %301 = arith.divf %299, %300 : vector<20x1xf32>
    %302 = vector.broadcast %301 : vector<20x1xf32> to vector<20x32xf32>
    %303 = arith.subf %293, %302 : vector<20x32xf32>
    %304 = arith.mulf %303, %303 : vector<20x32xf32>
    %cst_128 = arith.constant dense<0.000000e+00> : vector<20xf32>
    %305 = vector.multi_reduction <add>, %304, %cst_128 [1] : vector<20x32xf32> to vector<20xf32>
    %306 = vector.shape_cast %305 : vector<20xf32> to vector<20x1xf32>
    %cst_129 = arith.constant 3.200000e+01 : f32
    %307 = vector.broadcast %cst_129 : f32 to vector<20x1xf32>
    %308 = arith.divf %306, %307 : vector<20x1xf32>
    %309 = vector.broadcast %301 : vector<20x1xf32> to vector<20x32xf32>
    %310 = arith.subf %293, %309 : vector<20x32xf32>
    %cst_130 = arith.constant 9.99999974E-6 : f32
    %311 = vector.broadcast %cst_130 : f32 to vector<20x1xf32>
    %312 = arith.addf %308, %311 : vector<20x1xf32>
    %313 = math.rsqrt %312 : vector<20x1xf32>
    %314 = vector.broadcast %313 : vector<20x1xf32> to vector<20x32xf32>
    %315 = arith.mulf %310, %314 : vector<20x32xf32>
    %316 = vector.broadcast %295 : vector<1x32xf32> to vector<20x32xf32>
    %317 = arith.mulf %315, %316 : vector<20x32xf32>
    %318 = vector.broadcast %297 : vector<1x32xf32> to vector<20x32xf32>
    %319 = arith.addf %317, %318 : vector<20x32xf32>
    %320 = arith.truncf %319 : vector<20x32xf32> to vector<20x32xbf16>
    %c1_131 = arith.constant 1 : index
    %c0_132 = arith.constant 0 : index
    %c0_133 = arith.constant 0 : index
    %321 = vector.load %arg12[%c1_131, %c0_132, %c0_133] : memref<2x32x64xbf16, #tpu.memory_space<vmem>>, vector<1x32x64xbf16>
    %322 = vector.shape_cast %321 : vector<1x32x64xbf16> to vector<32x64xbf16>
    %cst_134 = arith.constant dense<0.000000e+00> : vector<20x64xf32>
    %323 = tpu.matmul %320, %322, %cst_134 {dimension_numbers = #tpu.dot_dimension_numbers<[1], [0], [0], [1], [0, 0, 1, 1], [], []>} : vector<20x32xbf16>, vector<32x64xbf16>, vector<20x64xf32> -> vector<20x64xf32>
    %c1_135 = arith.constant 1 : index
    %c0_136 = arith.constant 0 : index
    %c0_137 = arith.constant 0 : index
    %324 = vector.load %arg13[%c1_135, %c0_136, %c0_137] : memref<2x1x64xf32, #tpu.memory_space<vmem>>, vector<1x1x64xf32>
    %325 = vector.shape_cast %324 : vector<1x1x64xf32> to vector<1x64xf32>
    %326 = vector.broadcast %325 : vector<1x64xf32> to vector<20x64xf32>
    %327 = arith.addf %323, %326 : vector<20x64xf32>
    %328 = arith.mulf %327, %327 : vector<20x64xf32>
    %329 = arith.mulf %327, %328 : vector<20x64xf32>
    %cst_138 = arith.constant 4.471500e-02 : f32
    %330 = vector.broadcast %cst_138 : f32 to vector<20x64xf32>
    %331 = arith.mulf %330, %329 : vector<20x64xf32>
    %332 = arith.addf %327, %331 : vector<20x64xf32>
    %cst_139 = arith.constant 0.797884583 : f32
    %333 = vector.broadcast %cst_139 : f32 to vector<20x64xf32>
    %334 = arith.mulf %333, %332 : vector<20x64xf32>
    %335 = math.tanh %334 : vector<20x64xf32>
    %cst_140 = arith.constant 1.000000e+00 : f32
    %336 = vector.broadcast %cst_140 : f32 to vector<20x64xf32>
    %337 = arith.addf %336, %335 : vector<20x64xf32>
    %cst_141 = arith.constant 5.000000e-01 : f32
    %338 = vector.broadcast %cst_141 : f32 to vector<20x64xf32>
    %339 = arith.mulf %338, %337 : vector<20x64xf32>
    %340 = arith.mulf %327, %339 : vector<20x64xf32>
    %341 = arith.truncf %340 : vector<20x64xf32> to vector<20x64xbf16>
    %c1_142 = arith.constant 1 : index
    %c0_143 = arith.constant 0 : index
    %c0_144 = arith.constant 0 : index
    %342 = vector.load %arg14[%c1_142, %c0_143, %c0_144] : memref<2x64x32xbf16, #tpu.memory_space<vmem>>, vector<1x64x32xbf16>
    %343 = vector.shape_cast %342 : vector<1x64x32xbf16> to vector<64x32xbf16>
    %cst_145 = arith.constant dense<0.000000e+00> : vector<20x32xf32>
    %344 = tpu.matmul %341, %343, %cst_145 {dimension_numbers = #tpu.dot_dimension_numbers<[1], [0], [0], [1], [0, 0, 1, 1], [], []>} : vector<20x64xbf16>, vector<64x32xbf16>, vector<20x32xf32> -> vector<20x32xf32>
    %c1_146 = arith.constant 1 : index
    %c0_147 = arith.constant 0 : index
    %c0_148 = arith.constant 0 : index
    %345 = vector.load %arg15[%c1_146, %c0_147, %c0_148] : memref<2x1x32xf32, #tpu.memory_space<vmem>>, vector<1x1x32xf32>
    %346 = vector.shape_cast %345 : vector<1x1x32xf32> to vector<1x32xf32>
    %347 = vector.broadcast %346 : vector<1x32xf32> to vector<20x32xf32>
    %348 = arith.addf %344, %347 : vector<20x32xf32>
    %349 = arith.addf %293, %348 : vector<20x32xf32>
    %c0_149 = arith.constant 0 : index
    %c0_150 = arith.constant 0 : index
    %c0_151 = arith.constant 0 : index
    %350 = vector.load %arg16[%c0_149, %c0_150, %c0_151] : memref<1x20x32xf32, #tpu.memory_space<vmem>>, vector<1x20x32xf32>
    %351 = vector.shape_cast %350 : vector<1x20x32xf32> to vector<20x32xf32>
    %352 = vector.shape_cast %349 : vector<20x32xf32> to vector<1x20x32xf32>
    tpu.vector_store %arg16[%c0_149, %c0_150, %c0_151], %352 {strides = array<i32>} : memref<1x20x32xf32, #tpu.memory_space<vmem>>, vector<1x20x32xf32>,
    return
  }
  func.func @transform_0(%arg0: i32) -> (i32, i32, i32) {
    %c0_i32 = arith.constant 0 : i32
    %c0_i32_0 = arith.constant 0 : i32
    %c0_i32_1 = arith.constant 0 : i32
    return %arg0, %c0_i32, %c0_i32_0 : i32, i32, i32
  }
  func.func @transform_1(%arg0: i32) -> (i32, i32) {
    %c0_i32 = arith.constant 0 : i32
    %c0_i32_0 = arith.constant 0 : i32
    %c0_i32_1 = arith.constant 0 : i32
    return %c0_i32, %c0_i32_0 : i32, i32
  }
  func.func @transform_2(%arg0: i32) -> (i32, i32) {
    %c0_i32 = arith.constant 0 : i32
    %c0_i32_0 = arith.constant 0 : i32
    %c0_i32_1 = arith.constant 0 : i32
    return %c0_i32, %c0_i32_0 : i32, i32
  }
  func.func @transform_3(%arg0: i32) -> (i32, i32) {
    %c0_i32 = arith.constant 0 : i32
    %c0_i32_0 = arith.constant 0 : i32
    %c0_i32_1 = arith.constant 0 : i32
    return %c0_i32, %c0_i32_0 : i32, i32
  }
  func.func @transform_4(%arg0: i32) -> (i32, i32, i32) {
    %c0_i32 = arith.constant 0 : i32
    %c0_i32_0 = arith.constant 0 : i32
    %c0_i32_1 = arith.constant 0 : i32
    %c0_i32_2 = arith.constant 0 : i32
    return %c0_i32, %c0_i32_0, %c0_i32_1 : i32, i32, i32
  }
  func.func @transform_5(%arg0: i32) -> (i32, i32, i32) {
    %c0_i32 = arith.constant 0 : i32
    %c0_i32_0 = arith.constant 0 : i32
    %c0_i32_1 = arith.constant 0 : i32
    %c0_i32_2 = arith.constant 0 : i32
    return %c0_i32, %c0_i32_0, %c0_i32_1 : i32, i32, i32
  }
  func.func @transform_6(%arg0: i32) -> (i32, i32, i32) {
    %c0_i32 = arith.constant 0 : i32
    %c0_i32_0 = arith.constant 0 : i32
    %c0_i32_1 = arith.constant 0 : i32
    %c0_i32_2 = arith.constant 0 : i32
    return %c0_i32, %c0_i32_0, %c0_i32_1 : i32, i32, i32
  }
  func.func @transform_7(%arg0: i32) -> (i32, i32, i32) {
    %c0_i32 = arith.constant 0 : i32
    %c0_i32_0 = arith.constant 0 : i32
    %c0_i32_1 = arith.constant 0 : i32
    %c0_i32_2 = arith.constant 0 : i32
    return %c0_i32, %c0_i32_0, %c0_i32_1 : i32, i32, i32
  }
  func.func @transform_8(%arg0: i32) -> (i32, i32, i32) {
    %c0_i32 = arith.constant 0 : i32
    %c0_i32_0 = arith.constant 0 : i32
    %c0_i32_1 = arith.constant 0 : i32
    %c0_i32_2 = arith.constant 0 : i32
    return %c0_i32, %c0_i32_0, %c0_i32_1 : i32, i32, i32
  }
  func.func @transform_9(%arg0: i32) -> (i32, i32, i32) {
    %c0_i32 = arith.constant 0 : i32
    %c0_i32_0 = arith.constant 0 : i32
    %c0_i32_1 = arith.constant 0 : i32
    %c0_i32_2 = arith.constant 0 : i32
    return %c0_i32, %c0_i32_0, %c0_i32_1 : i32, i32, i32
  }
  func.func @transform_10(%arg0: i32) -> (i32, i32, i32) {
    %c0_i32 = arith.constant 0 : i32
    %c0_i32_0 = arith.constant 0 : i32
    %c0_i32_1 = arith.constant 0 : i32
    %c0_i32_2 = arith.constant 0 : i32
    return %c0_i32, %c0_i32_0, %c0_i32_1 : i32, i32, i32
  }
  func.func @transform_11(%arg0: i32) -> (i32, i32, i32) {
    %c0_i32 = arith.constant 0 : i32
    %c0_i32_0 = arith.constant 0 : i32
    %c0_i32_1 = arith.constant 0 : i32
    %c0_i32_2 = arith.constant 0 : i32
    return %c0_i32, %c0_i32_0, %c0_i32_1 : i32, i32, i32
  }
  func.func @transform_12(%arg0: i32) -> (i32, i32, i32) {
    %c0_i32 = arith.constant 0 : i32
    %c0_i32_0 = arith.constant 0 : i32
    %c0_i32_1 = arith.constant 0 : i32
    %c0_i32_2 = arith.constant 0 : i32
    return %c0_i32, %c0_i32_0, %c0_i32_1 : i32, i32, i32
  }
  func.func @transform_13(%arg0: i32) -> (i32, i32, i32) {
    %c0_i32 = arith.constant 0 : i32
    %c0_i32_0 = arith.constant 0 : i32
    %c0_i32_1 = arith.constant 0 : i32
    %c0_i32_2 = arith.constant 0 : i32
    return %c0_i32, %c0_i32_0, %c0_i32_1 : i32, i32, i32
  }
  func.func @transform_14(%arg0: i32) -> (i32, i32, i32) {
    %c0_i32 = arith.constant 0 : i32
    %c0_i32_0 = arith.constant 0 : i32
    %c0_i32_1 = arith.constant 0 : i32
    %c0_i32_2 = arith.constant 0 : i32
    return %c0_i32, %c0_i32_0, %c0_i32_1 : i32, i32, i32
  }
  func.func @transform_15(%arg0: i32) -> (i32, i32, i32) {
    %c0_i32 = arith.constant 0 : i32
    %c0_i32_0 = arith.constant 0 : i32
    %c0_i32_1 = arith.constant 0 : i32
    return %arg0, %c0_i32, %c0_i32_0 : i32, i32, i32
  }
}

</mosaic_0001>

<bundles_post_ra>
// kernel: tile.9
= control target key start
LH: loop header
LB: loop body
LE: loop exit
PB: predicated region body
PF: predicated region fallthrough
CT: control target
= control target key end

     0   :  { %vm3_vm0 = vcmask 261120   ;;  %s60_s0 = inlined_call_operand.vmem [shape: f32[4,5,32], index: 0, kind: input, shape index: {}]   ;;  %s61_s1 = inlined_call_operand.vmem [shape: f32[20,32], index: 1, kind: output, shape index: {}]  }
   0x1   :  { %v2_v0 = vld [vmem:[%s60_s0] sm:$0x1f]   ;;  %v20_v1 = vld [vmem:[%s60_s0 + $0x8] sm:$0x1f]   ;;  %v22_v2 = vld [vmem:[%s60_s0 + $0x10] sm:$0x1f]  }
   0x2   :  { %4 = vst.msk [vmem:[%s61_s1] sm:$0x1f] %vm3_vm0, %v2_v0   ;;  %21 = vst.msk [vmem:[%s61_s1 + $0x5] sm:$0x1f] %vm3_vm0, %v20_v1   ;;  %v24_v3 = vld [vmem:[%s60_s0 + $0x18] sm:$0x1f]  }
   0x3   :  { %23 = vst.msk [vmem:[%s61_s1 + $0xa] sm:$0x1f] %vm3_vm0, %v22_v2   ;;  %25 = vst.msk [vmem:[%s61_s1 + $0xf] sm:$0x1f] %vm3_vm0, %v24_v3  }

// kernel: vit_patch_forward.1
= control target key start
LH: loop header
LB: loop body
LE: loop exit
PB: predicated region body
PF: predicated region fallthrough
CT: control target
= control target key end

     0   :  { %s5385_s18 = smov 0   ;;  %s6418_s0 = inlined_call_operand.vmem [shape: f32[2,20,256], index: 0, kind: input, shape index: {}]   ;;  %s6419_s1 = inlined_call_operand.vmem [shape: f32[20,32], index: 1, kind: input, shape index: {}]   ;;  %s6420_s2 = inlined_call_operand.vmem [shape: f32[20,20], index: 2, kind: input, shape index: {}]   ;;  %s6421_s3 = inlined_call_operand.vmem [shape: bf16[256,32], index: 3, kind: input, shape index: {}]   ;;  %s6422_s4 = inlined_call_operand.vmem [shape: f32[2,1,32], index: 4, kind: input, shape index: {}]   ;;  %s6423_s5 = inlined_call_operand.vmem [shape: f32[2,1,32], index: 5, kind: input, shape index: {}]   ;;  %s6424_s6 = inlined_call_operand.vmem [shape: bf16[2,32,768], index: 6, kind: input, shape index: {}]   ;;  %s6425_s7 = inlined_call_operand.vmem [shape: bf16[2,256,32], index: 7, kind: input, shape index: {}]   ;;  %s6426_s8 = inlined_call_operand.vmem [shape: f32[2,1,32], index: 8, kind: input, shape index: {}]   ;;  %s6427_s9 = inlined_call_operand.vmem [shape: f32[2,1,32], index: 9, kind: input, shape index: {}]   ;;  %s6428_s10 = inlined_call_operand.vmem [shape: f32[2,1,32], index: 10, kind: input, shape index: {}]   ;;  %s6429_s11 = inlined_call_operand.vmem [shape: bf16[2,32,64], index: 11, kind: input, shape index: {}]   ;;  %s6430_s12 = inlined_call_operand.vmem [shape: f32[2,1,64], index: 12, kind: input, shape index: {}]   ;;  %s6431_s13 = inlined_call_operand.vmem [shape: bf16[2,64,32], index: 13, kind: input, shape index: {}]   ;;  %s6432_s14 = inlined_call_operand.vmem [shape: f32[2,1,32], index: 14, kind: input, shape index: {}]   ;;  %s6433_s15 = inlined_call_operand.vmem [shape: f32[2,20,32], index: 15, kind: output, shape index: {}]  }
   0x1 LB: > { %s4170_s19 = sadd.s32 4294967295, %s5298_s18   ;;  %p4174_p0 = scmp.ge.s32.totalorder %s5298_s18, 1  ;;  %s5298_s18 = sphi %s5385_s18, %s25_s18  }
   0x2   : > { %p437_p1 = scmp.lt.s32.totalorder %s5298_s18, 3 }
   0x4   : > { %p438_p2 = pnand %p4174_p0, %p437_p1 }
   0x5   : > { %v5061_v0 = vld [vmem:[%s6421_s3 + $0x40] sm:$0xff] (!%p438_p2)   ;;  %p485_p3 = scmp.lt.s32.totalorder (!%p438_p2), %s4170_s19, 1  ;;  %v5063_v2 = vld [vmem:[%s6421_s3 + $0x48] sm:$0xff] (!%p438_p2)   ;;  %v5065_v4 = vld [vmem:[%s6421_s3 + $0x50] sm:$0xff] (!%p438_p2)   ;;  %vm690_vm0 = vcmask (!%p438_p2), 261120   ;;  %vm697_vm1 = vcmask (!%p438_p2), 257024  }
   0x6   : > { %441 = sbr.rel (%p438_p2) target bundleno = 5448 (0x1548), region = 80  ;;  %v5062_v1 = vld [vmem:[%s6421_s3] sm:$0xff] (!%p438_p2)   ;;  %4440 = vmatprep.subr.bf16.mxu0 (!%p438_p2), %v5061_v0  ;;  %v5064_v3 = vld [vmem:[%s6421_s3 + $0x8] sm:$0xff] (!%p438_p2)   ;;  %v5066_v5 = vld [vmem:[%s6421_s3 + $0x10] sm:$0xff] (!%p438_p2)   ;;  %v5300_v0 = vmov (!%p438_p2), 0   ;;  %vm5302_vm2 = vmmov (!%p438_p2), 0  }
   0x7   : > { %4441 = vmatpush3.bf16.msra.mxu0 (!%p438_p2), %v5062_v1  ;;  %v5067_v6 = vld [vmem:[%s6421_s3 + $0x58] sm:$0xff] (!%p438_p2)   ;;  %v5069_v8 = vld [vmem:[%s6421_s3 + $0x60] sm:$0xff] (!%p438_p2)   ;;  %v5071_v10 = vld [vmem:[%s6421_s3 + $0x68] sm:$0xff] (!%p438_p2)   ;;  %862 = vmatprep.mubr.bf16.mxu1 (!%p438_p2), %v5300_v0  ;;  %vm986_vm3 = vcmask (!%p438_p2), 523264   ;;  %s5304_s25 = smov (!%p438_p2), 64   ;;  %vm1129_vm5 = vcmask (!%p438_p2), 1043456  }
   0x8   : > { %4442 = vmatprep.subr.bf16.mxu0 (!%p438_p2), %v5063_v2  ;;  %v5068_v7 = vld [vmem:[%s6421_s3 + $0x18] sm:$0xff] (!%p438_p2)   ;;  %v5070_v9 = vld [vmem:[%s6421_s3 + $0x20] sm:$0xff] (!%p438_p2)   ;;  %v5072_v13 = vld [vmem:[%s6421_s3 + $0x28] sm:$0xff] (!%p438_p2)   ;;  %vm1085_vm6 = vcmask (!%p438_p2), 162816   ;;  %vm1092_vm7 = vcmask (!%p438_p2), 158720  }
   0x9   : > { %v5073_v15 = vld [vmem:[%s6421_s3 + $0x70] sm:$0xff] (!%p438_p2)   ;;  %v5075_v17 = vld [vmem:[%s6421_s3 + $0x78] sm:$0xff] (!%p438_p2)   ;;  %v538_v27 = vld [vmem:[%s6419_s1] sm:$0xff] (!%p438_p2) }
   0xa   : > { %v5074_v16 = vld [vmem:[%s6421_s3 + $0x30] sm:$0xff] (!%p438_p2)   ;;  %v5076_v18 = vld [vmem:[%s6421_s3 + $0x38] sm:$0xff] (!%p438_p2)   ;;  %v539_v31 = vld [vmem:[%s6419_s1 + $0x8] sm:$0xff] (!%p438_p2) }
   0xb   : > { %4443 = vmatpush3.bf16.msra.mxu0 (!%p438_p2), %v5064_v3  ;;  %v540_v38 = vld [vmem:[%s6419_s1 + $0x10] sm:$0xf] (!%p438_p2)  ;;  %v5077_v61 = vld [vmem:[%s6424_s6 + $0x4] ss:$24 sps:$4 sm:$0xff] (!%p438_p2)   ;;  %v5079_v62 = vld [vmem:[%s6424_s6] ss:$24 sps:$4 sm:$0xff] (!%p438_p2)  }
   0xc   : > { %4444 = vmatprep.subr.bf16.mxu0 (!%p438_p2), %v5065_v4  ;;  %v5080_v63 = vld [vmem:[%s6424_s6 + $0x34] ss:$24 sps:$4 sm:$0xff] (!%p438_p2)   ;;  %830 = vmatprep.subr.bf16.mxu1 (!%p438_p2), %v5077_v61  ;;  %v5082_v1 = vld [vmem:[%s6424_s6 + $0x30] ss:$24 sps:$4 sm:$0xff] (!%p438_p2)   ;;  %vm5538_vm4 = vmpackc.low (!%p438_p2), %vm986_vm3, %vm986_vm3 }
   0xd   : > { %s6437_s19 = smov (!%p485_p3, %s4170_s19), 1  ;;  %831 = vmatpush1.bf16.msra.mxu1 %v5079_v62  ;;  %v5085_v2 = vld [vmem:[%s6424_s6 + $0xc] ss:$24 sps:$4 sm:$0xff]  }
   0xe   : > { %s4976_s21 = smul.u32 48, %s6437_s19  ;;  %832 = vmatprep.subr.bf16.mxu1 %v5080_v63 }
   0xf   : > { %4445 = vmatpush3.bf16.msra.mxu0 %v5066_v5  ;;  %s4977_s26 = smul.u32 24, %s6437_s19 }
  0x10   : > { %4446 = vmatprep.subr.bf16.mxu0 %v5067_v6  ;;  %s489_s28 = scalar_lea.vmem %s6418_s0, %s4976_s21 }
  0x11   : > { %v497_v11 = vld [vmem:[%s489_s28 + $0x8] sm:$0xff]  ;;  %v499_v12 = vld [vmem:[%s489_s28 + $0x18] sm:$0xff]  ;;  %v496_v19 = vld [vmem:[%s489_s28] sm:$0xff]  ;;  %833 = vmatpush1.bf16.msra.mxu1 %v5082_v1  ;;  %s494_s17 = scalar_lea.vmem %s6433_s15, %s4977_s26 }
  0x12   : > { %v503_v14 = vpack.c.bf16 %v499_v12, %v497_v11  ;;  %v498_v20 = vld [vmem:[%s489_s28 + $0x10] sm:$0xff]  ;;  %v501_v21 = vld [vmem:[%s489_s28 + $0x28] sm:$0xf]  ;;  %v500_v24 = vld [vmem:[%s489_s28 + $0x20] sm:$0xf]  ;;  %881 = vmatprep.subr.bf16.mxu1 %v5085_v2 }
  0x13   : > { %4447 = vmatpush3.bf16.msra.mxu0 %v5068_v7  ;;  %v502_v22 = vpack.c.bf16 %v498_v20, %v496_v19  ;;  %v505_v23 = vpack.c.bf16 %v501_v21, %v501_v21  ;;  %v504_v25 = vpack.c.bf16 %v500_v24, %v500_v24  ;;  %v5083_v24 = vld [vmem:[%s6424_s6 + $0x8] ss:$24 sps:$4 sm:$0xff]  }
  0x14   : > { %4448 = vmatprep.subr.bf16.mxu0 %v5069_v8  ;;  %669 = vmatprep.mubr.bf16.mxu0 %v503_v14  ;;  %v4193_v14 = vld [vmem:[%s6422_s4] ss:$0 sm:$0xff] }
  0x17   : > { %4449 = vmatpush3.bf16.msra.mxu0 %v5070_v9 }
  0x18   : > { %4450 = vmatprep.subr.bf16.mxu0 %v5071_v10 }
  0x1b   : > { %4451 = vmatpush3.bf16.msra.mxu0 %v5072_v13 }
  0x1c   : > { %4452 = vmatprep.subr.bf16.mxu0 %v5073_v15 }
  0x1f   : > { %4453 = vmatpush3.bf16.msra.mxu0 %v5074_v16 }
  0x20   : > { %4454 = vmatprep.subr.bf16.mxu0 %v5075_v17 }
  0x23   : > { %4455 = vmatpush3.bf16.msra.mxu0 %v5076_v18  ;;  %v4194_v18 = vld [vmem:[%s6423_s5] ss:$0 sm:$0xff] }
  0x26   : > { %670 = vmatmul.mubr.bf16.vlgmr.msra.gmra.mrb[0].mxu0 %v502_v22 }
  0x27   : > { %677 = vmatprep.mubr.bf16.mxu0 %v505_v23 }
  0x2e   : > { %678 = vmatmul.mubr.bf16.gmra.mrb[4].mxu0 %v504_v25 }
  0xf9   : > { %v4456_v26 = vpop.f32.mrb[0].mxu0 }
  0xfa   : > { %v4457_v28 = vpop.f32.mrb[1].mxu0 }
  0xfb   : > { %v4458_v29 = vadd.f32 %v4457_v28, %v4456_v26  ;;  %v4459_v30 = vpop.f32.mrb[2].mxu0  ;;  %v5086_v28 = vld [vmem:[%s6424_s6 + $0x38] ss:$24 sps:$4 sm:$0xff]  }
  0xfc   : > { %v4460_v32 = vpop.f32.mrb[3].mxu0 }
  0xfd   : > { %v5453_v33 = vadd.f32 %v4458_v29, %v538_v27  ;;  %v4461_v34 = vadd.f32 %v4460_v32, %v4459_v30  ;;  %v5088_v27 = vld [vmem:[%s6424_s6 + $0x3c] ss:$24 sps:$4 sm:$0xff]   ;;  %v5089_v32 = vld [vmem:[%s6424_s6 + $0x10] ss:$24 sps:$4 sm:$0xff]  }
  0xfe   : > { %v5091_v30 = vld [vmem:[%s6424_s6 + $0x14] ss:$24 sps:$4 sm:$0xff]  }
  0xff   : > { %v5455_v35 = vadd.f32 %v4461_v34, %v539_v31  ;;  %v691_v36 = vsel %vm690_vm0, %v5453_v33, 0.0  ;;  %v5094_v34 = vld [vmem:[%s6424_s6 + $0x44] ss:$24 sps:$4 sm:$0xff]  }
 0x100   : > { %692 = vadd.xlane.f32.xlu0 %v691_v36  ;;  %v5092_v36 = vld [vmem:[%s6424_s6 + $0x40] ss:$24 sps:$4 sm:$0xff]  }
 0x101   : > { %v4462_v37 = vpop.f32.mrb[4].mxu0  ;;  %v694_v42 = vsel %vm690_vm0, %v5455_v35, 0.0 }
 0x102   : > { %v4463_v39 = vpop.f32.mrb[5].mxu0 }
 0x103   : > { %v4464_v40 = vadd.f32 %v4463_v39, %v4462_v37  ;;  %v4465_v41 = vpop.f32.mrb[6].mxu0  ;;  %v5301_v37 = vmov 0.0|0.0  }
 0x104   : > { %695 = vadd.xlane.f32.xlu0 %v694_v42  ;;  %v4466_v43 = vpop.f32.mrb[7].mxu0  ;;  %4920 = vmatprep.subr.bf16.mxu0 %v5301_v37 }
 0x105   : > { %v5464_v44 = vadd.f32 %v4464_v40, %v540_v38  ;;  %v5303_v38 = vmov 0.0  }
 0x106   : > { %4646 = vmatprep.mubr.msk.f32.mxu0 %vm5302_vm2, %v5303_v38 }
 0x107   : > { %v698_v45 = vsel %vm697_vm1, %v5464_v44, 0.0 }
 0x108   : > { %699 = vadd.xlane.f32.xlu1 %v698_v45 }
 0x18d   : > { %v693_v46 = vpop.xlane.xlu0 %692 }
 0x18e   : > { %v702_v47 = vmul.f32 0.03125, %v693_v46 }
 0x190   : > { %v705_v48 = vsub.f32 %v5453_v33, %v702_v47 }
 0x191   : > { %v696_v49 = vpop.xlane.xlu0 %695 }
 0x192   : > { %v703_v50 = vmul.f32 0.03125, %v696_v49  ;;  %v708_v51 = vmul.f32 %v705_v48, %v705_v48 }
 0x194   : > { %v706_v52 = vsub.f32 %v5455_v35, %v703_v50  ;;  %v711_v53 = vsel %vm690_vm0, %v708_v51, 0.0 }
 0x195   : > { %v700_v54 = vpop.xlane.xlu1 %699  ;;  %712 = vadd.xlane.f32.xlu1 %v711_v53 }
 0x196   : > { %v704_v55 = vmul.f32 0.03125, %v700_v54  ;;  %v709_v56 = vmul.f32 %v706_v52, %v706_v52 }
 0x198   : > { %v707_v57 = vsub.f32 %v5464_v44, %v704_v55  ;;  %v714_v58 = vsel %vm690_vm0, %v709_v56, 0.0 }
 0x199   : > { %715 = vadd.xlane.f32.xlu0 %v714_v58 }
 0x19a   : > { %v710_v59 = vmul.f32 %v707_v57, %v707_v57 }
 0x19c   : > { %v717_v60 = vsel %vm697_vm1, %v710_v59, 0.0 }
 0x19d   : > { %718 = vadd.xlane.f32.xlu1 %v717_v60 }
 0x222   : > { %v713_v3 = vpop.xlane.xlu1 %712 }
 0x223   : > { %v720_v4 = vmul.f32 0.03125, %v713_v3 }
 0x225   : > { %v723_v5 = vadd.f32 1e-05, %v720_v4 }
 0x226   : > { %v716_v6 = vpop.xlane.xlu0 %715 }
 0x227   : > { %5157 = vrsqrt.f32 %v723_v5  ;;  %v721_v7 = vmul.f32 0.03125, %v716_v6 }
 0x229   : > { %v724_v8 = vadd.f32 1e-05, %v721_v7 }
 0x22a   : > { %v719_v9 = vpop.xlane.xlu1 %718 }
 0x22b   : > { %5159 = vrsqrt.f32 %v724_v8  ;;  %v722_v10 = vmul.f32 0.03125, %v719_v9 }
 0x22d   : > { %v725_v11 = vadd.f32 1e-05, %v722_v10 }
 0x22f   : > { %5161 = vrsqrt.f32 %v725_v11 }
 0x231   : > { %v5158_v12 = vpop.eup %5157 }
 0x232   : > { %v729_v13 = vmul.f32 %v5158_v12, %v705_v48 }
 0x234   : > { %v738_v17 = vmul.f32 %v4193_v14, %v729_v13 }
 0x235   : > { %v5160_v15 = vpop.eup %5159 }
 0x236   : > { %v730_v16 = vmul.f32 %v5160_v15, %v706_v52  ;;  %v747_v21 = vadd.f32 %v4194_v18, %v738_v17 }
 0x238   : > { %v739_v19 = vmul.f32 %v4193_v14, %v730_v16 }
 0x239   : > { %v5162_v20 = vpop.eup %5161 }
 0x23a   : > { %v748_v22 = vadd.f32 %v4194_v18, %v739_v19  ;;  %v731_v23 = vmul.f32 %v5162_v20, %v707_v57 }
 0x23c   : > { %v750_v25 = vpack.c.bf16 %v748_v22, %v747_v21  ;;  %v740_v26 = vmul.f32 %v4193_v14, %v731_v23 }
 0x23e   : > { %4207 = vmatmul.mubr.msk.bf16.vlgmr.msra.gmra.mrb[0].mxu1 %vm690_vm0, %v750_v25  ;;  %v749_v29 = vadd.f32 %v4194_v18, %v740_v26 }
 0x23f   : > { %872 = vmatprep.mubr.bf16.mxu1 %v5300_v0  ;;  %882 = vmatpush1.bf16.msra.mxu1 %v5083_v24 }
 0x240   : > { %883 = vmatprep.subr.bf16.mxu1 %v5088_v27  ;;  %v751_v31 = vpack.c.bf16 %v749_v29, %v749_v29 }
 0x243   : > { %884 = vmatpush1.bf16.msra.mxu1 %v5086_v28 }
 0x244   : > { %932 = vmatprep.subr.bf16.mxu1 %v5091_v30 }
 0x246   : > { %4208 = vmatmul.mubr.msk.bf16.gmra.mrb[4].mxu1 %vm690_vm0, %v751_v31 }
 0x247   : > { %913 = vmatprep.mubr.bf16.mxu1 %v5300_v0 }
 0x24e   : > { %4209 = vmatmul.mubr.msk.bf16.vlgmr.msra.gmra.mrb[8].mxu1 %vm690_vm0, %v750_v25 }
 0x24f   : > { %923 = vmatprep.mubr.bf16.mxu1 %v5300_v0  ;;  %933 = vmatpush1.bf16.msra.mxu1 %v5089_v32  ;;  %v685_v32 = vld [vmem:[%s6420_s2] sm:$0xff] }
 0x250   : > { %934 = vmatprep.subr.bf16.mxu1 %v5094_v34 }
 0x253   : > { %935 = vmatpush1.bf16.msra.mxu1 %v5092_v36 }
 0x254   : > { %4924 = vmatprep.subr.bf16.mxu1 %v5301_v37 }
 0x256   : > { %4210 = vmatmul.mubr.msk.bf16.gmra.mrb[12].mxu1 %vm690_vm0, %v751_v31 }
 0x257   : > { %964 = vmatprep.mubr.bf16.mxu1 %v5300_v0 }
 0x25e   : > { %4211 = vmatmul.mubr.msk.bf16.vlgmr.msra.gmra.mrb[16].mxu1 %vm690_vm0, %v750_v25 }
 0x25f   : > { %974 = vmatprep.mubr.bf16.mxu1 %v5300_v0 }
 0x266   : > { %4212 = vmatmul.mubr.msk.bf16.gmra.mrb[20].mxu1 %vm690_vm0, %v751_v31 }
 0x267   : > { %4661 = vmatprep.mubr.msk.f32.mxu1 %vm5302_vm2, %v5303_v38 }
 0x311   : > { %v864_v39 = vpop.f32.mrb[0].mxu1 }
 0x312   : > { %v866_v40 = vpop.f32.mrb[1].mxu1  ;;  %v983_v61 = vmul.f32 0.125, %v864_v39 }
 0x313   : > { %v868_v41 = vpop.f32.mrb[2].mxu1  ;;  %v1451_v10 = vmul.f32 0.125, %v866_v40  ;;  %v686_v40 = vld [vmem:[%s6420_s2 + $0x8] sm:$0xff] }
 0x314   : > { %v870_v42 = vpop.f32.mrb[3].mxu1  ;;  %v984_v63 = vmul.f32 0.125, %v868_v41 }
 0x315   : > { %v1452_v1 = vmul.f32 0.125, %v870_v42 }
 0x319   : > { %v874_v43 = vpop.f32.mrb[4].mxu1 }
 0x31a   : > { %v876_v45 = vpop.f32.mrb[5].mxu1  ;;  %v985_v57 = vmul.f32 0.125, %v874_v43 }
 0x31b   : > { %v878_v46 = vpop.f32.mrb[6].mxu1  ;;  %v1453_v14 = vmul.f32 0.125, %v876_v45 }
 0x31c   : > { %v879_v47 = vpop.f32.mrb[7].mxu1  ;;  %v687_v46 = vld [vmem:[%s6420_s2 + $0x10] sm:$0xf] }
 0x321   : > { %v915_v48 = vpop.f32.mrb[8].mxu1 }
 0x322   : > { %v5534_v49 = vpop.f32.mrb[9].mxu1 }
 0x323   : > { %v919_v50 = vpop.f32.mrb[10].mxu1 }
 0x324   : > { %v4991_v52 = vpack.i.bf16 %v919_v50, %v915_v48  ;;  %v4921_v53 = vpack.c.bf16 %v919_v50, %v915_v48  ;;  %v5542_v54 = vpop.f32.mrb[11].mxu1 }
 0x325   : > { %v4996_v55 = vpack.i.bf16 %v5542_v54, %v5534_v49  ;;  %v4935_v56 = vpack.c.bf16 %v5542_v54, %v5534_v49 }
 0x326   : > { %4992 = vrot.lane.b32.xlu0 %v4991_v52, %s5304_s25  ;;  %4923 = vmatpush3.bf16.xpose.msk.msra.mxu0 %vm5538_vm4, %v4921_v53 }
 0x327   : > { %4644 = vmatprep.subr.mxu0 %v5303_v38 }
 0x329   : > { %v925_v58 = vpop.f32.mrb[12].mxu1 }
 0x32a   : > { %1217 = vrot.lane.b32.xlu0 %v985_v57, %s5304_s25  ;;  %1223 = vrot.lane.b32.xlu1 %v925_v58, %s5304_s25  ;;  %v927_v59 = vpop.f32.mrb[13].mxu1 }
 0x32b   : > { %v929_v60 = vpop.f32.mrb[14].mxu1 }
 0x32c   : > { %v930_v62 = vpop.f32.mrb[15].mxu1 }
 0x32e   : > { %1213 = vrot.lane.b32.xlu1 %v983_v61, %s5304_s25  ;;  %4645 = vmatpush3.xpose.msk.msra.mxu0 %vm986_vm3, %v925_v58 }
 0x32f   : > { %1687 = vrot.lane.b32.xlu0 %v927_v59, %s5304_s25  ;;  %4927 = vmatprep.subr.bf16.mxu0 %v5301_v37 }
 0x331   : > { %v5558_v2 = vpop.f32.mrb[16].mxu1  ;;  %4647 = vmatmul.mubr.msk.f32.vlgmr.msra.gmra.mrb[8].mxu0 %vm986_vm3, %v983_v61 }
 0x332   : > { %1215 = vrot.lane.b32.xlu1 %v984_v63, %s5304_s25  ;;  %v5562_v3 = vpop.f32.mrb[17].mxu1  ;;  %4649 = vmatprep.mubr.msk.f32.mxu0 %vm5302_vm2, %v5303_v38 }
 0x333   : > { %1679 = vrot.lane.b32.xlu0 %v1452_v1, %s5304_s25  ;;  %v5567_v4 = vpop.f32.mrb[18].mxu1 }
 0x334   : > { %v5001_v5 = vpack.i.bf16 %v5567_v4, %v5558_v2  ;;  %v4925_v6 = vpack.c.bf16 %v5567_v4, %v5558_v2  ;;  %v5573_v7 = vpop.f32.mrb[19].mxu1 }
 0x335   : > { %v5006_v8 = vpack.i.bf16 %v5573_v7, %v5562_v3  ;;  %v4939_v9 = vpack.c.bf16 %v5573_v7, %v5562_v3  ;;  %4650 = vmatmul.mubr.msk.f32.gmra.mrb[10].mxu0 %vm986_vm3, %v984_v63 }
 0x336   : > { %4997 = vrot.lane.b32.xlu1 %v4996_v55, %s5304_s25  ;;  %4926 = vmatpush3.bf16.msra.mxu1 %v4925_v6 }
 0x337   : > { %4652 = vmatprep.mubr.msk.f32.mxu0 %vm5302_vm2, %v5303_v38  ;;  %4659 = vmatprep.subr.mxu1 %v5303_v38 }
 0x339   : > { %v5584_v11 = vpop.f32.mrb[20].mxu1  ;;  %4653 = vmatmul.mubr.msk.f32.gmra.mrb[12].mxu0 %vm986_vm3, %v985_v57 }
 0x33a   : > { %1677 = vrot.lane.b32.xlu1 %v1451_v10, %s5304_s25  ;;  %v5588_v12 = vpop.f32.mrb[21].mxu1  ;;  %4660 = vmatpush3.msk.msra.mxu1 %vm1129_vm5, %v5584_v11 }
 0x33b   : > { %v980_v13 = vpop.f32.mrb[22].mxu1  ;;  %4676 = vmatprep.mubr.msk.f32.mxu0 %vm5302_vm2, %v5303_v38  ;;  %4931 = vmatprep.subr.bf16.mxu1 %v5301_v37 }
 0x33c   : > { %v981_v15 = vpop.f32.mrb[23].mxu1 }
 0x33e   : > { %1681 = vrot.lane.b32.xlu1 %v1453_v14, %s5304_s25 }
 0x398   : > { %v4993_v16 = vpop.permute.xlu0 %4992 }
 0x399   : > { %v4995_v17 = vunpack.i.h.bf16 %v4993_v16  ;;  %v4994_v18 = vunpack.i.l.bf16 %v4993_v16 }
 0x39b   : > { %v4928_v19 = vpack.c.bf16 %v4995_v17, %v4994_v18 }
 0x39c   : > { %v1224_v20 = vpop.permute.xlu1 %1223  ;;  %v1218_v24 = vpop.permute.xlu0 %1217 }
 0x39d   : > { %4930 = vmatpush3.bf16.xpose.msk.msra.mxu0 %vm5538_vm4, %v4928_v19 }
 0x39e   : > { %4674 = vmatprep.subr.mxu0 %v5303_v38 }
 0x3a0   : > { %v1214_v21 = vpop.permute.xlu1 %1213 }
 0x3a1   : > { %v1688_v28 = vpop.permute.xlu0 %1687 }
 0x3a4   : > { %v1216_v22 = vpop.permute.xlu1 %1215 }
 0x3a5   : > { %4675 = vmatpush3.xpose.msk.msra.mxu0 %vm986_vm3, %v1224_v20  ;;  %v1680_v30 = vpop.permute.xlu0 %1679 }
 0x3a6   : > { %4934 = vmatprep.subr.bf16.mxu0 %v5301_v37 }
 0x3a8   : > { %4677 = vmatmul.mubr.msk.f32.vlgmr.msra.gmra.mrb[14].mxu0 %vm986_vm3, %v1214_v21  ;;  %v4998_v23 = vpop.permute.xlu1 %4997 }
 0x3a9   : > { %4937 = vmatpush3.bf16.xpose.msk.msra.mxu0 %vm5538_vm4, %v4935_v56  ;;  %4679 = vmatprep.mubr.msk.f32.mxu0 %vm5302_vm2, %v5303_v38  ;;  %v5000_v25 = vunpack.i.h.bf16 %v4998_v23  ;;  %v4999_v26 = vunpack.i.l.bf16 %v4998_v23 }
 0x3aa   : > { %4704 = vmatprep.subr.mxu0 %v5303_v38 }
 0x3ab   : > { %v4942_v27 = vpack.c.bf16 %v5000_v25, %v4999_v26 }
 0x3ac   : > { %4680 = vmatmul.mubr.msk.f32.gmra.mrb[16].mxu0 %vm986_vm3, %v1216_v22  ;;  %v1678_v29 = vpop.permute.xlu1 %1677 }
 0x3ad   : > { %4682 = vmatprep.mubr.msk.f32.mxu0 %vm5302_vm2, %v5303_v38 }
 0x3b0   : > { %4683 = vmatmul.mubr.msk.f32.gmra.mrb[18].mxu0 %vm986_vm3, %v1218_v24  ;;  %v1682_v31 = vpop.permute.xlu1 %1681 }
 0x3b1   : > { %4705 = vmatpush3.xpose.msk.msra.mxu0 %vm986_vm3, %v927_v59  ;;  %4706 = vmatprep.mubr.msk.f32.mxu0 %vm5302_vm2, %v5303_v38 }
 0x3b2   : > { %4941 = vmatprep.subr.bf16.mxu0 %v5301_v37 }
 0x3b4   : > { %4707 = vmatmul.mubr.msk.f32.vlgmr.msra.gmra.mrb[20].mxu0 %vm986_vm3, %v1451_v10 }
 0x3b5   : > { %4944 = vmatpush3.bf16.xpose.msk.msra.mxu0 %vm5538_vm4, %v4942_v27  ;;  %4709 = vmatprep.mubr.msk.f32.mxu0 %vm5302_vm2, %v5303_v38 }
 0x3b6   : > { %4734 = vmatprep.subr.mxu0 %v5303_v38 }
 0x3b8   : > { %4710 = vmatmul.mubr.msk.f32.gmra.mrb[22].mxu0 %vm986_vm3, %v1452_v1 }
 0x3b9   : > { %4712 = vmatprep.mubr.msk.f32.mxu0 %vm5302_vm2, %v5303_v38 }
 0x3bc   : > { %4713 = vmatmul.mubr.msk.f32.gmra.mrb[24].mxu0 %vm986_vm3, %v1453_v14 }
 0x3bd   : > { %4735 = vmatpush3.xpose.msk.msra.mxu0 %vm986_vm3, %v1688_v28  ;;  %4736 = vmatprep.mubr.msk.f32.mxu0 %vm5302_vm2, %v5303_v38 }
 0x3c0   : > { %4737 = vmatmul.mubr.msk.f32.vlgmr.msra.gmra.mrb[26].mxu0 %vm986_vm3, %v1678_v29 }
 0x3c1   : > { %4739 = vmatprep.mubr.msk.f32.mxu0 %vm5302_vm2, %v5303_v38 }
 0x3c4   : > { %4740 = vmatmul.mubr.msk.f32.gmra.mrb[28].mxu0 %vm986_vm3, %v1680_v30 }
 0x3c5   : > { %4742 = vmatprep.mubr.msk.f32.mxu0 %vm5302_vm2, %v5303_v38 }
 0x3c8   : > { %4743 = vmatmul.mubr.msk.f32.gmra.mrb[30].mxu0 %vm986_vm3, %v1682_v31 }
 0x404   : > { %v1071_v34 = vpop.f32.mrb[8].mxu0 }
 0x405   : > { %v1072_v36 = vadd.f32 %v1071_v34, %v685_v32  ;;  %v4648_v39 = vpop.f32.mrb[9].mxu0 }
 0x407   : > { %v1086_v41 = vsel %vm1085_vm6, %v1072_v36, -inf }
 0x408   : > { %v1076_v42 = vpop.f32.mrb[10].mxu0  ;;  %1087 = vmax.xlane.f32.xlu0 %v1086_v41 }
 0x409   : > { %v1077_v43 = vadd.f32 %v1076_v42, %v686_v40  ;;  %v4651_v45 = vpop.f32.mrb[11].mxu0 }
 0x40b   : > { %v1089_v47 = vsel %vm1085_vm6, %v1077_v43, -inf }
 0x40c   : > { %1090 = vmax.xlane.f32.xlu1 %v1089_v47  ;;  %v1081_v48 = vpop.f32.mrb[12].mxu0 }
 0x40d   : > { %v1082_v49 = vadd.f32 %v1081_v48, %v687_v46  ;;  %v4654_v50 = vpop.f32.mrb[13].mxu0 }
 0x40f   : > { %v1093_v52 = vsel %vm1092_vm7, %v1082_v49, -inf }
 0x410   : > { %1094 = vmax.xlane.f32.xlu0 %v1093_v52 }
 0x47b   : > { %v1303_v53 = vpop.f32.mrb[14].mxu0 }
 0x47c   : > { %v5647_v54 = vadd.f32 %v1303_v53, %v685_v32  ;;  %v4678_v55 = vpop.f32.mrb[15].mxu0 }
 0x47e   : > { %v1317_v56 = vsel %vm1085_vm6, %v5647_v54, -inf }
 0x47f   : > { %v1308_v57 = vpop.f32.mrb[16].mxu0  ;;  %1318 = vmax.xlane.f32.xlu0 %v1317_v56 }
 0x480   : > { %v5651_v58 = vadd.f32 %v1308_v57, %v686_v40  ;;  %v4681_v59 = vpop.f32.mrb[17].mxu0 }
 0x482   : > { %v1320_v60 = vsel %vm1085_vm6, %v5651_v58, -inf }
 0x483   : > { %v1313_v61 = vpop.f32.mrb[18].mxu0  ;;  %1321 = vmax.xlane.f32.xlu0 %v1320_v60 }
 0x484   : > { %v5655_v62 = vadd.f32 %v1313_v61, %v687_v46  ;;  %v4684_v63 = vpop.f32.mrb[19].mxu0 }
 0x486   : > { %v1323_v1 = vsel %vm1092_vm7, %v5655_v62, -inf }
 0x487   : > { %1324 = vmax.xlane.f32.xlu1 %v1323_v1  ;;  %v1538_v6 = vpop.f32.mrb[20].mxu0 }
 0x488   : > { %v5659_v10 = vadd.f32 %v1538_v6, %v685_v32  ;;  %v4708_v13 = vpop.f32.mrb[21].mxu0 }
 0x48a   : > { %v1552_v14 = vsel %vm1085_vm6, %v5659_v10, -inf }
 0x48b   : > { %1553 = vmax.xlane.f32.xlu0 %v1552_v14  ;;  %v1543_v15 = vpop.f32.mrb[22].mxu0 }
 0x48c   : > { %v5663_v16 = vadd.f32 %v1543_v15, %v686_v40  ;;  %v4711_v17 = vpop.f32.mrb[23].mxu0 }
 0x48e   : > { %v1555_v18 = vsel %vm1085_vm6, %v5663_v16, -inf }
 0x48f   : > { %1556 = vmax.xlane.f32.xlu1 %v1555_v18  ;;  %v1548_v19 = vpop.f32.mrb[24].mxu0 }
 0x490   : > { %v5667_v20 = vadd.f32 %v1548_v19, %v687_v46  ;;  %v4714_v21 = vpop.f32.mrb[25].mxu0 }
 0x492   : > { %v1558_v22 = vsel %vm1092_vm7, %v5667_v20, -inf }
 0x493   : > { %1559 = vmax.xlane.f32.xlu0 %v1558_v22  ;;  %v1767_v23 = vpop.f32.mrb[26].mxu0 }
 0x494   : > { %v5671_v24 = vadd.f32 %v1767_v23, %v685_v32  ;;  %v4738_v25 = vpop.f32.mrb[27].mxu0 }
 0x495   : > { %v1088_v26 = vpop.xlane.xlu0 %1087 }
 0x496   : > { %v1096_v27 = vsub.f32 %v1072_v36, %v1088_v26  ;;  %v1781_v28 = vsel %vm1085_vm6, %v5671_v24, -inf }
 0x497   : > { %1782 = vmax.xlane.f32.xlu1 %v1781_v28  ;;  %v1772_v29 = vpop.f32.mrb[28].mxu0 }
 0x498   : > { %v1099_v30 = vmul.f32 1.442695, %v1096_v27  ;;  %v5675_v31 = vadd.f32 %v1772_v29, %v686_v40  ;;  %v4741_v34 = vpop.f32.mrb[29].mxu0 }
 0x499   : > { %v1091_v39 = vpop.xlane.xlu1 %1090 }
 0x49a   : > { %5163 = vpow2.f32 %v1099_v30  ;;  %v1097_v41 = vsub.f32 %v1077_v43, %v1091_v39  ;;  %v1784_v42 = vsel %vm1085_vm6, %v5675_v31, -inf }
 0x49b   : > { %1785 = vmax.xlane.f32.xlu0 %v1784_v42  ;;  %v1777_v32 = vpop.f32.mrb[30].mxu0 }
 0x49c   : > { %v1101_v45 = vmul.f32 1.442695, %v1097_v41  ;;  %v5679_v47 = vadd.f32 %v1777_v32, %v687_v46  ;;  %v4744_v36 = vpop.f32.mrb[31].mxu0 }
 0x49d   : > { %v1095_v48 = vpop.xlane.xlu0 %1094 }
 0x49e   : > { %5165 = vpow2.f32 %v1101_v45  ;;  %v1098_v50 = vsub.f32 %v1082_v49, %v1095_v48  ;;  %v1787_v40 = vsel %vm1092_vm7, %v5679_v47, -inf }
 0x49f   : > { %1788 = vmax.xlane.f32.xlu1 %v1787_v40 }
 0x4a0   : > { %v1103_v52 = vmul.f32 1.442695, %v1098_v50 }
 0x4a2   : > { %5167 = vpow2.f32 %v1103_v52 }
 0x4a4   : > { %v5164_v53 = vpop.eup %5163 }
 0x4a5   : > { %v1105_v43 = vsel %vm1085_vm6, %v5164_v53, 0.0 }
 0x4a6   : > { %1106 = vadd.xlane.f32.xlu0 %v1105_v43 }
 0x4a8   : > { %v5166_v55 = vpop.eup %5165 }
 0x4a9   : > { %v1108_v56 = vsel %vm1085_vm6, %v5166_v55, 0.0 }
 0x4aa   : > { %1109 = vadd.xlane.f32.xlu1 %v1108_v56 }
 0x4ac   : > { %v5168_v46 = vpop.eup %5167 }
 0x4ad   : > { %v1111_v57 = vsel %vm1092_vm7, %v5168_v46, 0.0 }
 0x4ae   : > { %1112 = vadd.xlane.f32.xlu0 %v1111_v57 }
 0x50c   : > { %v1319_v59 = vpop.xlane.xlu0 %1318 }
 0x50d   : > { %v1326_v49 = vsub.f32 %v5647_v54, %v1319_v59 }
 0x50f   : > { %v1329_v60 = vmul.f32 1.442695, %v1326_v49 }
 0x510   : > { %v1322_v61 = vpop.xlane.xlu0 %1321 }
 0x511   : > { %5169 = vpow2.f32 %v1329_v60  ;;  %v1327_v63 = vsub.f32 %v5651_v58, %v1322_v61 }
 0x513   : > { %v1331_v1 = vmul.f32 1.442695, %v1327_v63 }
 0x514   : > { %v1325_v54 = vpop.xlane.xlu1 %1324 }
 0x515   : > { %5171 = vpow2.f32 %v1331_v1  ;;  %v1328_v27 = vsub.f32 %v5655_v62, %v1325_v54 }
 0x517   : > { %v1333_v30 = vmul.f32 1.442695, %v1328_v27 }
 0x518   : > { %v1554_v17 = vpop.xlane.xlu0 %1553 }
 0x519   : > { %v1561_v29 = vsub.f32 %v5659_v10, %v1554_v17 }
 0x51b   : > { %v5688_v6 = vpop.eup %5169  ;;  %v1564_v2 = vmul.f32 1.442695, %v1561_v29 }
 0x51c   : > { %v1335_v13 = vsel %vm1085_vm6, %v5688_v6, 0.0  ;;  %v1557_v18 = vpop.xlane.xlu1 %1556 }
 0x51d   : > { %1336 = vadd.xlane.f32.xlu1 %v1335_v13  ;;  %v1562_v34 = vsub.f32 %v5663_v16, %v1557_v18 }
 0x51f   : > { %v5692_v14 = vpop.eup %5171  ;;  %v1566_v62 = vmul.f32 1.442695, %v1562_v34 }
 0x520   : > { %v1338_v15 = vsel %vm1085_vm6, %v5692_v14, 0.0  ;;  %v1560_v19 = vpop.xlane.xlu0 %1559 }
 0x521   : > { %1339 = vadd.xlane.f32.xlu0 %v1338_v15  ;;  %v1563_v4 = vsub.f32 %v5667_v20, %v1560_v19 }
 0x523   : > { %v1568_v16 = vmul.f32 1.442695, %v1563_v4 }
 0x524   : > { %v1783_v58 = vpop.xlane.xlu1 %1782 }
 0x525   : > { %v1790_v32 = vsub.f32 %v5671_v24, %v1783_v58 }
 0x527   : > { %v1793_v20 = vmul.f32 1.442695, %v1790_v32 }
 0x528   : > { %v1786_v21 = vpop.xlane.xlu0 %1785 }
 0x529   : > { %v1791_v41 = vsub.f32 %v5675_v31, %v1786_v21 }
 0x52b   : > { %v1795_v45 = vmul.f32 1.442695, %v1791_v41 }
 0x52c   : > { %v1789_v22 = vpop.xlane.xlu1 %1788 }
 0x52d   : > { %v1792_v31 = vsub.f32 %v5679_v47, %v1789_v22 }
 0x52e   : > { %1356 = vrot.lane.b32.xlu1 %v5584_v11, %s5304_s25 }
 0x52f   : > { %v1797_v48 = vmul.f32 1.442695, %v1792_v31 }
 0x533   : > { %v1107_v23 = vpop.xlane.xlu0 %1106 }
 0x534   : > { %5173 = vrcp.f32 %v1107_v23 }
 0x537   : > { %v1110_v25 = vpop.xlane.xlu1 %1109  ;;  %5002 = vrot.lane.b32.xlu0 %v5001_v5, %s5304_s25 }
 0x538   : > { %5175 = vrcp.f32 %v1110_v25 }
 0x53b   : > { %v1113_v26 = vpop.xlane.xlu0 %1112 }
 0x53c   : > { %5177 = vrcp.f32 %v1113_v26 }
 0x53d   : > { %5179 = vpow2.f32 %v1333_v30 }
 0x53e   : > { %v5174_v28 = vpop.eup %5173  ;;  %5181 = vpow2.f32 %v1564_v2 }
 0x53f   : > { %v1117_v11 = vmul.f32 %v5174_v28, %v5164_v53  ;;  %5183 = vpow2.f32 %v1566_v62 }
 0x540   : > { %5185 = vpow2.f32 %v1568_v16 }
 0x541   : > { %4662 = vmatmul.mubr.msk.f32.vlgmr.msra.gmra.mrb[24].mxu1 %vm1085_vm6, %v1117_v11  ;;  %5187 = vpow2.f32 %v1795_v45 }
 0x542   : > { %v5176_v39 = vpop.eup %5175  ;;  %4664 = vmatprep.mubr.msk.f32.mxu1 %vm5302_vm2, %v5303_v38  ;;  %5189 = vpow2.f32 %v1793_v20 }
 0x543   : > { %v1118_v5 = vmul.f32 %v5176_v39, %v5166_v55  ;;  %5191 = vpow2.f32 %v1797_v48  ;;  %v5095_v48 = vld [vmem:[%s6425_s7 + $0x40] sm:$0xff]  }
 0x544   : > { %4516 = vmatprep.subr.bf16.mxu0 %v5095_v48 }
 0x545   : > { %4665 = vmatmul.mubr.msk.f32.gmra.mrb[26].mxu1 %vm1085_vm6, %v1118_v5 }
 0x546   : > { %v5178_v10 = vpop.eup %5177  ;;  %4667 = vmatprep.mubr.msk.f32.mxu1 %vm5302_vm2, %v5303_v38 }
 0x547   : > { %v1119_v42 = vmul.f32 %v5178_v10, %v5168_v46  ;;  %v5718_v36 = vpop.eup %5179 }
 0x548   : > { %v5720_v50 = vpop.eup %5181  ;;  %v1341_v24 = vsel %vm1092_vm7, %v5718_v36, 0.0 }
 0x549   : > { %4668 = vmatmul.mubr.msk.f32.gmra.mrb[28].mxu1 %vm1085_vm6, %v1119_v42  ;;  %v5724_v40 = vpop.eup %5183  ;;  %v1570_v53 = vsel %vm1085_vm6, %v5720_v50, 0.0 }
 0x54a   : > { %4691 = vmatprep.mubr.msk.f32.mxu1 %vm5302_vm2, %v5303_v38  ;;  %v5726_v52 = vpop.eup %5185  ;;  %v1573_v47 = vsel %vm1085_vm6, %v5724_v40, 0.0 }
 0x54b   : > { %v5732_v43 = vpop.eup %5187  ;;  %v1576_v56 = vsel %vm1092_vm7, %v5726_v52, 0.0 }
 0x54c   : > { %v1802_v55 = vsel %vm1085_vm6, %v5732_v43, 0.0  ;;  %v5738_v46 = vpop.eup %5189 }
 0x54d   : > { %v1799_v57 = vsel %vm1085_vm6, %v5738_v46, 0.0  ;;  %v5742_v59 = vpop.eup %5191 }
 0x54e   : > { %v1805_v49 = vsel %vm1092_vm7, %v5742_v59, 0.0 }
 0x552   : > { %1342 = vadd.xlane.f32.xlu1 %v1341_v24  ;;  %v5097_v24 = vld [vmem:[%s6425_s7 + $0x48] sm:$0xff]  }
 0x556   : > { %1571 = vadd.xlane.f32.xlu0 %v1570_v53  ;;  %1574 = vadd.xlane.f32.xlu1 %v1573_v47  ;;  %v5099_v47 = vld [vmem:[%s6425_s7 + $0x50] sm:$0xff]  }
 0x55a   : > { %1803 = vadd.xlane.f32.xlu0 %v1802_v55  ;;  %1577 = vadd.xlane.f32.xlu1 %v1576_v56  ;;  %v5100_v55 = vld [vmem:[%s6425_s7 + $0x10] sm:$0xff]  }
 0x55e   : > { %1800 = vadd.xlane.f32.xlu1 %v1799_v57  ;;  %v5101_v57 = vld [vmem:[%s6425_s7 + $0x58] sm:$0xff]  }
 0x562   : > { %1806 = vadd.xlane.f32.xlu1 %v1805_v49  ;;  %v5103_v49 = vld [vmem:[%s6425_s7 + $0x60] sm:$0xff]  }
 0x570   : > { %5007 = vrot.lane.b32.xlu0 %v5006_v8, %s5304_s25 }
 0x573   : > { %1820 = vrot.lane.b32.xlu1 %v5588_v12, %s5304_s25 }
 0x5aa   : > { %v1337_v60 = vpop.xlane.xlu1 %1336 }
 0x5ab   : > { %5193 = vrcp.f32 %v1337_v60  ;;  %v5104_v60 = vld [vmem:[%s6425_s7 + $0x20] sm:$0xff]  }
 0x5ae   : > { %v1340_v61 = vpop.xlane.xlu0 %1339  ;;  %v1357_v18 = vpop.permute.xlu1 %1356 }
 0x5af   : > { %5195 = vrcp.f32 %v1340_v61  ;;  %v5105_v61 = vld [vmem:[%s6425_s7 + $0x68] sm:$0xff]  }
 0x5b2   : > { %v5003_v63 = vpop.permute.xlu0 %5002 }
 0x5b3   : > { %v5005_v1 = vunpack.i.h.bf16 %v5003_v63  ;;  %v5004_v13 = vunpack.i.l.bf16 %v5003_v63  ;;  %v5106_v63 = vld [vmem:[%s6425_s7 + $0x28] sm:$0xff]  }
 0x5b5   : > { %v4932_v15 = vpack.c.bf16 %v5005_v1, %v5004_v13  ;;  %v5194_v54 = vpop.eup %5193  ;;  %v5107_v1 = vld [vmem:[%s6425_s7 + $0x70] sm:$0xff]  }
 0x5b6   : > { %v1347_v17 = vmul.f32 %v5194_v54, %v5688_v6  ;;  %v5108_v13 = vld [vmem:[%s6425_s7 + $0x30] sm:$0xff]  }
 0x5b7   : > { %4933 = vmatpush3.bf16.msra.mxu1 %v4932_v15 }
 0x5b8   : > { %4689 = vmatprep.subr.mxu1 %v5303_v38 }
 0x5b9   : > { %v5196_v19 = vpop.eup %5195 }
 0x5ba   : > { %v1348_v8 = vmul.f32 %v5196_v19, %v5692_v14 }
 0x5bb   : > { %4690 = vmatpush3.msk.msra.mxu1 %vm1129_vm5, %v1357_v18 }
 0x5bc   : > { %4692 = vmatmul.mubr.msk.f32.vlgmr.msra.gmra.mrb[30].mxu1 %vm1085_vm6, %v1347_v17  ;;  %4938 = vmatprep.subr.bf16.mxu1 %v5301_v37 }
 0x5bd   : > { %4940 = vmatpush3.bf16.msra.mxu1 %v4939_v9  ;;  %4694 = vmatprep.mubr.msk.f32.mxu1 %vm5302_vm2, %v5303_v38 }
 0x5be   : > { %4719 = vmatprep.subr.mxu1 %v5303_v38 }
 0x5c0   : > { %4695 = vmatmul.mubr.msk.f32.gmra.mrb[32].mxu1 %vm1085_vm6, %v1348_v8 }
 0x5c1   : > { %4720 = vmatpush3.msk.msra.mxu1 %vm1129_vm5, %v5588_v12  ;;  %4697 = vmatprep.mubr.msk.f32.mxu1 %vm5302_vm2, %v5303_v38 }
 0x5c2   : > { %4945 = vmatprep.subr.bf16.mxu1 %v5301_v37 }
 0x5df   : > { %v1343_v6 = vpop.xlane.xlu1 %1342 }
 0x5e0   : > { %5197 = vrcp.f32 %v1343_v6  ;;  %v5109_v6 = vld [vmem:[%s6425_s7 + $0x78] sm:$0xff]  }
 0x5e3   : > { %v1572_v3 = vpop.xlane.xlu0 %1571  ;;  %v1575_v7 = vpop.xlane.xlu1 %1574 }
 0x5e4   : > { %5199 = vrcp.f32 %v1572_v3  ;;  %v5110_v3 = vld [vmem:[%s6425_s7 + $0x38] sm:$0xff]  }
 0x5e5   : > { %5201 = vrcp.f32 %v1575_v7 }
 0x5e7   : > { %v1804_v9 = vpop.xlane.xlu0 %1803  ;;  %v1578_v14 = vpop.xlane.xlu1 %1577 }
 0x5e8   : > { %5203 = vrcp.f32 %v1578_v14 }
 0x5ea   : > { %v5198_v58 = vpop.eup %5197 }
 0x5eb   : > { %v5008_v21 = vpop.permute.xlu0 %5007  ;;  %v1801_v22 = vpop.xlane.xlu1 %1800  ;;  %v1349_v23 = vmul.f32 %v5198_v58, %v5718_v36 }
 0x5ec   : > { %v5010_v12 = vunpack.i.h.bf16 %v5008_v21  ;;  %v5009_v25 = vunpack.i.l.bf16 %v5008_v21  ;;  %5205 = vrcp.f32 %v1801_v22 }
 0x5ed   : > { %4698 = vmatmul.mubr.msk.f32.gmra.mrb[34].mxu1 %vm1085_vm6, %v1349_v23  ;;  %5207 = vrcp.f32 %v1804_v9 }
 0x5ee   : > { %v5200_v26 = vpop.eup %5199  ;;  %v4946_v27 = vpack.c.bf16 %v5010_v12, %v5009_v25  ;;  %4721 = vmatprep.mubr.msk.f32.mxu1 %vm5302_vm2, %v5303_v38 }
 0x5ef   : > { %v1582_v28 = vmul.f32 %v5200_v26, %v5720_v50  ;;  %v1807_v29 = vpop.xlane.xlu1 %1806  ;;  %v5202_v11 = vpop.eup %5201  ;;  %v5096_v50 = vld [vmem:[%s6425_s7] sm:$0xff]  }
 0x5f0   : > { %v1583_v34 = vmul.f32 %v5202_v11, %v5724_v40  ;;  %5209 = vrcp.f32 %v1807_v29  ;;  %4517 = vmatpush3.bf16.msra.mxu0 %v5096_v50  ;;  %v4253_v50 = vld [vmem:[%s6426_s8] ss:$0 sm:$0xff] }
 0x5f1   : > { %4722 = vmatmul.mubr.msk.f32.vlgmr.msra.gmra.mrb[36].mxu1 %vm1085_vm6, %v1582_v28  ;;  %4518 = vmatprep.subr.bf16.mxu0 %v5097_v24 }
 0x5f2   : > { %4947 = vmatpush3.bf16.msra.mxu1 %v4946_v27  ;;  %4724 = vmatprep.mubr.msk.f32.mxu1 %vm5302_vm2, %v5303_v38  ;;  %v5204_v39 = vpop.eup %5203 }
 0x5f3   : > { %v1821_v30 = vpop.permute.xlu1 %1820  ;;  %4749 = vmatprep.subr.mxu1 %v5303_v38  ;;  %v1584_v2 = vmul.f32 %v5204_v39, %v5726_v52  ;;  %v5098_v52 = vld [vmem:[%s6425_s7 + $0x8] sm:$0xff]  }
 0x5f4   : > { %4519 = vmatpush3.bf16.msra.mxu0 %v5098_v52 }
 0x5f5   : > { %4725 = vmatmul.mubr.msk.f32.gmra.mrb[38].mxu1 %vm1085_vm6, %v1583_v34  ;;  %4520 = vmatprep.subr.bf16.mxu0 %v5099_v47 }
 0x5f6   : > { %4750 = vmatpush3.msk.msra.mxu1 %vm1129_vm5, %v1821_v30  ;;  %4727 = vmatprep.mubr.msk.f32.mxu1 %vm5302_vm2, %v5303_v38  ;;  %v5206_v4 = vpop.eup %5205 }
 0x5f7   : > { %v1811_v5 = vmul.f32 %v5206_v4, %v5738_v46  ;;  %v5208_v62 = vpop.eup %5207 }
 0x5f8   : > { %v1812_v41 = vmul.f32 %v5208_v62, %v5732_v43  ;;  %4521 = vmatpush3.bf16.msra.mxu0 %v5100_v55 }
 0x5f9   : > { %4728 = vmatmul.mubr.msk.f32.gmra.mrb[40].mxu1 %vm1085_vm6, %v1584_v2  ;;  %4522 = vmatprep.subr.bf16.mxu0 %v5101_v57 }
 0x5fa   : > { %4751 = vmatprep.mubr.msk.f32.mxu1 %vm5302_vm2, %v5303_v38  ;;  %v5210_v10 = vpop.eup %5209 }
 0x5fb   : > { %v1813_v16 = vmul.f32 %v5210_v10, %v5742_v59  ;;  %v5102_v59 = vld [vmem:[%s6425_s7 + $0x18] sm:$0xff]  }
 0x5fc   : > { %4523 = vmatpush3.bf16.msra.mxu0 %v5102_v59 }
 0x5fd   : > { %4752 = vmatmul.mubr.msk.f32.vlgmr.msra.gmra.mrb[42].mxu1 %vm1085_vm6, %v1811_v5  ;;  %4524 = vmatprep.subr.bf16.mxu0 %v5103_v49 }
 0x5fe   : > { %4754 = vmatprep.mubr.msk.f32.mxu1 %vm5302_vm2, %v5303_v38 }
 0x600   : > { %4525 = vmatpush3.bf16.msra.mxu0 %v5104_v60 }
 0x601   : > { %4755 = vmatmul.mubr.msk.f32.gmra.mrb[44].mxu1 %vm1085_vm6, %v1812_v41  ;;  %4526 = vmatprep.subr.bf16.mxu0 %v5105_v61 }
 0x602   : > { %4757 = vmatprep.mubr.msk.f32.mxu1 %vm5302_vm2, %v5303_v38 }
 0x604   : > { %4527 = vmatpush3.bf16.msra.mxu0 %v5106_v63 }
 0x605   : > { %4758 = vmatmul.mubr.msk.f32.gmra.mrb[46].mxu1 %vm1085_vm6, %v1813_v16  ;;  %4528 = vmatprep.subr.bf16.mxu0 %v5107_v1 }
 0x608   : > { %4529 = vmatpush3.bf16.msra.mxu0 %v5108_v13 }
 0x609   : > { %4530 = vmatprep.subr.bf16.mxu0 %v5109_v6 }
 0x60c   : > { %4531 = vmatpush3.bf16.msra.mxu0 %v5110_v3 }
 0x614   : > { %v5798_v42 = vpop.f32.mrb[24].mxu1 }
 0x615   : > { %v4663_v32 = vpop.f32.mrb[25].mxu1 }
 0x618   : > { %v5800_v45 = vpop.f32.mrb[26].mxu1 }
 0x619   : > { %v4666_v20 = vpop.f32.mrb[27].mxu1 }
 0x61c   : > { %v5802_v31 = vpop.f32.mrb[28].mxu1 }
 0x61d   : > { %v4669_v36 = vpop.f32.mrb[29].mxu1 }
 0x68f   : > { %v1437_v40 = vpop.f32.mrb[30].mxu1 }
 0x690   : > { %v4693_v53 = vpop.f32.mrb[31].mxu1 }
 0x693   : > { %v1442_v43 = vpop.f32.mrb[32].mxu1 }
 0x694   : > { %v5016_v56 = vpack.i.bf16 %v1442_v43, %v1437_v40  ;;  %v4696_v46 = vpop.f32.mrb[33].mxu1 }
 0x696   : > { %5017 = vrot.lane.b32.xlu1 %v5016_v56, %s5304_s25 }
 0x6c0   : > { %v1447_v15 = vpop.f32.mrb[34].mxu1 }
 0x6c1   : > { %v4699_v54 = vpop.f32.mrb[35].mxu1 }
 0x6c4   : > { %v1663_v17 = vpop.f32.mrb[36].mxu1 }
 0x6c5   : > { %v4723_v18 = vpop.f32.mrb[37].mxu1 }
 0x6c8   : > { %v1668_v19 = vpop.f32.mrb[38].mxu1 }
 0x6c9   : > { %v4726_v8 = vpop.f32.mrb[39].mxu1 }
 0x6cc   : > { %v1673_v7 = vpop.f32.mrb[40].mxu1 }
 0x6cd   : > { %v4729_v9 = vpop.f32.mrb[41].mxu1 }
 0x6d0   : > { %v1901_v14 = vpop.f32.mrb[42].mxu1 }
 0x6d1   : > { %v4753_v58 = vpop.f32.mrb[43].mxu1 }
 0x6d4   : > { %v1906_v21 = vpop.f32.mrb[44].mxu1 }
 0x6d5   : > { %v5011_v22 = vpack.i.bf16 %v1906_v21, %v1901_v14  ;;  %v4756_v23 = vpop.f32.mrb[45].mxu1 }
 0x6d6   : > { %v5112_v23 = vld [vmem:[%s6429_s11 + $0x8] sm:$0xff]  }
 0x6d7   : > { %5012 = vrot.lane.b32.xlu0 %v5011_v22, %s5304_s25  ;;  %v5111_v22 = vld [vmem:[%s6429_s11] sm:$0xff]  }
 0x6d8   : > { %v1911_v12 = vpop.f32.mrb[46].mxu1  ;;  %4760 = vmatprep.subr.bf16.mxu1 %v5111_v22 }
 0x6d9   : > { %v5021_v25 = vpack.i.bf16 %v1447_v15, %v1911_v12  ;;  %v4759_v26 = vpop.f32.mrb[47].mxu1  ;;  %4761 = vmatpush3.bf16.msra.mxu1 %v5111_v22 }
 0x6da   : > { %4762 = vmatprep.subr.bf16.mxu1 %v5112_v23 }
 0x6db   : > { %5022 = vrot.lane.b32.xlu0 %v5021_v25, %s5304_s25 }
 0x6dd   : > { %4763 = vmatpush3.bf16.msra.mxu1 %v5112_v23 }
 0x708   : > { %v5018_v27 = vpop.permute.xlu1 %5017 }
 0x709   : > { %v5020_v28 = vunpack.i.h.bf16 %v5018_v27  ;;  %v5019_v29 = vunpack.i.l.bf16 %v5018_v27 }
 0x70b   : > { %v1940_v11 = vsel %vm986_vm3, %v5800_v45, %v5020_v28  ;;  %v1939_v30 = vsel %vm986_vm3, %v5798_v42, %v5019_v29 }
 0x70c   : > { %v1945_v34 = vpack.c.bf16 %v1940_v11, %v1939_v30 }
 0x749   : > { %v5013_v39 = vpop.permute.xlu0 %5012 }
 0x74a   : > { %v5015_v2 = vunpack.i.h.bf16 %v5013_v39  ;;  %v5014_v4 = vunpack.i.l.bf16 %v5013_v39 }
 0x74c   : > { %v1942_v5 = vsel %vm986_vm3, %v1663_v17, %v5014_v4  ;;  %v1943_v62 = vsel %vm986_vm3, %v1668_v19, %v5015_v2  ;;  %v4270_v2 = vld [vmem:[%s6427_s9] ss:$0 sm:$0xff] }
 0x74d   : > { %v5023_v41 = vpop.permute.xlu0 %5022  ;;  %v1946_v10 = vpack.c.bf16 %v1943_v62, %v1942_v5 }
 0x74e   : > { %v5024_v16 = vunpack.i.l.bf16 %v5023_v41  ;;  %v5025_v32 = vunpack.i.h.bf16 %v5023_v41 }
 0x74f   : > { %2116 = vmatprep.mubr.bf16.mxu0 %v1946_v10  ;;  %v4271_v10 = vld [vmem:[%s6428_s10] ss:$0 sm:$0xff] }
 0x750   : > { %2117 = vmatmul.mubr.bf16.vlgmr.msra.gmra.mrb[32].mxu0 %v1945_v34  ;;  %v1944_v20 = vsel %vm986_vm3, %v1673_v7, %v5024_v16  ;;  %v1941_v42 = vsel %vm986_vm3, %v5802_v31, %v5025_v32 }
 0x751   : > { %v1948_v45 = vpack.c.bf16 %v1944_v20, %v1944_v20  ;;  %v1947_v36 = vpack.c.bf16 %v1941_v42, %v1941_v42 }
 0x753   : > { %2124 = vmatprep.mubr.bf16.mxu0 %v1948_v45 }
 0x758   : > { %2125 = vmatmul.mubr.bf16.gmra.mrb[36].mxu0 %v1947_v36 }
 0x759   : > { %2623 = vmatprep.mubr.bf16.mxu0 %v5300_v0 }
 0x823   : > { %v4532_v48 = vpop.f32.mrb[32].mxu0 }
 0x824   : > { %v4533_v24 = vpop.f32.mrb[33].mxu0 }
 0x825   : > { %v4534_v40 = vadd.f32 %v4533_v24, %v4532_v48  ;;  %v4535_v52 = vpop.f32.mrb[34].mxu0 }
 0x826   : > { %v4536_v53 = vpop.f32.mrb[35].mxu0 }
 0x827   : > { %v2119_v47 = vadd.f32 %v4534_v40, %v4253_v50  ;;  %v4537_v43 = vadd.f32 %v4536_v53, %v4535_v52  ;;  %v5113_v40 = vld [vmem:[%s6431_s13] sm:$0xff]   ;;  %v5114_v52 = vld [vmem:[%s6431_s13 + $0x8] sm:$0xff]   ;;  %v5115_v53 = vld [vmem:[%s6431_s13 + $0x10] sm:$0xff]  }
 0x828   : > { %4768 = vmatprep.subr.bf16.mxu1 %v5113_v40 }
 0x829   : > { %v5869_v55 = vadd.f32 %v2119_v47, %v5453_v33  ;;  %v2122_v56 = vadd.f32 %v4537_v43, %v4253_v50  ;;  %v5116_v47 = vld [vmem:[%s6431_s13 + $0x18] sm:$0xff]   ;;  %v4272_v43 = vld [vmem:[%s6430_s12] ss:$0 sm:$0xff] }
 0x82b   : > { %v5872_v31 = vadd.f32 %v2122_v56, %v5455_v35  ;;  %v4538_v46 = vpop.f32.mrb[36].mxu0  ;;  %v2137_v57 = vsel %vm690_vm0, %v5869_v55, 0.0 }
 0x82c   : > { %2138 = vadd.xlane.f32.xlu1 %v2137_v57  ;;  %v4539_v59 = vpop.f32.mrb[37].mxu0 }
 0x82d   : > { %v4540_v49 = vadd.f32 %v4539_v59, %v4538_v46  ;;  %v4541_v60 = vpop.f32.mrb[38].mxu0  ;;  %v2140_v61 = vsel %vm690_vm0, %v5872_v31, 0.0 }
 0x82e   : > { %2141 = vadd.xlane.f32.xlu0 %v2140_v61  ;;  %v4542_v63 = vpop.f32.mrb[39].mxu0 }
 0x82f   : > { %v2127_v1 = vadd.f32 %v4540_v49, %v4253_v50 }
 0x831   : > { %v5879_v33 = vadd.f32 %v2127_v1, %v5464_v44 }
 0x833   : > { %v2143_v35 = vsel %vm697_vm1, %v5879_v33, 0.0 }
 0x834   : > { %2144 = vadd.xlane.f32.xlu0 %v2143_v35 }
 0x8b9   : > { %v2139_v13 = vpop.xlane.xlu1 %2138 }
 0x8ba   : > { %v2146_v15 = vmul.f32 0.03125, %v2139_v13 }
 0x8bb   : > { %v2142_v54 = vpop.xlane.xlu0 %2141 }
 0x8bc   : > { %v2149_v17 = vsub.f32 %v5869_v55, %v2146_v15  ;;  %v2147_v18 = vmul.f32 0.03125, %v2142_v54 }
 0x8be   : > { %v2150_v19 = vsub.f32 %v5872_v31, %v2147_v18  ;;  %v2152_v8 = vmul.f32 %v2149_v17, %v2149_v17 }
 0x8c0   : > { %v2155_v6 = vsel %vm690_vm0, %v2152_v8, 0.0  ;;  %v2153_v3 = vmul.f32 %v2150_v19, %v2150_v19 }
 0x8c1   : > { %2156 = vadd.xlane.f32.xlu0 %v2155_v6  ;;  %v2145_v7 = vpop.xlane.xlu0 %2144 }
 0x8c2   : > { %v2148_v44 = vmul.f32 0.03125, %v2145_v7  ;;  %v2158_v9 = vsel %vm690_vm0, %v2153_v3, 0.0 }
 0x8c3   : > { %2159 = vadd.xlane.f32.xlu1 %v2158_v9 }
 0x8c4   : > { %v2151_v14 = vsub.f32 %v5879_v33, %v2148_v44 }
 0x8c6   : > { %v2154_v58 = vmul.f32 %v2151_v14, %v2151_v14 }
 0x8c8   : > { %v2161_v21 = vsel %vm697_vm1, %v2154_v58, 0.0 }
 0x8c9   : > { %2162 = vadd.xlane.f32.xlu0 %v2161_v21 }
 0x94e   : > { %v2157_v12 = vpop.xlane.xlu0 %2156 }
 0x94f   : > { %v2164_v25 = vmul.f32 0.03125, %v2157_v12 }
 0x950   : > { %v2160_v26 = vpop.xlane.xlu1 %2159 }
 0x951   : > { %v2167_v27 = vadd.f32 1e-05, %v2164_v25  ;;  %v2165_v28 = vmul.f32 0.03125, %v2160_v26 }
 0x953   : > { %5211 = vrsqrt.f32 %v2167_v27  ;;  %v2168_v29 = vadd.f32 1e-05, %v2165_v28 }
 0x955   : > { %5213 = vrsqrt.f32 %v2168_v29 }
 0x956   : > { %v2163_v11 = vpop.xlane.xlu0 %2162 }
 0x957   : > { %v2166_v30 = vmul.f32 0.03125, %v2163_v11 }
 0x959   : > { %v2169_v34 = vadd.f32 1e-05, %v2166_v30 }
 0x95b   : > { %5215 = vrsqrt.f32 %v2169_v34 }
 0x95d   : > { %v5212_v39 = vpop.eup %5211 }
 0x95e   : > { %v2173_v4 = vmul.f32 %v5212_v39, %v2149_v17  ;;  %v4277_v39 = vld [vmem:[%s6432_s14] ss:$0 sm:$0xff] }
 0x95f   : > { %v5214_v5 = vpop.eup %5213 }
 0x960   : > { %v2174_v62 = vmul.f32 %v5214_v5, %v2150_v19  ;;  %v2182_v41 = vmul.f32 %v4270_v2, %v2173_v4 }
 0x962   : > { %v2183_v16 = vmul.f32 %v4270_v2, %v2174_v62  ;;  %v2191_v32 = vadd.f32 %v4271_v10, %v2182_v41 }
 0x964   : > { %v2192_v20 = vadd.f32 %v4271_v10, %v2183_v16 }
 0x965   : > { %v5216_v45 = vpop.eup %5215 }
 0x966   : > { %v2175_v42 = vmul.f32 %v5216_v45, %v2151_v14  ;;  %v2194_v36 = vpack.c.bf16 %v2192_v20, %v2191_v32 }
 0x968   : > { %v2184_v48 = vmul.f32 %v4270_v2, %v2175_v42  ;;  %4764 = vmatprep.mubr.msk.bf16.mxu1 %vm690_vm0, %v2194_v36 }
 0x96a   : > { %v2193_v50 = vadd.f32 %v4271_v10, %v2184_v48 }
 0x96c   : > { %v2195_v24 = vpack.c.bf16 %v2193_v50, %v2193_v50 }
 0x96e   : > { %4765 = vmatmul.mubr.msk.bf16.vlgmr.msra.gmra.mrb[48].mxu1 %vm690_vm0, %v2195_v24 }
 0x96f   : > { %4769 = vmatpush3.bf16.msra.mxu1 %v5113_v40 }
 0x970   : > { %4770 = vmatprep.subr.bf16.mxu1 %v5114_v52 }
 0x973   : > { %4771 = vmatpush3.bf16.msra.mxu1 %v5114_v52 }
 0x974   : > { %4772 = vmatprep.subr.bf16.mxu1 %v5115_v53 }
 0x977   : > { %4773 = vmatpush3.bf16.msra.mxu1 %v5115_v53 }
 0x978   : > { %4774 = vmatprep.subr.bf16.mxu1 %v5116_v47 }
 0x97b   : > { %4775 = vmatpush3.bf16.msra.mxu1 %v5116_v47 }
 0xa41   : > { %v4766_v56 = vpop.f32.mrb[48].mxu1 }
 0xa42   : > { %v2268_v46 = vadd.f32 %v4766_v56, %v4272_v43  ;;  %v2259_v57 = vpop.f32.mrb[49].mxu1 }
 0xa43   : > { %v2260_v59 = vadd.f32 %v4272_v43, %v2259_v57  ;;  %v4767_v49 = vpop.f32.mrb[50].mxu1 }
 0xa44   : > { %v2275_v60 = vmul.f32 %v2268_v46, %v2268_v46  ;;  %v2262_v61 = vpop.f32.mrb[51].mxu1 }
 0xa45   : > { %v2273_v63 = vmul.f32 %v2260_v59, %v2260_v59  ;;  %v2263_v1 = vadd.f32 %v4272_v43, %v2262_v61  ;;  %v5122_v61 = vld [vmem:[%s6424_s6 + $0x64] ss:$24 sps:$4 sm:$0xff]  }
 0xa46   : > { %v2278_v35 = vmul.f32 %v2275_v60, %v2268_v46  ;;  %v5119_v60 = vld [vmem:[%s6424_s6 + $0x6c] ss:$24 sps:$4 sm:$0xff]   ;;  %2540 = vmatprep.subr.bf16.mxu1 %v5122_v61 }
 0xa47   : > { %v2276_v13 = vmul.f32 %v2273_v63, %v2260_v59  ;;  %v2274_v15 = vmul.f32 %v2263_v1, %v2263_v1  ;;  %v5117_v63 = vld [vmem:[%s6424_s6 + $0x68] ss:$24 sps:$4 sm:$0xff]   ;;  %2591 = vmatprep.subr.bf16.mxu0 %v5119_v60 }
 0xa48   : > { %v2281_v54 = vmul.f32 0.044715, %v2278_v35  ;;  %2592 = vmatpush1.bf16.msra.mxu0 %v5117_v63  ;;  %v5123_v35 = vld [vmem:[%s6424_s6 + $0x90] ss:$24 sps:$4 sm:$0xff]  }
 0xa49   : > { %v2279_v17 = vmul.f32 0.044715, %v2276_v13  ;;  %v2277_v18 = vmul.f32 %v2274_v15, %v2263_v1  ;;  %v5125_v13 = vld [vmem:[%s6424_s6 + $0x94] ss:$24 sps:$4 sm:$0xff]   ;;  %v5126_v15 = vld [vmem:[%s6424_s6 + $0x98] ss:$24 sps:$4 sm:$0xff]  }
 0xa4a   : > { %v2284_v19 = vadd.f32 %v2281_v54, %v2268_v46  ;;  %v5128_v54 = vld [vmem:[%s6424_s6 + $0x9c] ss:$24 sps:$4 sm:$0xff]  }
 0xa4b   : > { %v2282_v8 = vadd.f32 %v2279_v17, %v2260_v59  ;;  %v2280_v6 = vmul.f32 0.044715, %v2277_v18  ;;  %2593 = vmatprep.subr.bf16.mxu0 %v5128_v54  ;;  %v5131_v17 = vld [vmem:[%s6424_s6 + $0x74] ss:$24 sps:$4 sm:$0xff]  }
 0xa4c   : > { %v2287_v3 = vmul.f32 0.7978846, %v2284_v19  ;;  %2594 = vmatpush1.bf16.msra.mxu0 %v5126_v15 }
 0xa4d   : > { %v2285_v7 = vmul.f32 0.7978846, %v2282_v8  ;;  %v2283_v44 = vadd.f32 %v2280_v6, %v2263_v1  ;;  %4948 = vmatprep.subr.bf16.mxu0 %v5301_v37 }
 0xa4e   : > { %5217 = vtanh.f32 %v2287_v3 }
 0xa4f   : > { %5219 = vtanh.f32 %v2285_v7  ;;  %v2286_v9 = vmul.f32 0.7978846, %v2283_v44 }
 0xa51   : > { %5221 = vtanh.f32 %v2286_v9 }
 0xa58   : > { %v5218_v14 = vpop.eup %5217 }
 0xa59   : > { %v5220_v58 = vpop.eup %5219  ;;  %v2293_v21 = vadd.f32 1.0, %v5218_v14 }
 0xa5a   : > { %v2291_v22 = vadd.f32 1.0, %v5220_v58 }
 0xa5b   : > { %v5222_v23 = vpop.eup %5221  ;;  %v2296_v12 = vmul.f32 0.5, %v2293_v21  ;;  %v4286_v21 = vld [vmem:[%s6422_s4 + $0x1] ss:$0 sm:$0xff] }
 0xa5c   : > { %v2294_v25 = vmul.f32 0.5, %v2291_v22  ;;  %v2292_v26 = vadd.f32 1.0, %v5222_v23 }
 0xa5d   : > { %v2299_v28 = vmul.f32 %v2296_v12, %v2268_v46 }
 0xa5e   : > { %v2295_v27 = vmul.f32 0.5, %v2292_v26  ;;  %v2297_v29 = vmul.f32 %v2294_v25, %v2260_v59 }
 0xa5f   : > { %v2301_v34 = vpack.c.bf16 %v2299_v28, %v2299_v28 }
 0xa60   : > { %v2298_v11 = vmul.f32 %v2295_v27, %v2263_v1  ;;  %v5120_v1 = vld [vmem:[%s6424_s6 + $0x60] ss:$24 sps:$4 sm:$0xff]  }
 0xa61   : > { %v4287_v27 = vld [vmem:[%s6423_s5 + $0x1] ss:$0 sm:$0xff] }
 0xa62   : > { %v2300_v30 = vpack.c.bf16 %v2298_v11, %v2297_v29 }
 0xa64   : > { %4776 = vmatprep.mubr.msk.bf16.mxu1 %vm986_vm3, %v2300_v30 }
 0xa65   : > { %4777 = vmatmul.mubr.msk.bf16.vlgmr.msra.gmra.mrb[52].mxu1 %vm986_vm3, %v2301_v34 }
 0xa66   : > { %2572 = vmatprep.mubr.bf16.mxu1 %v5300_v0  ;;  %2541 = vmatpush1.bf16.msra.mxu1 %v5120_v1 }
 0xa67   : > { %2542 = vmatprep.subr.bf16.mxu1 %v5125_v13 }
 0xa6a   : > { %2543 = vmatpush1.bf16.msra.mxu1 %v5123_v35 }
 0xa6b   : > { %2642 = vmatprep.subr.bf16.mxu1 %v5131_v17 }
 0xb38   : > { %v4778_v2 = vpop.f32.mrb[52].mxu1 }
 0xb39   : > { %v2381_v4 = vpop.f32.mrb[53].mxu1  ;;  %v2390_v5 = vadd.f32 %v4778_v2, %v4277_v39  ;;  %v5129_v2 = vld [vmem:[%s6424_s6 + $0x70] ss:$24 sps:$4 sm:$0xff]  }
 0xb3a   : > { %v2382_v62 = vadd.f32 %v4277_v39, %v2381_v4  ;;  %v4779_v41 = vpop.f32.mrb[54].mxu1  ;;  %v5134_v4 = vld [vmem:[%s6424_s6 + $0xa4] ss:$24 sps:$4 sm:$0xff]  }
 0xb3b   : > { %v2384_v10 = vpop.f32.mrb[55].mxu1  ;;  %v5928_v20 = vadd.f32 %v2390_v5, %v5879_v33 }
 0xb3c   : > { %v5925_v16 = vadd.f32 %v2382_v62, %v5869_v55  ;;  %v2385_v32 = vadd.f32 %v4277_v39, %v2384_v10  ;;  %v5132_v62 = vld [vmem:[%s6424_s6 + $0xa0] ss:$24 sps:$4 sm:$0xff]  }
 0xb3d   : > { %v2408_v48 = vsel %vm697_vm1, %v5928_v20, 0.0 }
 0xb3e   : > { %v5931_v45 = vadd.f32 %v2385_v32, %v5872_v31  ;;  %v2402_v42 = vsel %vm690_vm0, %v5925_v16, 0.0 }
 0xb3f   : > { %2403 = vadd.xlane.f32.xlu1 %v2402_v42 }
 0xb40   : > { %v2405_v36 = vsel %vm690_vm0, %v5931_v45, 0.0 }
 0xb41   : > { %2406 = vadd.xlane.f32.xlu0 %v2405_v36 }
 0xb43   : > { %2409 = vadd.xlane.f32.xlu1 %v2408_v48 }
 0xbcc   : > { %v2404_v55 = vpop.xlane.xlu1 %2403 }
 0xbcd   : > { %v2411_v50 = vmul.f32 0.03125, %v2404_v55 }
 0xbce   : > { %v2407_v24 = vpop.xlane.xlu0 %2406 }
 0xbcf   : > { %v2414_v33 = vsub.f32 %v5925_v16, %v2411_v50  ;;  %v2412_v40 = vmul.f32 0.03125, %v2407_v24 }
 0xbd0   : > { %v2410_v31 = vpop.xlane.xlu1 %2409 }
 0xbd1   : > { %v2415_v52 = vsub.f32 %v5931_v45, %v2412_v40  ;;  %v2413_v53 = vmul.f32 0.03125, %v2410_v31  ;;  %v2417_v47 = vmul.f32 %v2414_v33, %v2414_v33 }
 0xbd3   : > { %v2416_v43 = vsub.f32 %v5928_v20, %v2413_v53  ;;  %v2420_v56 = vsel %vm690_vm0, %v2417_v47, 0.0  ;;  %v2418_v46 = vmul.f32 %v2415_v52, %v2415_v52 }
 0xbd4   : > { %2421 = vadd.xlane.f32.xlu0 %v2420_v56 }
 0xbd5   : > { %v2423_v57 = vsel %vm690_vm0, %v2418_v46, 0.0  ;;  %v2419_v59 = vmul.f32 %v2416_v43, %v2416_v43 }
 0xbd6   : > { %2424 = vadd.xlane.f32.xlu1 %v2423_v57 }
 0xbd7   : > { %v2426_v49 = vsel %vm697_vm1, %v2419_v59, 0.0 }
 0xbd8   : > { %2427 = vadd.xlane.f32.xlu0 %v2426_v49 }
 0xc61   : > { %v2422_v18 = vpop.xlane.xlu0 %2421 }
 0xc62   : > { %v2429_v19 = vmul.f32 0.03125, %v2422_v18 }
 0xc63   : > { %v2425_v8 = vpop.xlane.xlu1 %2424 }
 0xc64   : > { %v2432_v6 = vadd.f32 1e-05, %v2429_v19  ;;  %v2430_v3 = vmul.f32 0.03125, %v2425_v8 }
 0xc65   : > { %v2428_v7 = vpop.xlane.xlu0 %2427 }
 0xc66   : > { %5223 = vrsqrt.f32 %v2432_v6  ;;  %v2433_v44 = vadd.f32 1e-05, %v2430_v3  ;;  %v2431_v9 = vmul.f32 0.03125, %v2428_v7 }
 0xc68   : > { %5225 = vrsqrt.f32 %v2433_v44  ;;  %v2434_v14 = vadd.f32 1e-05, %v2431_v9 }
 0xc6a   : > { %5227 = vrsqrt.f32 %v2434_v14 }
 0xc70   : > { %v5224_v58 = vpop.eup %5223 }
 0xc71   : > { %v2438_v22 = vmul.f32 %v5224_v58, %v2414_v33 }
 0xc72   : > { %v5226_v23 = vpop.eup %5225 }
 0xc73   : > { %v2447_v12 = vmul.f32 %v4286_v21, %v2438_v22  ;;  %v2439_v25 = vmul.f32 %v5226_v23, %v2415_v52 }
 0xc74   : > { %v5228_v26 = vpop.eup %5227 }
 0xc75   : > { %v2448_v28 = vmul.f32 %v4286_v21, %v2439_v25  ;;  %v2440_v29 = vmul.f32 %v5228_v26, %v2416_v43  ;;  %v2456_v11 = vadd.f32 %v4287_v27, %v2447_v12 }
 0xc77   : > { %v2457_v30 = vadd.f32 %v4287_v27, %v2448_v28  ;;  %v2449_v39 = vmul.f32 %v4286_v21, %v2440_v29 }
 0xc79   : > { %v2459_v34 = vpack.c.bf16 %v2457_v30, %v2456_v11  ;;  %v2458_v5 = vadd.f32 %v4287_v27, %v2449_v39 }
 0xc7b   : > { %4312 = vmatmul.mubr.msk.bf16.vlgmr.msra.gmra.mrb[56].mxu1 %vm690_vm0, %v2459_v34  ;;  %4314 = vmatmul.mubr.msk.bf16.vlgmr.msra.gmra.mrb[40].mxu0 %vm690_vm0, %v2459_v34  ;;  %v2460_v41 = vpack.c.bf16 %v2458_v5, %v2458_v5 }
 0xc7c   : > { %2582 = vmatprep.mubr.bf16.mxu1 %v5300_v0  ;;  %2633 = vmatprep.mubr.bf16.mxu0 %v5300_v0 }
 0xc7d   : > { %2643 = vmatpush1.bf16.msra.mxu1 %v5129_v2 }
 0xc7e   : > { %2644 = vmatprep.subr.bf16.mxu1 %v5134_v4  ;;  %v5289_v4 = vld [vmem:[%s6420_s2] sm:$0xff] }
 0xc81   : > { %2645 = vmatpush1.bf16.msra.mxu1 %v5132_v62 }
 0xc82   : > { %4955 = vmatprep.subr.bf16.mxu1 %v5301_v37 }
 0xc83   : > { %4313 = vmatmul.mubr.msk.bf16.gmra.mrb[60].mxu1 %vm690_vm0, %v2460_v41  ;;  %4315 = vmatmul.mubr.msk.bf16.gmra.mrb[44].mxu0 %vm690_vm0, %v2460_v41 }
 0xc84   : > { %2674 = vmatprep.mubr.bf16.mxu1 %v5300_v0  ;;  %4786 = vmatprep.mubr.msk.f32.mxu0 %vm5302_vm2, %v5303_v38 }
 0xc8b   : > { %4316 = vmatmul.mubr.msk.bf16.vlgmr.msra.gmra.mrb[64].mxu1 %vm690_vm0, %v2459_v34 }
 0xc8c   : > { %2684 = vmatprep.mubr.bf16.mxu1 %v5300_v0 }
 0xc93   : > { %4317 = vmatmul.mubr.msk.bf16.gmra.mrb[68].mxu1 %vm690_vm0, %v2460_v41 }
 0xc94   : > { %4816 = vmatprep.mubr.msk.f32.mxu1 %vm5302_vm2, %v5303_v38 }
 0xd4e   : > { %v2574_v10 = vpop.f32.mrb[56].mxu1  ;;  %v2625_v32 = vpop.f32.mrb[40].mxu0 }
 0xd4f   : > { %v2576_v42 = vpop.f32.mrb[57].mxu1  ;;  %v6003_v36 = vpop.f32.mrb[41].mxu0  ;;  %v2693_v52 = vmul.f32 0.125, %v2574_v10 }
 0xd50   : > { %v2578_v48 = vpop.f32.mrb[58].mxu1  ;;  %v2629_v55 = vpop.f32.mrb[42].mxu0  ;;  %v3157_v61 = vmul.f32 0.125, %v2576_v42 }
 0xd51   : > { %v5026_v50 = vpack.i.bf16 %v2629_v55, %v2625_v32  ;;  %v4949_v24 = vpack.c.bf16 %v2629_v55, %v2625_v32  ;;  %v2580_v33 = vpop.f32.mrb[59].mxu1  ;;  %v6005_v40 = vpop.f32.mrb[43].mxu0  ;;  %v2694_v60 = vmul.f32 0.125, %v2578_v48  ;;  %v5290_v32 = vld [vmem:[%s6420_s2 + $0x8] sm:$0xff] }
 0xd52   : > { %v5031_v0 = vpack.i.bf16 %v6005_v40, %v6003_v36  ;;  %v4963_v31 = vpack.c.bf16 %v6005_v40, %v6003_v36  ;;  %v3158_v6 = vmul.f32 0.125, %v2580_v33 }
 0xd53   : > { %5027 = vrot.lane.b32.xlu1 %v5026_v50, %s5304_s25  ;;  %4951 = vmatpush3.bf16.xpose.msk.msra.mxu0 %vm5538_vm4, %v4949_v24  ;;  %v5291_v50 = vld [vmem:[%s6420_s2 + $0x10] sm:$0xf] }
 0xd54   : > { %4784 = vmatprep.subr.mxu0 %v5303_v38 }
 0xd56   : > { %v2584_v53 = vpop.f32.mrb[60].mxu1  ;;  %v2635_v47 = vpop.f32.mrb[44].mxu0 }
 0xd57   : > { %2929 = vrot.lane.b32.xlu0 %v2635_v47, %s5304_s25  ;;  %v6016_v43 = vpop.f32.mrb[45].mxu0  ;;  %2919 = vrot.lane.b32.xlu1 %v2693_v52, %s5304_s25  ;;  %v2586_v56 = vpop.f32.mrb[61].mxu1  ;;  %v2695_v63 = vmul.f32 0.125, %v2584_v53 }
 0xd58   : > { %v2588_v46 = vpop.f32.mrb[62].mxu1  ;;  %v2639_v57 = vpop.f32.mrb[46].mxu0  ;;  %v3159_v15 = vmul.f32 0.125, %v2586_v56 }
 0xd59   : > { %v2589_v59 = vpop.f32.mrb[63].mxu1  ;;  %v2640_v49 = vpop.f32.mrb[47].mxu0 }
 0xd5b   : > { %5032 = vrot.lane.b32.xlu0 %v5031_v0, %s5304_s25  ;;  %4785 = vmatpush3.xpose.msk.msra.mxu0 %vm986_vm3, %v2635_v47 }
 0xd5c   : > { %2921 = vrot.lane.b32.xlu1 %v2694_v60, %s5304_s25  ;;  %4952 = vmatprep.subr.bf16.mxu0 %v5301_v37 }
 0xd5e   : > { %v6023_v1 = vpop.f32.mrb[64].mxu1  ;;  %4787 = vmatmul.mubr.msk.f32.vlgmr.msra.gmra.mrb[48].mxu0 %vm986_vm3, %v2693_v52 }
 0xd5f   : > { %3383 = vrot.lane.b32.xlu0 %v3157_v61, %s5304_s25  ;;  %v6027_v35 = vpop.f32.mrb[65].mxu1  ;;  %4789 = vmatprep.mubr.msk.f32.mxu0 %vm5302_vm2, %v5303_v38 }
 0xd60   : > { %2923 = vrot.lane.b32.xlu1 %v2695_v63, %s5304_s25  ;;  %v6032_v13 = vpop.f32.mrb[66].mxu1 }
 0xd61   : > { %v5036_v54 = vpack.i.bf16 %v6032_v13, %v6023_v1  ;;  %v4953_v17 = vpack.c.bf16 %v6032_v13, %v6023_v1  ;;  %v6038_v18 = vpop.f32.mrb[67].mxu1 }
 0xd62   : > { %v5041_v19 = vpack.i.bf16 %v6038_v18, %v6027_v35  ;;  %v4967_v8 = vpack.c.bf16 %v6038_v18, %v6027_v35  ;;  %4790 = vmatmul.mubr.msk.f32.gmra.mrb[50].mxu0 %vm986_vm3, %v2694_v60 }
 0xd63   : > { %3387 = vrot.lane.b32.xlu0 %v3159_v15, %s5304_s25  ;;  %4954 = vmatpush3.bf16.msra.mxu0 %v4953_v17 }
 0xd64   : > { %3393 = vrot.lane.b32.xlu1 %v6016_v43, %s5304_s25  ;;  %4792 = vmatprep.mubr.msk.f32.mxu0 %vm5302_vm2, %v5303_v38 }
 0xd65   : > { %4799 = vmatprep.subr.mxu0 %v5303_v38 }
 0xd66   : > { %v6051_v3 = vpop.f32.mrb[68].mxu1  ;;  %4793 = vmatmul.mubr.msk.f32.gmra.mrb[52].mxu0 %vm986_vm3, %v2695_v63 }
 0xd67   : > { %v6054_v7 = vpop.f32.mrb[69].mxu1  ;;  %4800 = vmatpush3.msk.msra.mxu0 %vm1129_vm5, %v6051_v3  ;;  %4801 = vmatprep.mubr.msk.f32.mxu0 %vm5302_vm2, %v5303_v38 }
 0xd68   : > { %3385 = vrot.lane.b32.xlu1 %v3158_v6, %s5304_s25  ;;  %v2690_v44 = vpop.f32.mrb[70].mxu1  ;;  %4959 = vmatprep.subr.bf16.mxu0 %v5301_v37 }
 0xd69   : > { %v2691_v9 = vpop.f32.mrb[71].mxu1 }
 0xdc5   : > { %v5028_v14 = vpop.permute.xlu1 %5027 }
 0xdc6   : > { %v5030_v58 = vunpack.i.h.bf16 %v5028_v14  ;;  %v5029_v21 = vunpack.i.l.bf16 %v5028_v14 }
 0xdc8   : > { %v4956_v22 = vpack.c.bf16 %v5030_v58, %v5029_v21 }
 0xdc9   : > { %v2920_v23 = vpop.permute.xlu1 %2919  ;;  %v2930_v12 = vpop.permute.xlu0 %2929 }
 0xdca   : > { %4958 = vmatpush3.bf16.xpose.msk.msra.mxu1 %vm5538_vm4, %v4956_v22 }
 0xdcb   : > { %4814 = vmatprep.subr.mxu1 %v5303_v38 }
 0xdcd   : > { %v5033_v26 = vpop.permute.xlu0 %5032 }
 0xdce   : > { %v2922_v25 = vpop.permute.xlu1 %2921  ;;  %v5035_v27 = vunpack.i.h.bf16 %v5033_v26  ;;  %v5034_v28 = vunpack.i.l.bf16 %v5033_v26 }
 0xdd0   : > { %v4970_v11 = vpack.c.bf16 %v5035_v27, %v5034_v28 }
 0xdd1   : > { %v3384_v51 = vpop.permute.xlu0 %3383 }
 0xdd2   : > { %4815 = vmatpush3.xpose.msk.msra.mxu1 %vm986_vm3, %v2930_v12  ;;  %v2924_v29 = vpop.permute.xlu1 %2923 }
 0xdd3   : > { %4962 = vmatprep.subr.bf16.mxu1 %v5301_v37 }
 0xdd5   : > { %4817 = vmatmul.mubr.msk.f32.vlgmr.msra.gmra.mrb[72].mxu1 %vm986_vm3, %v2920_v23  ;;  %v3388_v39 = vpop.permute.xlu0 %3387 }
 0xdd6   : > { %4965 = vmatpush3.bf16.xpose.msk.msra.mxu1 %vm5538_vm4, %v4963_v31  ;;  %4819 = vmatprep.mubr.msk.f32.mxu1 %vm5302_vm2, %v5303_v38  ;;  %v3394_v30 = vpop.permute.xlu1 %3393 }
 0xdd7   : > { %4844 = vmatprep.subr.mxu1 %v5303_v38 }
 0xdd9   : > { %4820 = vmatmul.mubr.msk.f32.gmra.mrb[74].mxu1 %vm986_vm3, %v2922_v25 }
 0xdda   : > { %4822 = vmatprep.mubr.msk.f32.mxu1 %vm5302_vm2, %v5303_v38  ;;  %v3386_v34 = vpop.permute.xlu1 %3385 }
 0xddd   : > { %4823 = vmatmul.mubr.msk.f32.gmra.mrb[76].mxu1 %vm986_vm3, %v2924_v29 }
 0xdde   : > { %4845 = vmatpush3.xpose.msk.msra.mxu1 %vm986_vm3, %v6016_v43  ;;  %4846 = vmatprep.mubr.msk.f32.mxu1 %vm5302_vm2, %v5303_v38 }
 0xddf   : > { %4969 = vmatprep.subr.bf16.mxu1 %v5301_v37 }
 0xde1   : > { %4847 = vmatmul.mubr.msk.f32.vlgmr.msra.gmra.mrb[78].mxu1 %vm986_vm3, %v3157_v61 }
 0xde2   : > { %4972 = vmatpush3.bf16.xpose.msk.msra.mxu1 %vm5538_vm4, %v4970_v11  ;;  %4849 = vmatprep.mubr.msk.f32.mxu1 %vm5302_vm2, %v5303_v38 }
 0xde3   : > { %4874 = vmatprep.subr.mxu1 %v5303_v38 }
 0xde5   : > { %4850 = vmatmul.mubr.msk.f32.gmra.mrb[80].mxu1 %vm986_vm3, %v3158_v6 }
 0xde6   : > { %4852 = vmatprep.mubr.msk.f32.mxu1 %vm5302_vm2, %v5303_v38 }
 0xde9   : > { %4853 = vmatmul.mubr.msk.f32.gmra.mrb[82].mxu1 %vm986_vm3, %v3159_v15 }
 0xdea   : > { %4875 = vmatpush3.xpose.msk.msra.mxu1 %vm986_vm3, %v3394_v30  ;;  %4876 = vmatprep.mubr.msk.f32.mxu1 %vm5302_vm2, %v5303_v38 }
 0xded   : > { %4877 = vmatmul.mubr.msk.f32.vlgmr.msra.gmra.mrb[84].mxu1 %vm986_vm3, %v3384_v51 }
 0xdee   : > { %4879 = vmatprep.mubr.msk.f32.mxu1 %vm5302_vm2, %v5303_v38 }
 0xdf1   : > { %4880 = vmatmul.mubr.msk.f32.gmra.mrb[86].mxu1 %vm986_vm3, %v3386_v34 }
 0xdf2   : > { %4882 = vmatprep.mubr.msk.f32.mxu1 %vm5302_vm2, %v5303_v38 }
 0xdf5   : > { %4883 = vmatmul.mubr.msk.f32.gmra.mrb[88].mxu1 %vm986_vm3, %v3388_v39 }
 0xe31   : > { %v2780_v2 = vpop.f32.mrb[48].mxu0 }
 0xe32   : > { %v2781_v5 = vadd.f32 %v5289_v4, %v2780_v2  ;;  %v4788_v62 = vpop.f32.mrb[49].mxu0 }
 0xe34   : > { %v2794_v41 = vsel %vm1085_vm6, %v2781_v5, -inf }
 0xe35   : > { %v2785_v10 = vpop.f32.mrb[50].mxu0  ;;  %2795 = vmax.xlane.f32.xlu1 %v2794_v41 }
 0xe36   : > { %v2786_v42 = vadd.f32 %v5290_v32, %v2785_v10  ;;  %v4791_v36 = vpop.f32.mrb[51].mxu0 }
 0xe38   : > { %v2797_v48 = vsel %vm1085_vm6, %v2786_v42, -inf }
 0xe39   : > { %v2790_v55 = vpop.f32.mrb[52].mxu0  ;;  %2798 = vmax.xlane.f32.xlu0 %v2797_v48 }
 0xe3a   : > { %v6116_v24 = vadd.f32 %v5291_v50, %v2790_v55  ;;  %v4794_v33 = vpop.f32.mrb[53].mxu0 }
 0xe3c   : > { %v2800_v40 = vsel %vm1092_vm7, %v6116_v24, -inf }
 0xe3d   : > { %2801 = vmax.xlane.f32.xlu0 %v2800_v40 }
 0xea8   : > { %v3009_v0 = vpop.f32.mrb[72].mxu1 }
 0xea9   : > { %v6120_v31 = vadd.f32 %v5289_v4, %v3009_v0  ;;  %v4818_v52 = vpop.f32.mrb[73].mxu1 }
 0xeab   : > { %v3023_v53 = vsel %vm1085_vm6, %v6120_v31, -inf }
 0xeac   : > { %3024 = vmax.xlane.f32.xlu0 %v3023_v53  ;;  %v3014_v47 = vpop.f32.mrb[74].mxu1 }
 0xead   : > { %v6124_v43 = vadd.f32 %v5290_v32, %v3014_v47  ;;  %v4821_v56 = vpop.f32.mrb[75].mxu1 }
 0xeaf   : > { %v3026_v46 = vsel %vm1085_vm6, %v6124_v43, -inf }
 0xeb0   : > { %3027 = vmax.xlane.f32.xlu1 %v3026_v46  ;;  %v3019_v57 = vpop.f32.mrb[76].mxu1 }
 0xeb1   : > { %v6128_v59 = vadd.f32 %v5291_v50, %v3019_v57  ;;  %v4824_v49 = vpop.f32.mrb[77].mxu1 }
 0xeb3   : > { %v3029_v60 = vsel %vm1092_vm7, %v6128_v59, -inf }
 0xeb4   : > { %3030 = vmax.xlane.f32.xlu0 %v3029_v60  ;;  %v3244_v61 = vpop.f32.mrb[78].mxu1 }
 0xeb5   : > { %v6132_v63 = vadd.f32 %v5289_v4, %v3244_v61  ;;  %v4848_v15 = vpop.f32.mrb[79].mxu1 }
 0xeb7   : > { %v3258_v17 = vsel %vm1085_vm6, %v6132_v63, -inf }
 0xeb8   : > { %3259 = vmax.xlane.f32.xlu1 %v3258_v17  ;;  %v3249_v6 = vpop.f32.mrb[80].mxu1 }
 0xeb9   : > { %v6136_v44 = vadd.f32 %v5290_v32, %v3249_v6  ;;  %v4851_v9 = vpop.f32.mrb[81].mxu1 }
 0xebb   : > { %v3261_v14 = vsel %vm1085_vm6, %v6136_v44, -inf }
 0xebc   : > { %3262 = vmax.xlane.f32.xlu0 %v3261_v14  ;;  %v3254_v58 = vpop.f32.mrb[82].mxu1 }
 0xebd   : > { %v6140_v21 = vadd.f32 %v5291_v50, %v3254_v58  ;;  %v4854_v22 = vpop.f32.mrb[83].mxu1 }
 0xebf   : > { %v3264_v23 = vsel %vm1092_vm7, %v6140_v21, -inf }
 0xec0   : > { %3265 = vmax.xlane.f32.xlu1 %v3264_v23  ;;  %v3473_v12 = vpop.f32.mrb[84].mxu1 }
 0xec1   : > { %v6144_v25 = vadd.f32 %v5289_v4, %v3473_v12  ;;  %v4878_v26 = vpop.f32.mrb[85].mxu1 }
 0xec2   : > { %v2796_v27 = vpop.xlane.xlu1 %2795 }
 0xec3   : > { %v2803_v28 = vsub.f32 %v2781_v5, %v2796_v27  ;;  %v3487_v29 = vsel %vm1085_vm6, %v6144_v25, -inf }
 0xec4   : > { %3488 = vmax.xlane.f32.xlu0 %v3487_v29  ;;  %v3478_v11 = vpop.f32.mrb[86].mxu1 }
 0xec5   : > { %v2806_v30 = vmul.f32 1.442695, %v2803_v28  ;;  %v6148_v51 = vadd.f32 %v5290_v32, %v3478_v11  ;;  %v4881_v34 = vpop.f32.mrb[87].mxu1 }
 0xec6   : > { %v2799_v39 = vpop.xlane.xlu0 %2798 }
 0xec7   : > { %5229 = vpow2.f32 %v2806_v30  ;;  %v2804_v2 = vsub.f32 %v2786_v42, %v2799_v39  ;;  %v3490_v62 = vsel %vm1085_vm6, %v6148_v51, -inf }
 0xec8   : > { %3491 = vmax.xlane.f32.xlu1 %v3490_v62  ;;  %v3483_v4 = vpop.f32.mrb[88].mxu1 }
 0xec9   : > { %v2808_v41 = vmul.f32 1.442695, %v2804_v2  ;;  %v6152_v10 = vadd.f32 %v5291_v50, %v3483_v4  ;;  %v4884_v5 = vpop.f32.mrb[89].mxu1 }
 0xeca   : > { %v2802_v50 = vpop.xlane.xlu0 %2801 }
 0xecb   : > { %5231 = vpow2.f32 %v2808_v41  ;;  %v3493_v36 = vsel %vm1092_vm7, %v6152_v10, -inf  ;;  %v2805_v33 = vsub.f32 %v6116_v24, %v2802_v50 }
 0xecc   : > { %3494 = vmax.xlane.f32.xlu0 %v3493_v36 }
 0xecd   : > { %v2810_v40 = vmul.f32 1.442695, %v2805_v33 }
 0xecf   : > { %5233 = vpow2.f32 %v2810_v40 }
 0xed1   : > { %v6156_v32 = vpop.eup %5229 }
 0xed2   : > { %v2812_v48 = vsel %vm1085_vm6, %v6156_v32, 0.0 }
 0xed3   : > { %2813 = vadd.xlane.f32.xlu1 %v2812_v48 }
 0xed5   : > { %v6160_v42 = vpop.eup %5231 }
 0xed6   : > { %v2815_v55 = vsel %vm1085_vm6, %v6160_v42, 0.0 }
 0xed7   : > { %2816 = vadd.xlane.f32.xlu0 %v2815_v55 }
 0xed9   : > { %v6171_v0 = vpop.eup %5233 }
 0xeda   : > { %v2818_v52 = vsel %vm1092_vm7, %v6171_v0, 0.0 }
 0xee4   : > { %5037 = vrot.lane.b32.xlu1 %v5036_v54, %s5304_s25 }
 0xeed   : > { %3062 = vrot.lane.b32.xlu0 %v6051_v3, %s5304_s25 }
 0xf08   : > { %2819 = vadd.xlane.f32.xlu1 %v2818_v52 }
 0xf39   : > { %v3025_v53 = vpop.xlane.xlu0 %3024 }
 0xf3a   : > { %v3032_v47 = vsub.f32 %v6120_v31, %v3025_v53 }
 0xf3c   : > { %v3035_v56 = vmul.f32 1.442695, %v3032_v47 }
 0xf3d   : > { %v3028_v1 = vpop.xlane.xlu1 %3027 }
 0xf3e   : > { %5235 = vpow2.f32 %v3035_v56  ;;  %v3033_v13 = vsub.f32 %v6124_v43, %v3028_v1 }
 0xf40   : > { %v3037_v54 = vmul.f32 1.442695, %v3033_v13 }
 0xf41   : > { %v3031_v3 = vpop.xlane.xlu0 %3030 }
 0xf42   : > { %5237 = vpow2.f32 %v3037_v54  ;;  %v3034_v24 = vsub.f32 %v6128_v59, %v3031_v3 }
 0xf44   : > { %v3039_v46 = vmul.f32 1.442695, %v3034_v24 }
 0xf45   : > { %v3260_v57 = vpop.xlane.xlu1 %3259 }
 0xf46   : > { %5239 = vpow2.f32 %v3039_v46  ;;  %v3267_v49 = vsub.f32 %v6132_v63, %v3260_v57 }
 0xf48   : > { %v6179_v60 = vpop.eup %5235  ;;  %v3270_v61 = vmul.f32 1.442695, %v3267_v49 }
 0xf49   : > { %v3263_v15 = vpop.xlane.xlu0 %3262  ;;  %v3041_v31 = vsel %vm1085_vm6, %v6179_v60, 0.0 }
 0xf4a   : > { %5241 = vpow2.f32 %v3270_v61  ;;  %v3268_v43 = vsub.f32 %v6136_v44, %v3263_v15  ;;  %3042 = vadd.xlane.f32.xlu0 %v3041_v31 }
 0xf4c   : > { %v6184_v17 = vpop.eup %5237  ;;  %v3272_v6 = vmul.f32 1.442695, %v3268_v43 }
 0xf4d   : > { %v3266_v59 = vpop.xlane.xlu1 %3265  ;;  %v3044_v9 = vsel %vm1085_vm6, %v6184_v17, 0.0 }
 0xf4e   : > { %5243 = vpow2.f32 %v3272_v6  ;;  %v3269_v63 = vsub.f32 %v6140_v21, %v3266_v59  ;;  %3045 = vadd.xlane.f32.xlu1 %v3044_v9 }
 0xf50   : > { %v6189_v14 = vpop.eup %5239  ;;  %v3274_v58 = vmul.f32 1.442695, %v3269_v63 }
 0xf51   : > { %v3489_v22 = vpop.xlane.xlu0 %3488  ;;  %v3047_v23 = vsel %vm1092_vm7, %v6189_v14, 0.0 }
 0xf52   : > { %5245 = vpow2.f32 %v3274_v58  ;;  %v3496_v44 = vsub.f32 %v6144_v25, %v3489_v22  ;;  %3048 = vadd.xlane.f32.xlu0 %v3047_v23 }
 0xf54   : > { %v6194_v12 = vpop.eup %5241  ;;  %v3499_v26 = vmul.f32 1.442695, %v3496_v44 }
 0xf55   : > { %v3492_v27 = vpop.xlane.xlu1 %3491  ;;  %v3276_v28 = vsel %vm1085_vm6, %v6194_v12, 0.0 }
 0xf56   : > { %5247 = vpow2.f32 %v3499_v26  ;;  %v3497_v21 = vsub.f32 %v6148_v51, %v3492_v27  ;;  %3277 = vadd.xlane.f32.xlu1 %v3276_v28 }
 0xf58   : > { %v6199_v29 = vpop.eup %5243  ;;  %v3501_v11 = vmul.f32 1.442695, %v3497_v21 }
 0xf59   : > { %v3495_v30 = vpop.xlane.xlu0 %3494  ;;  %v3279_v34 = vsel %vm1085_vm6, %v6199_v29, 0.0 }
 0xf5a   : > { %5249 = vpow2.f32 %v3501_v11  ;;  %v3498_v25 = vsub.f32 %v6152_v10, %v3495_v30  ;;  %3280 = vadd.xlane.f32.xlu0 %v3279_v34 }
 0xf5c   : > { %v6204_v39 = vpop.eup %5245  ;;  %v3503_v2 = vmul.f32 1.442695, %v3498_v25  ;;  %v5135_v25 = vld [vmem:[%s6425_s7 + $0xc0] sm:$0xff]  }
 0xf5d   : > { %v3282_v62 = vsel %vm1092_vm7, %v6204_v39, 0.0  ;;  %4602 = vmatprep.subr.bf16.mxu1 %v5135_v25 }
 0xf5e   : > { %5251 = vpow2.f32 %v3503_v2  ;;  %3283 = vadd.xlane.f32.xlu0 %v3282_v62  ;;  %v5138_v2 = vld [vmem:[%s6425_s7 + $0x88] sm:$0xff]   ;;  %v5139_v62 = vld [vmem:[%s6425_s7 + $0xd0] sm:$0xff]  }
 0xf60   : > { %v6208_v51 = vpop.eup %5247  ;;  %v2814_v4 = vpop.xlane.xlu1 %2813 }
 0xf61   : > { %5253 = vrcp.f32 %v2814_v4  ;;  %v3505_v41 = vsel %vm1085_vm6, %v6208_v51, 0.0  ;;  %v5141_v4 = vld [vmem:[%s6425_s7 + $0xd8] sm:$0xff]  }
 0xf62   : > { %3506 = vadd.xlane.f32.xlu0 %v3505_v41  ;;  %v5142_v41 = vld [vmem:[%s6425_s7 + $0x98] sm:$0xff]  }
 0xf64   : > { %v6212_v5 = vpop.eup %5249  ;;  %v2817_v10 = vpop.xlane.xlu0 %2816 }
 0xf65   : > { %5255 = vrcp.f32 %v2817_v10  ;;  %v3508_v36 = vsel %vm1085_vm6, %v6212_v5, 0.0  ;;  %v5038_v48 = vpop.permute.xlu1 %5037  ;;  %v5144_v10 = vld [vmem:[%s6425_s7 + $0xa0] sm:$0xff]  }
 0xf66   : > { %3509 = vadd.xlane.f32.xlu1 %v3508_v36  ;;  %v5040_v50 = vunpack.i.h.bf16 %v5038_v48  ;;  %v5039_v33 = vunpack.i.l.bf16 %v5038_v48  ;;  %v5145_v36 = vld [vmem:[%s6425_s7 + $0xe8] sm:$0xff]  }
 0xf68   : > { %v6216_v55 = vpop.eup %5251  ;;  %v4960_v47 = vpack.c.bf16 %v5040_v50, %v5039_v33  ;;  %v3063_v13 = vpop.permute.xlu0 %3062 }
 0xf69   : > { %v3511_v40 = vsel %vm1092_vm7, %v6216_v55, 0.0 }
 0xf6a   : > { %3512 = vadd.xlane.f32.xlu0 %v3511_v40 }
 0xf6b   : > { %v5254_v52 = vpop.eup %5253 }
 0xf6c   : > { %v2824_v53 = vmul.f32 %v5254_v52, %v6156_v32 }
 0xf6e   : > { %4802 = vmatmul.mubr.msk.f32.vlgmr.msra.gmra.mrb[54].mxu0 %vm1085_vm6, %v2824_v53 }
 0xf6f   : > { %v5256_v56 = vpop.eup %5255  ;;  %4961 = vmatpush3.bf16.msra.mxu0 %v4960_v47  ;;  %4804 = vmatprep.mubr.msk.f32.mxu0 %vm5302_vm2, %v5303_v38 }
 0xf70   : > { %4829 = vmatprep.subr.mxu0 %v5303_v38  ;;  %v2825_v1 = vmul.f32 %v5256_v56, %v6160_v42 }
 0xf72   : > { %4805 = vmatmul.mubr.msk.f32.gmra.mrb[56].mxu0 %vm1085_vm6, %v2825_v1 }
 0xf73   : > { %4830 = vmatpush3.msk.msra.mxu0 %vm1129_vm5, %v3063_v13  ;;  %4807 = vmatprep.mubr.msk.f32.mxu0 %vm5302_vm2, %v5303_v38 }
 0xf74   : > { %4966 = vmatprep.subr.bf16.mxu0 %v5301_v37 }
 0xf77   : > { %5042 = vrot.lane.b32.xlu1 %v5041_v19, %s5304_s25 }
 0xf80   : > { %3526 = vrot.lane.b32.xlu0 %v6054_v7, %s5304_s25 }
 0xf95   : > { %v2820_v32 = vpop.xlane.xlu1 %2819 }
 0xf96   : > { %5257 = vrcp.f32 %v2820_v32 }
 0xfa0   : > { %v5258_v42 = vpop.eup %5257 }
 0xfa1   : > { %v2826_v54 = vmul.f32 %v5258_v42, %v6171_v0 }
 0xfa3   : > { %4808 = vmatmul.mubr.msk.f32.gmra.mrb[58].mxu0 %vm1085_vm6, %v2826_v54 }
 0xfa4   : > { %4831 = vmatprep.mubr.msk.f32.mxu0 %vm5302_vm2, %v5303_v38 }
 0xfd7   : > { %v3043_v3 = vpop.xlane.xlu0 %3042 }
 0xfd8   : > { %5259 = vrcp.f32 %v3043_v3 }
 0xfdb   : > { %v3046_v24 = vpop.xlane.xlu1 %3045 }
 0xfdc   : > { %5261 = vrcp.f32 %v3046_v24 }
 0xfdf   : > { %v3049_v46 = vpop.xlane.xlu0 %3048 }
 0xfe0   : > { %5263 = vrcp.f32 %v3049_v46  ;;  %v5147_v46 = vld [vmem:[%s6425_s7 + $0xf0] sm:$0xff]  }
 0xfe2   : > { %v5260_v19 = vpop.eup %5259 }
 0xfe3   : > { %v3053_v57 = vmul.f32 %v5260_v19, %v6179_v60  ;;  %v3278_v49 = vpop.xlane.xlu1 %3277  ;;  %v5148_v19 = vld [vmem:[%s6425_s7 + $0xb0] sm:$0xff]  }
 0xfe4   : > { %5265 = vrcp.f32 %v3278_v49  ;;  %v5150_v49 = vld [vmem:[%s6425_s7 + $0xb8] sm:$0xff]  }
 0xfe5   : > { %4832 = vmatmul.mubr.msk.f32.vlgmr.msra.gmra.mrb[60].mxu0 %vm1085_vm6, %v3053_v57  ;;  %v5149_v57 = vld [vmem:[%s6425_s7 + $0xf8] sm:$0xff]  }
 0xfe6   : > { %v5262_v61 = vpop.eup %5261  ;;  %4968 = vmatpush3.bf16.msra.mxu0 %v4967_v8  ;;  %4834 = vmatprep.mubr.msk.f32.mxu0 %vm5302_vm2, %v5303_v38 }
 0xfe7   : > { %v3281_v0 = vpop.xlane.xlu0 %3280  ;;  %4859 = vmatprep.subr.mxu0 %v5303_v38  ;;  %v3054_v15 = vmul.f32 %v5262_v61, %v6184_v17 }
 0xfe8   : > { %5267 = vrcp.f32 %v3281_v0 }
 0xfe9   : > { %4835 = vmatmul.mubr.msk.f32.gmra.mrb[62].mxu0 %vm1085_vm6, %v3054_v15 }
 0xfea   : > { %v5264_v60 = vpop.eup %5263  ;;  %4860 = vmatpush3.msk.msra.mxu0 %vm1129_vm5, %v6054_v7  ;;  %4837 = vmatprep.mubr.msk.f32.mxu0 %vm5302_vm2, %v5303_v38 }
 0xfeb   : > { %v3284_v35 = vpop.xlane.xlu0 %3283  ;;  %v3055_v18 = vmul.f32 %v5264_v60, %v6189_v14  ;;  %4973 = vmatprep.subr.bf16.mxu0 %v5301_v37 }
 0xfec   : > { %5269 = vrcp.f32 %v3284_v35 }
 0xfed   : > { %4838 = vmatmul.mubr.msk.f32.gmra.mrb[64].mxu0 %vm1085_vm6, %v3055_v18 }
 0xfee   : > { %v5266_v8 = vpop.eup %5265  ;;  %4861 = vmatprep.mubr.msk.f32.mxu0 %vm5302_vm2, %v5303_v38 }
 0xfef   : > { %v3288_v31 = vmul.f32 %v5266_v8, %v6194_v12  ;;  %v3507_v43 = vpop.xlane.xlu0 %3506 }
 0xff0   : > { %5271 = vrcp.f32 %v3507_v43 }
 0xff1   : > { %4862 = vmatmul.mubr.msk.f32.vlgmr.msra.gmra.mrb[66].mxu0 %vm1085_vm6, %v3288_v31 }
 0xff2   : > { %v5268_v7 = vpop.eup %5267  ;;  %4864 = vmatprep.mubr.msk.f32.mxu0 %vm5302_vm2, %v5303_v38 }
 0xff3   : > { %v3510_v17 = vpop.xlane.xlu1 %3509  ;;  %v3289_v37 = vmul.f32 %v5268_v7, %v6199_v29 }
 0xff4   : > { %5273 = vrcp.f32 %v3510_v17 }
 0xff5   : > { %4865 = vmatmul.mubr.msk.f32.gmra.mrb[68].mxu0 %vm1085_vm6, %v3289_v37 }
 0xff6   : > { %v5270_v6 = vpop.eup %5269  ;;  %4867 = vmatprep.mubr.msk.f32.mxu0 %vm5302_vm2, %v5303_v38 }
 0xff7   : > { %v5043_v59 = vpop.permute.xlu1 %5042  ;;  %v3513_v9 = vpop.xlane.xlu0 %3512  ;;  %v3290_v63 = vmul.f32 %v5270_v6, %v6204_v39  ;;  %v5136_v39 = vld [vmem:[%s6425_s7 + $0x80] sm:$0xff]  }
 0xff8   : > { %v5045_v14 = vunpack.i.h.bf16 %v5043_v59  ;;  %v5044_v58 = vunpack.i.l.bf16 %v5043_v59  ;;  %5275 = vrcp.f32 %v3513_v9  ;;  %4603 = vmatpush3.bf16.msra.mxu1 %v5136_v39 }
 0xff9   : > { %4868 = vmatmul.mubr.msk.f32.gmra.mrb[70].mxu0 %vm1085_vm6, %v3290_v63 }
 0xffa   : > { %v4974_v22 = vpack.c.bf16 %v5045_v14, %v5044_v58  ;;  %4891 = vmatprep.mubr.msk.f32.mxu0 %vm5302_vm2, %v5303_v38  ;;  %v5272_v23 = vpop.eup %5271 }
 0xffb   : > { %v3517_v44 = vmul.f32 %v5272_v23, %v6208_v51  ;;  %v3527_v12 = vpop.permute.xlu0 %3526  ;;  %v5140_v51 = vld [vmem:[%s6425_s7 + $0x90] sm:$0xff]  }
 0xffc   : > { %4975 = vmatpush3.bf16.msra.mxu0 %v4974_v22 }
 0xffd   : > { %4889 = vmatprep.subr.mxu0 %v5303_v38 }
 0xffe   : > { %v5274_v26 = vpop.eup %5273 }
 0xfff   : > { %v3518_v27 = vmul.f32 %v5274_v26, %v6212_v5  ;;  %v5143_v5 = vld [vmem:[%s6425_s7 + $0xe0] sm:$0xff]  }
0x1000   : > { %4890 = vmatpush3.msk.msra.mxu0 %vm1129_vm5, %v3527_v12 }
0x1001   : > { %4892 = vmatmul.mubr.msk.f32.vlgmr.msra.gmra.mrb[72].mxu0 %vm1085_vm6, %v3517_v44 }
0x1002   : > { %4894 = vmatprep.mubr.msk.f32.mxu0 %vm5302_vm2, %v5303_v38  ;;  %v5276_v28 = vpop.eup %5275 }
0x1003   : > { %v3519_v21 = vmul.f32 %v5276_v28, %v6216_v55  ;;  %v5146_v55 = vld [vmem:[%s6425_s7 + $0xa8] sm:$0xff]  }
0x1005   : > { %4895 = vmatmul.mubr.msk.f32.gmra.mrb[74].mxu0 %vm1085_vm6, %v3518_v27 }
0x1006   : > { %4897 = vmatprep.mubr.msk.f32.mxu0 %vm5302_vm2, %v5303_v38  ;;  %v5137_v38 = vld [vmem:[%s6425_s7 + $0xc8] sm:$0xff]  }
0x1007   : > { %4604 = vmatprep.subr.bf16.mxu1 %v5137_v38 }
0x1008   : > { %4605 = vmatpush3.bf16.msra.mxu1 %v5138_v2 }
0x1009   : > { %4898 = vmatmul.mubr.msk.f32.gmra.mrb[76].mxu0 %vm1085_vm6, %v3519_v21  ;;  %4606 = vmatprep.subr.bf16.mxu1 %v5139_v62 }
0x100c   : > { %4607 = vmatpush3.bf16.msra.mxu1 %v5140_v51 }
0x100d   : > { %4608 = vmatprep.subr.bf16.mxu1 %v5141_v4 }
0x1010   : > { %4609 = vmatpush3.bf16.msra.mxu1 %v5142_v41 }
0x1011   : > { %4610 = vmatprep.subr.bf16.mxu1 %v5143_v5 }
0x1014   : > { %4611 = vmatpush3.bf16.msra.mxu1 %v5144_v10 }
0x1015   : > { %4612 = vmatprep.subr.bf16.mxu1 %v5145_v36 }
0x1018   : > { %4613 = vmatpush3.bf16.msra.mxu1 %v5146_v55 }
0x1019   : > { %4614 = vmatprep.subr.bf16.mxu1 %v5147_v46 }
0x101c   : > { %4615 = vmatpush3.bf16.msra.mxu1 %v5148_v19 }
0x101d   : > { %4616 = vmatprep.subr.bf16.mxu1 %v5149_v57 }
0x1020   : > { %4617 = vmatpush3.bf16.msra.mxu1 %v5150_v49  ;;  %v5151_v49 = vld [vmem:[%s6429_s11 + $0x10] sm:$0xff]  }
0x1021   : > { %4900 = vmatprep.subr.bf16.mxu0 %v5151_v49 }
0x1022   : > { %4901 = vmatpush3.bf16.msra.mxu0 %v5151_v49 }
0x1041   : > { %v6284_v29 = vpop.f32.mrb[54].mxu0 }
0x1042   : > { %v4803_v11 = vpop.f32.mrb[55].mxu0 }
0x1045   : > { %v6286_v30 = vpop.f32.mrb[56].mxu0 }
0x1046   : > { %v4806_v34 = vpop.f32.mrb[57].mxu0 }
0x1076   : > { %v2915_v48 = vpop.f32.mrb[58].mxu0 }
0x1077   : > { %v4809_v50 = vpop.f32.mrb[59].mxu0 }
0x10b8   : > { %v3143_v33 = vpop.f32.mrb[60].mxu0 }
0x10b9   : > { %v4833_v40 = vpop.f32.mrb[61].mxu0 }
0x10bc   : > { %v3148_v52 = vpop.f32.mrb[62].mxu0 }
0x10bd   : > { %v5051_v53 = vpack.i.bf16 %v3148_v52, %v3143_v33  ;;  %v4836_v47 = vpop.f32.mrb[63].mxu0 }
0x10c0   : > { %v3153_v56 = vpop.f32.mrb[64].mxu0 }
0x10c1   : > { %v4839_v1 = vpop.f32.mrb[65].mxu0 }
0x10c4   : > { %v3369_v13 = vpop.f32.mrb[66].mxu0 }
0x10c5   : > { %v4863_v32 = vpop.f32.mrb[67].mxu0 }
0x10c8   : > { %v3374_v42 = vpop.f32.mrb[68].mxu0 }
0x10c9   : > { %v4866_v54 = vpop.f32.mrb[69].mxu0 }
0x10cc   : > { %v3379_v3 = vpop.f32.mrb[70].mxu0 }
0x10cd   : > { %v4869_v24 = vpop.f32.mrb[71].mxu0 }
0x10d4   : > { %v3607_v61 = vpop.f32.mrb[72].mxu0 }
0x10d5   : > { %v4893_v0 = vpop.f32.mrb[73].mxu0 }
0x10d8   : > { %v3612_v15 = vpop.f32.mrb[74].mxu0 }
0x10d9   : > { %v5046_v60 = vpack.i.bf16 %v3612_v15, %v3607_v61  ;;  %v4896_v35 = vpop.f32.mrb[75].mxu0  ;;  %v5152_v61 = vld [vmem:[%s6429_s11 + $0x18] sm:$0xff]  }
0x10da   : > { %4902 = vmatprep.subr.bf16.mxu0 %v5152_v61 }
0x10db   : > { %5047 = vrot.lane.b32.xlu1 %v5046_v60, %s5304_s25  ;;  %4903 = vmatpush3.bf16.msra.mxu0 %v5152_v61 }
0x10dc   : > { %v3617_v18 = vpop.f32.mrb[76].mxu0 }
0x10dd   : > { %v5056_v8 = vpack.i.bf16 %v3153_v56, %v3617_v18  ;;  %v4899_v31 = vpop.f32.mrb[77].mxu0 }
0x10df   : > { %5052 = vrot.lane.b32.xlu1 %v5051_v53, %s5304_s25 }
0x10e3   : > { %5057 = vrot.lane.b32.xlu1 %v5056_v8, %s5304_s25 }
0x114d   : > { %v5048_v43 = vpop.permute.xlu1 %5047 }
0x114e   : > { %v5050_v7 = vunpack.i.h.bf16 %v5048_v43  ;;  %v5049_v17 = vunpack.i.l.bf16 %v5048_v43 }
0x1150   : > { %v3648_v37 = vsel %vm986_vm3, %v3369_v13, %v5049_v17  ;;  %v3649_v6 = vsel %vm986_vm3, %v3374_v42, %v5050_v7 }
0x1151   : > { %v5053_v59 = vpop.permute.xlu1 %5052  ;;  %v3652_v9 = vpack.c.bf16 %v3649_v6, %v3648_v37  ;;  %v4410_v37 = vld [vmem:[%s6427_s9 + $0x1] ss:$0 sm:$0xff] }
0x1152   : > { %v5055_v63 = vunpack.i.h.bf16 %v5053_v59  ;;  %v5054_v14 = vunpack.i.l.bf16 %v5053_v59 }
0x1153   : > { %3824 = vmatprep.mubr.bf16.mxu1 %v3652_v9 }
0x1154   : > { %v3646_v58 = vsel %vm986_vm3, %v6286_v30, %v5055_v63  ;;  %v3645_v22 = vsel %vm986_vm3, %v6284_v29, %v5054_v14  ;;  %v4391_v30 = vld [vmem:[%s6426_s8 + $0x1] ss:$0 sm:$0xff] }
0x1155   : > { %v3651_v23 = vpack.c.bf16 %v3646_v58, %v3645_v22  ;;  %v5058_v44 = vpop.permute.xlu1 %5057  ;;  %v4411_v14 = vld [vmem:[%s6428_s10 + $0x1] ss:$0 sm:$0xff] }
0x1156   : > { %v5060_v12 = vunpack.i.h.bf16 %v5058_v44  ;;  %v5059_v26 = vunpack.i.l.bf16 %v5058_v44 }
0x1157   : > { %3825 = vmatmul.mubr.bf16.vlgmr.msra.gmra.mrb[92].mxu1 %v3651_v23 }
0x1158   : > { %v3650_v27 = vsel %vm986_vm3, %v3379_v3, %v5059_v26  ;;  %v3647_v21 = vsel %vm986_vm3, %v2915_v48, %v5060_v12 }
0x1159   : > { %v3654_v28 = vpack.c.bf16 %v3650_v27, %v3650_v27  ;;  %v3653_v11 = vpack.c.bf16 %v3647_v21, %v3647_v21 }
0x115b   : > { %3832 = vmatprep.mubr.bf16.mxu1 %v3654_v28 }
0x115f   : > { %3833 = vmatmul.mubr.bf16.gmra.mrb[96].mxu1 %v3653_v11  ;;  %v5153_v11 = vld [vmem:[%s6431_s13 + $0x20] sm:$0xff]  }
0x1160   : > { %4908 = vmatprep.subr.bf16.mxu0 %v5153_v11 }
0x122a   : > { %v4618_v34 = vpop.f32.mrb[92].mxu1 }
0x122b   : > { %v4619_v25 = vpop.f32.mrb[93].mxu1 }
0x122c   : > { %v4620_v29 = vadd.f32 %v4619_v25, %v4618_v34  ;;  %v4621_v39 = vpop.f32.mrb[94].mxu1  ;;  %v5154_v34 = vld [vmem:[%s6431_s13 + $0x28] sm:$0xff]   ;;  %v5156_v25 = vld [vmem:[%s6431_s13 + $0x38] sm:$0xff]  }
0x122d   : > { %v4622_v38 = vpop.f32.mrb[95].mxu1 }
0x122e   : > { %v3827_v2 = vadd.f32 %v4620_v29, %v4391_v30  ;;  %v4623_v62 = vadd.f32 %v4622_v38, %v4621_v39  ;;  %v4417_v29 = vld [vmem:[%s6430_s12 + $0x1] ss:$0 sm:$0xff] }
0x1230   : > { %v6351_v51 = vadd.f32 %v3827_v2, %v5925_v16  ;;  %v3830_v4 = vadd.f32 %v4623_v62, %v4391_v30 }
0x1232   : > { %v6354_v41 = vadd.f32 %v3830_v4, %v5931_v45  ;;  %v4624_v5 = vpop.f32.mrb[96].mxu1  ;;  %v3847_v10 = vsel %vm690_vm0, %v6351_v51, 0.0 }
0x1233   : > { %v4625_v36 = vpop.f32.mrb[97].mxu1  ;;  %3848 = vadd.xlane.f32.xlu1 %v3847_v10 }
0x1234   : > { %v4626_v48 = vadd.f32 %v4625_v36, %v4624_v5  ;;  %v4627_v55 = vpop.f32.mrb[98].mxu1  ;;  %v3850_v50 = vsel %vm690_vm0, %v6354_v41, 0.0 }
0x1235   : > { %v4628_v33 = vpop.f32.mrb[99].mxu1  ;;  %3851 = vadd.xlane.f32.xlu0 %v3850_v50 }
0x1236   : > { %v3835_v40 = vadd.f32 %v4626_v48, %v4391_v30  ;;  %v5155_v30 = vld [vmem:[%s6431_s13 + $0x30] sm:$0xff]  }
0x1238   : > { %v6361_v16 = vadd.f32 %v3835_v40, %v5928_v20 }
0x123a   : > { %v3853_v45 = vsel %vm697_vm1, %v6361_v16, 0.0 }
0x123b   : > { %3854 = vadd.xlane.f32.xlu0 %v3853_v45 }
0x12c0   : > { %v3849_v52 = vpop.xlane.xlu1 %3848 }
0x12c1   : > { %v3856_v53 = vmul.f32 0.03125, %v3849_v52 }
0x12c2   : > { %v3852_v47 = vpop.xlane.xlu0 %3851 }
0x12c3   : > { %v3859_v56 = vsub.f32 %v6351_v51, %v3856_v53  ;;  %v3857_v1 = vmul.f32 0.03125, %v3852_v47 }
0x12c5   : > { %v3860_v13 = vsub.f32 %v6354_v41, %v3857_v1  ;;  %v3862_v32 = vmul.f32 %v3859_v56, %v3859_v56 }
0x12c7   : > { %v3865_v42 = vsel %vm690_vm0, %v3862_v32, 0.0  ;;  %v3863_v54 = vmul.f32 %v3860_v13, %v3860_v13 }
0x12c8   : > { %v3855_v3 = vpop.xlane.xlu0 %3854  ;;  %3866 = vadd.xlane.f32.xlu1 %v3865_v42 }
0x12c9   : > { %v3858_v20 = vmul.f32 0.03125, %v3855_v3  ;;  %v3868_v24 = vsel %vm690_vm0, %v3863_v54, 0.0 }
0x12ca   : > { %3869 = vadd.xlane.f32.xlu0 %v3868_v24 }
0x12cb   : > { %v3861_v46 = vsub.f32 %v6361_v16, %v3858_v20 }
0x12cd   : > { %v3864_v19 = vmul.f32 %v3861_v46, %v3861_v46 }
0x12cf   : > { %v3871_v57 = vsel %vm697_vm1, %v3864_v19, 0.0 }
0x12d0   : > { %3872 = vadd.xlane.f32.xlu1 %v3871_v57 }
0x1355   : > { %v3867_v0 = vpop.xlane.xlu1 %3866 }
0x1356   : > { %v3874_v15 = vmul.f32 0.03125, %v3867_v0 }
0x1357   : > { %v3870_v60 = vpop.xlane.xlu0 %3869 }
0x1358   : > { %v3877_v35 = vadd.f32 1e-05, %v3874_v15  ;;  %v3875_v18 = vmul.f32 0.03125, %v3870_v60 }
0x135a   : > { %5277 = vrsqrt.f32 %v3877_v35  ;;  %v3878_v8 = vadd.f32 1e-05, %v3875_v18 }
0x135c   : > { %5279 = vrsqrt.f32 %v3878_v8  ;;  %v4431_v8 = vld [vmem:[%s6432_s14 + $0x1] ss:$0 sm:$0xff] }
0x135d   : > { %v3873_v31 = vpop.xlane.xlu1 %3872 }
0x135e   : > { %v3876_v43 = vmul.f32 0.03125, %v3873_v31 }
0x1360   : > { %v3879_v7 = vadd.f32 1e-05, %v3876_v43 }
0x1362   : > { %5281 = vrsqrt.f32 %v3879_v7 }
0x1364   : > { %v5278_v17 = vpop.eup %5277 }
0x1365   : > { %v3883_v6 = vmul.f32 %v5278_v17, %v3859_v56 }
0x1366   : > { %v5280_v59 = vpop.eup %5279 }
0x1367   : > { %v3884_v9 = vmul.f32 %v5280_v59, %v3860_v13  ;;  %v3892_v63 = vmul.f32 %v4410_v37, %v3883_v6 }
0x1369   : > { %v3893_v58 = vmul.f32 %v4410_v37, %v3884_v9  ;;  %v3901_v22 = vadd.f32 %v4411_v14, %v3892_v63 }
0x136b   : > { %v3902_v23 = vadd.f32 %v4411_v14, %v3893_v58 }
0x136c   : > { %v5282_v44 = vpop.eup %5281 }
0x136d   : > { %v3885_v12 = vmul.f32 %v5282_v44, %v3861_v46  ;;  %v3904_v26 = vpack.c.bf16 %v3902_v23, %v3901_v22 }
0x136f   : > { %v3894_v27 = vmul.f32 %v4410_v37, %v3885_v12  ;;  %4904 = vmatprep.mubr.msk.bf16.mxu0 %vm690_vm0, %v3904_v26 }
0x1371   : > { %v3903_v28 = vadd.f32 %v4411_v14, %v3894_v27 }
0x1373   : > { %v3905_v21 = vpack.c.bf16 %v3903_v28, %v3903_v28 }
0x1375   : > { %4905 = vmatmul.mubr.msk.bf16.vlgmr.msra.gmra.mrb[80].mxu0 %vm690_vm0, %v3905_v21 }
0x1376   : > { %4909 = vmatpush3.bf16.msra.mxu0 %v5153_v11 }
0x1377   : > { %4910 = vmatprep.subr.bf16.mxu0 %v5154_v34 }
0x137a   : > { %4911 = vmatpush3.bf16.msra.mxu0 %v5154_v34 }
0x137b   : > { %4912 = vmatprep.subr.bf16.mxu0 %v5155_v30 }
0x137e   : > { %4913 = vmatpush3.bf16.msra.mxu0 %v5155_v30 }
0x137f   : > { %4914 = vmatprep.subr.bf16.mxu0 %v5156_v25 }
0x1382   : > { %4915 = vmatpush3.bf16.msra.mxu0 %v5156_v25 }
0x1448   : > { %v4906_v39 = vpop.f32.mrb[80].mxu0 }
0x1449   : > { %v3980_v38 = vadd.f32 %v4906_v39, %v4417_v29  ;;  %v3971_v2 = vpop.f32.mrb[81].mxu0 }
0x144a   : > { %v3972_v62 = vadd.f32 %v4417_v29, %v3971_v2  ;;  %v4907_v4 = vpop.f32.mrb[82].mxu0 }
0x144b   : > { %v3987_v5 = vmul.f32 %v3980_v38, %v3980_v38  ;;  %v3974_v10 = vpop.f32.mrb[83].mxu0 }
0x144c   : > { %v3985_v36 = vmul.f32 %v3972_v62, %v3972_v62  ;;  %v3975_v48 = vadd.f32 %v4417_v29, %v3974_v10 }
0x144d   : > { %v3990_v55 = vmul.f32 %v3987_v5, %v3980_v38 }
0x144e   : > { %v3988_v50 = vmul.f32 %v3985_v36, %v3972_v62  ;;  %v3986_v33 = vmul.f32 %v3975_v48, %v3975_v48 }
0x144f   : > { %v3993_v40 = vmul.f32 0.044715, %v3990_v55 }
0x1450   : > { %v3991_v45 = vmul.f32 0.044715, %v3988_v50  ;;  %v3989_v52 = vmul.f32 %v3986_v33, %v3975_v48 }
0x1451   : > { %v3996_v53 = vadd.f32 %v3993_v40, %v3980_v38 }
0x1452   : > { %v3994_v47 = vadd.f32 %v3991_v45, %v3972_v62  ;;  %v3992_v56 = vmul.f32 0.044715, %v3989_v52 }
0x1453   : > { %v3999_v1 = vmul.f32 0.7978846, %v3996_v53 }
0x1454   : > { %v3997_v13 = vmul.f32 0.7978846, %v3994_v47  ;;  %v3995_v32 = vadd.f32 %v3992_v56, %v3975_v48 }
0x1455   : > { %5283 = vtanh.f32 %v3999_v1 }
0x1456   : > { %5285 = vtanh.f32 %v3997_v13  ;;  %v3998_v42 = vmul.f32 0.7978846, %v3995_v32 }
0x1458   : > { %5287 = vtanh.f32 %v3998_v42 }
0x145f   : > { %v5284_v54 = vpop.eup %5283 }
0x1460   : > { %v5286_v3 = vpop.eup %5285  ;;  %v4005_v20 = vadd.f32 1.0, %v5284_v54 }
0x1461   : > { %v4003_v24 = vadd.f32 1.0, %v5286_v3 }
0x1462   : > { %v5288_v46 = vpop.eup %5287  ;;  %v4008_v19 = vmul.f32 0.5, %v4005_v20 }
0x1463   : > { %v4006_v57 = vmul.f32 0.5, %v4003_v24  ;;  %v4004_v49 = vadd.f32 1.0, %v5288_v46 }
0x1464   : > { %v4011_v0 = vmul.f32 %v4008_v19, %v3980_v38 }
0x1465   : > { %v4007_v61 = vmul.f32 0.5, %v4004_v49  ;;  %v4009_v15 = vmul.f32 %v4006_v57, %v3972_v62 }
0x1466   : > { %v4013_v18 = vpack.c.bf16 %v4011_v0, %v4011_v0 }
0x1467   : > { %v4010_v60 = vmul.f32 %v4007_v61, %v3975_v48 }
0x1469   : > { %v4012_v35 = vpack.c.bf16 %v4010_v60, %v4009_v15 }
0x146b   : > { %4916 = vmatprep.mubr.msk.bf16.mxu0 %vm986_vm3, %v4012_v35 }
0x146c   : > { %4917 = vmatmul.mubr.msk.bf16.vlgmr.msra.gmra.mrb[84].mxu0 %vm986_vm3, %v4013_v18 }
0x153f   : > { %v4918_v31 = vpop.f32.mrb[84].mxu0 }
0x1540   : > { %v4104_v43 = vadd.f32 %v4918_v31, %v4431_v8  ;;  %v4095_v7 = vpop.f32.mrb[85].mxu0 }
0x1541   : > { %v4096_v17 = vadd.f32 %v4431_v8, %v4095_v7  ;;  %v4919_v37 = vpop.f32.mrb[86].mxu0 }
0x1542   : > { %v4111_v6 = vadd.f32 %v4104_v43, %v6361_v16  ;;  %v4098_v59 = vpop.f32.mrb[87].mxu0 }
0x1543   : > { %v4109_v9 = vadd.f32 %v4096_v17, %v6351_v51  ;;  %v4099_v63 = vadd.f32 %v4431_v8, %v4098_v59 }
0x1544   : > { %4114 = vst.msk [vmem:[%s494_s17 + $0x10] sm:$0xf] %vm697_vm1, %v4111_v6 }
0x1545   : > { %4112 = vst.msk [vmem:[%s494_s17] sm:$0xff] %vm690_vm0, %v4109_v9  ;;  %v4110_v14 = vadd.f32 %v4099_v63, %v6354_v41 }
0x1547   : > { %4113 = vst.msk [vmem:[%s494_s17 + $0x8] sm:$0xff] %vm690_vm0, %v4110_v14 }
0x1548 PF: > { %s25_s18 = sadd.s32 1, %s5298_s18  }
0x1549   : > { %p22_p4 = scmp.ge.s32.totalorder %s25_s18, 4  }
0x154b   :  { %24 = sbr.rel (!%p22_p4) target bundleno = 1 (0x1), region = 121 }

</bundles_post_ra>
